<compile_context>
chip_gen: v7x
topology: tpu7x:2x2x1
jax: 0.10.0
libtpu: 0.0.40
codegen_flags: <defaults>
</compile_context>

<pallas_src>
import functools
import math

import jax
import jax.numpy as jnp
from jax.experimental import pallas as pl
from jax.experimental.pallas import tpu as pltpu

_LANE = 128          # TPU lane width: keep output last dim lane-dense
_MIN_TILE = 256      # MXU-friendly minimum batch tile
_MAX_TILE = 2048     # safe upper bound for v7x's 64 MiB VMEM


def _leaky_relu(x, negative_slope=0.2):
    # valid for 0 < slope < 1: max(x, slope*x) == leaky_relu(x)
    return jnp.maximum(x, negative_slope * x)


def generator_kernel(x_ref,
                     w1_ref, b1_ref,
                     w2_ref, b2_ref,
                     w3_ref, b3_ref,
                     w4_ref, b4_ref,
                     out_ref):
    """Fused 4-layer MLP for one (batch_tile, latent) block; everything in VMEM.

    Matmuls run on the MXU in bf16 with f32 accumulation; LeakyReLU / Tanh
    epilogues are computed in f32; the output tile is written back in bf16."""
    h = x_ref[...]                                                     # bf16
    h = jnp.dot(h, w1_ref[...], preferred_element_type=jnp.float32) + b1_ref[...]
    h = _leaky_relu(h).astype(jnp.bfloat16)
    h = jnp.dot(h, w2_ref[...], preferred_element_type=jnp.float32) + b2_ref[...]
    h = _leaky_relu(h).astype(jnp.bfloat16)
    h = jnp.dot(h, w3_ref[...], preferred_element_type=jnp.float32) + b3_ref[...]
    h = _leaky_relu(h).astype(jnp.bfloat16)
    h = jnp.dot(h, w4_ref[...], preferred_element_type=jnp.float32) + b4_ref[...]
    out_ref[...] = jnp.tanh(h).astype(jnp.bfloat16)                    # bf16 out


def _pad_axis(a, axis, multiple):
    pad = (-a.shape[axis]) % multiple
    if pad == 0:
        return a
    widths = [(0, 0)] * a.ndim
    widths[axis] = (0, pad)
    return jnp.pad(a, widths)


def _round_up(n, m):
    return ((n + m - 1) // m) * m


def _choose_batch_tile(batch):
    """Largest MXU-aligned tile <= _MAX_TILE that keeps >= 2 grid steps when
    the batch allows (v7x has 2 TensorCores; a 1-step grid idles one)."""
    if batch <= _MIN_TILE:
        return _MIN_TILE
    half = _round_up((batch + 1) // 2, _MIN_TILE)
    return min(_MAX_TILE, half)


def generator_forward(x, params, *, batch_tile=None):
    """x: (B, latent_dim) f32 -> (B, feature_dim) f32 (matches PyTorch Generator)."""
    (w1, b1), (w2, b2), (w3, b3), (w4, b4) = params
    B, latent_dim = x.shape
    feature_dim = w4.shape[1]

    if batch_tile is None:
        batch_tile = _choose_batch_tile(B)

    # Weights: bf16, stored (in_features, out_features); only the *output* dims
    # are padded to 128 lanes (layer-1's K dim of 32 is deliberately unpadded).
    def prep_w(w):
        return _pad_axis(w, 1, _LANE).astype(jnp.bfloat16)

    def prep_b(b):
        return _pad_axis(b, 1, _LANE).astype(jnp.float32)

    w1p, w2p, w3p, w4p = prep_w(w1), prep_w(w2), prep_w(w3), prep_w(w4)
    b1p, b2p, b3p, b4p = prep_b(b1), prep_b(b2), prep_b(b3), prep_b(b4)

    # Cast to bf16 first so the wrapper pad moves half the bytes.
    xp = _pad_axis(x.astype(jnp.bfloat16), 0, batch_tile)
    Bp, Kp = xp.shape
    Fp = w4p.shape[1]

    grid = (Bp // batch_tile,)

    def const_spec(shape):
        # Same full block every grid step; single-buffered (weights/biases stay
        # VMEM-resident, no per-step re-DMA and no unused second buffer).
        return pl.BlockSpec(shape, lambda i: (0, 0), pipeline_mode=pl.Buffered(1))

    weights = (w1p, w2p, w3p, w4p)
    biases = (b1p, b2p, b3p, b4p)
    flops = 2 * Bp * sum(w.shape[0] * w.shape[1] for w in weights)
    bytes_accessed = (xp.size * 2 + Bp * Fp * 2
                      + sum(w.size * 2 for w in weights)
                      + sum(b.size * 4 for b in biases))
    cost = pl.CostEstimate(flops=flops,
                           transcendentals=Bp * Fp,
                           bytes_accessed=bytes_accessed)

    # VMEM budget scales with the batch tile; capped at 64 MiB so it is safe on
    # v7x (64 MiB physical) while letting v5e/v6e take the larger tiles.
    vmem_limit_bytes = min(64, 16 + (batch_tile * 16) // 1024) * 1024 * 1024

    out = pl.pallas_call(
        generator_kernel,
        out_shape=jax.ShapeDtypeStruct((Bp, Fp), jnp.bfloat16),
        grid_spec=pltpu.PrefetchScalarGridSpec(
            num_scalar_prefetch=0,
            grid=grid,
            in_specs=[
                pl.BlockSpec((batch_tile, Kp), lambda i: (i, 0)),
                const_spec(w1p.shape), const_spec(b1p.shape),
                const_spec(w2p.shape), const_spec(b2p.shape),
                const_spec(w3p.shape), const_spec(b3p.shape),
                const_spec(w4p.shape), const_spec(b4p.shape),
            ],
            out_specs=pl.BlockSpec((batch_tile, Fp), lambda i: (i, 0)),
        ),
        compiler_params=pltpu.CompilerParams(
            dimension_semantics=("parallel",),
            vmem_limit_bytes=vmem_limit_bytes,
        ),
        cost_estimate=cost,
    )(xp, w1p, b1p, w2p, b2p, w3p, b3p, w4p, b4p)

    # Slice off batch/feature padding; callers get f32 like the PyTorch module.
    return out[:B, :feature_dim].astype(jnp.float32)


def init_generator_params(key, latent_dim, feature_dim):
    """Deterministic init mimicking nn.Linear default (uniform +/- 1/sqrt(fan_in)).

    Weights are stored as (in_features, out_features)."""
    dims = [(latent_dim, 1024), (1024, 512), (512, 256), (256, feature_dim)]
    params = []
    for fan_in, fan_out in dims:
        key, kw, kb = jax.random.split(key, 3)
        bound = 1.0 / math.sqrt(fan_in)
        w = jax.random.uniform(kw, (fan_in, fan_out), jnp.float32, -bound, bound)
        b = jax.random.uniform(kb, (1, fan_out), jnp.float32, -bound, bound)
        params.append((w, b))
    return params


def reference_forward(x, params):
    """Plain-JAX reference mirroring the kernel's numerics (bf16 weights,
    inter-layer activations and output, f32 accumulation and epilogues).

    NOTE: this validates self-consistency of the bf16 pipeline; parity with a
    pure-f32 PyTorch Generator holds to ~bf16 precision (|err| <~ 1e-2)."""
    rt = lambda a: a.astype(jnp.bfloat16).astype(jnp.float32)
    h = rt(x)
    for i, (w, b) in enumerate(params):
        h = h @ rt(w) + b
        if i < 3:
            h = rt(jnp.maximum(h, 0.2 * h))
        else:
            h = rt(jnp.tanh(h))
    return h


if __name__ == "__main__":
    latent_dim = 32
    feature_dim = 64
    batch = 512  # -> batch_tile=256, grid=(2,): spans both v7x TensorCores

    key = jax.random.PRNGKey(0)
    key, kx = jax.random.split(key)
    x = jax.random.normal(kx, (batch, latent_dim), jnp.float32)
    params = init_generator_params(key, latent_dim, feature_dim)

    fwd = jax.jit(functools.partial(generator_forward))
    out = jax.block_until_ready(fwd(x, params))

    ref = reference_forward(x, params)
    assert out.shape == (batch, feature_dim)
    max_err = jnp.max(jnp.abs(out - ref))
    assert jnp.allclose(out, ref, atol=1.5e-2, rtol=1.5e-2), (
        f"mismatch vs reference: max abs err = {max_err}")

    print("KERNEL_OK")
</pallas_src>

<mosaic_0001>
module attributes {stable_mosaic.version = 11 : i64} {
  func.func @generator_kernel(%arg0: i32, %arg1: memref<256x32xbf16, #tpu.memory_space<vmem>>, %arg2: memref<32x1024xbf16, #tpu.memory_space<vmem>>, %arg3: memref<1x1024xf32, #tpu.memory_space<vmem>>, %arg4: memref<1024x512xbf16, #tpu.memory_space<vmem>>, %arg5: memref<1x512xf32, #tpu.memory_space<vmem>>, %arg6: memref<512x256xbf16, #tpu.memory_space<vmem>>, %arg7: memref<1x256xf32, #tpu.memory_space<vmem>>, %arg8: memref<256x128xbf16, #tpu.memory_space<vmem>>, %arg9: memref<1x128xf32, #tpu.memory_space<vmem>>, %arg10: memref<256x128xbf16, #tpu.memory_space<vmem>>) attributes {dimension_semantics = [#tpu.dimension_semantics<parallel>], iteration_bounds = array<i64: 2>, scalar_prefetch = 0 : i64, scratch_operands = 0 : i64, tpu.core_type = #tpu.core_type<tc>, window_params = [{transform_indices = @transform_0, window_bounds = array<i64: 256, 32>}, {pipeline_mode = #tpu.pipeline_mode<synchronous>, transform_indices = @transform_1, window_bounds = array<i64: 32, 1024>}, {pipeline_mode = #tpu.pipeline_mode<synchronous>, transform_indices = @transform_2, window_bounds = array<i64: 1, 1024>}, {pipeline_mode = #tpu.pipeline_mode<synchronous>, transform_indices = @transform_3, window_bounds = array<i64: 1024, 512>}, {pipeline_mode = #tpu.pipeline_mode<synchronous>, transform_indices = @transform_4, window_bounds = array<i64: 1, 512>}, {pipeline_mode = #tpu.pipeline_mode<synchronous>, transform_indices = @transform_5, window_bounds = array<i64: 512, 256>}, {pipeline_mode = #tpu.pipeline_mode<synchronous>, transform_indices = @transform_6, window_bounds = array<i64: 1, 256>}, {pipeline_mode = #tpu.pipeline_mode<synchronous>, transform_indices = @transform_7, window_bounds = array<i64: 256, 128>}, {pipeline_mode = #tpu.pipeline_mode<synchronous>, transform_indices = @transform_8, window_bounds = array<i64: 1, 128>}, {transform_indices = @transform_9, window_bounds = array<i64: 256, 128>}]} {
    %c0 = arith.constant 0 : index
    %c0_0 = arith.constant 0 : index
    %0 = vector.load %arg1[%c0, %c0_0] : memref<256x32xbf16, #tpu.memory_space<vmem>>, vector<256x32xbf16>
    %c0_1 = arith.constant 0 : index
    %c0_2 = arith.constant 0 : index
    %1 = vector.load %arg2[%c0_1, %c0_2] : memref<32x1024xbf16, #tpu.memory_space<vmem>>, vector<32x1024xbf16>
    %cst = arith.constant dense<0.000000e+00> : vector<256x1024xf32>
    %2 = tpu.matmul %0, %1, %cst {dimension_numbers = #tpu.dot_dimension_numbers<[1], [0], [0], [1], [0, 0, 1, 1], [], []>} : vector<256x32xbf16>, vector<32x1024xbf16>, vector<256x1024xf32> -> vector<256x1024xf32>
    %c0_3 = arith.constant 0 : index
    %c0_4 = arith.constant 0 : index
    %3 = vector.load %arg3[%c0_3, %c0_4] : memref<1x1024xf32, #tpu.memory_space<vmem>>, vector<1x1024xf32>
    %4 = vector.broadcast %3 : vector<1x1024xf32> to vector<256x1024xf32>
    %5 = arith.addf %2, %4 : vector<256x1024xf32>
    %cst_5 = arith.constant 2.000000e-01 : f32
    %6 = vector.broadcast %cst_5 : f32 to vector<256x1024xf32>
    %7 = arith.mulf %6, %5 : vector<256x1024xf32>
    %8 = arith.maximumf %5, %7 : vector<256x1024xf32>
    %9 = arith.truncf %8 : vector<256x1024xf32> to vector<256x1024xbf16>
    %c0_6 = arith.constant 0 : index
    %c0_7 = arith.constant 0 : index
    %10 = vector.load %arg4[%c0_6, %c0_7] : memref<1024x512xbf16, #tpu.memory_space<vmem>>, vector<1024x512xbf16>
    %cst_8 = arith.constant dense<0.000000e+00> : vector<256x512xf32>
    %11 = tpu.matmul %9, %10, %cst_8 {dimension_numbers = #tpu.dot_dimension_numbers<[1], [0], [0], [1], [0, 0, 1, 1], [], []>} : vector<256x1024xbf16>, vector<1024x512xbf16>, vector<256x512xf32> -> vector<256x512xf32>
    %c0_9 = arith.constant 0 : index
    %c0_10 = arith.constant 0 : index
    %12 = vector.load %arg5[%c0_9, %c0_10] : memref<1x512xf32, #tpu.memory_space<vmem>>, vector<1x512xf32>
    %13 = vector.broadcast %12 : vector<1x512xf32> to vector<256x512xf32>
    %14 = arith.addf %11, %13 : vector<256x512xf32>
    %cst_11 = arith.constant 2.000000e-01 : f32
    %15 = vector.broadcast %cst_11 : f32 to vector<256x512xf32>
    %16 = arith.mulf %15, %14 : vector<256x512xf32>
    %17 = arith.maximumf %14, %16 : vector<256x512xf32>
    %18 = arith.truncf %17 : vector<256x512xf32> to vector<256x512xbf16>
    %c0_12 = arith.constant 0 : index
    %c0_13 = arith.constant 0 : index
    %19 = vector.load %arg6[%c0_12, %c0_13] : memref<512x256xbf16, #tpu.memory_space<vmem>>, vector<512x256xbf16>
    %cst_14 = arith.constant dense<0.000000e+00> : vector<256x256xf32>
    %20 = tpu.matmul %18, %19, %cst_14 {dimension_numbers = #tpu.dot_dimension_numbers<[1], [0], [0], [1], [0, 0, 1, 1], [], []>} : vector<256x512xbf16>, vector<512x256xbf16>, vector<256x256xf32> -> vector<256x256xf32>
    %c0_15 = arith.constant 0 : index
    %c0_16 = arith.constant 0 : index
    %21 = vector.load %arg7[%c0_15, %c0_16] : memref<1x256xf32, #tpu.memory_space<vmem>>, vector<1x256xf32>
    %22 = vector.broadcast %21 : vector<1x256xf32> to vector<256x256xf32>
    %23 = arith.addf %20, %22 : vector<256x256xf32>
    %cst_17 = arith.constant 2.000000e-01 : f32
    %24 = vector.broadcast %cst_17 : f32 to vector<256x256xf32>
    %25 = arith.mulf %24, %23 : vector<256x256xf32>
    %26 = arith.maximumf %23, %25 : vector<256x256xf32>
    %27 = arith.truncf %26 : vector<256x256xf32> to vector<256x256xbf16>
    %c0_18 = arith.constant 0 : index
    %c0_19 = arith.constant 0 : index
    %28 = vector.load %arg8[%c0_18, %c0_19] : memref<256x128xbf16, #tpu.memory_space<vmem>>, vector<256x128xbf16>
    %cst_20 = arith.constant dense<0.000000e+00> : vector<256x128xf32>
    %29 = tpu.matmul %27, %28, %cst_20 {dimension_numbers = #tpu.dot_dimension_numbers<[1], [0], [0], [1], [0, 0, 1, 1], [], []>} : vector<256x256xbf16>, vector<256x128xbf16>, vector<256x128xf32> -> vector<256x128xf32>
    %c0_21 = arith.constant 0 : index
    %c0_22 = arith.constant 0 : index
    %30 = vector.load %arg9[%c0_21, %c0_22] : memref<1x128xf32, #tpu.memory_space<vmem>>, vector<1x128xf32>
    %31 = vector.broadcast %30 : vector<1x128xf32> to vector<256x128xf32>
    %32 = arith.addf %29, %31 : vector<256x128xf32>
    %33 = math.tanh %32 : vector<256x128xf32>
    %34 = arith.truncf %33 : vector<256x128xf32> to vector<256x128xbf16>
    %c0_23 = arith.constant 0 : index
    %c0_24 = arith.constant 0 : index
    %35 = vector.load %arg10[%c0_23, %c0_24] : memref<256x128xbf16, #tpu.memory_space<vmem>>, vector<256x128xbf16>
    tpu.vector_store %arg10[%c0_23, %c0_24], %34 {strides = array<i32>} : memref<256x128xbf16, #tpu.memory_space<vmem>>, vector<256x128xbf16>,
    return
  }
  func.func @transform_0(%arg0: i32) -> (i32, i32) {
    %c0_i32 = arith.constant 0 : i32
    %c0_i32_0 = arith.constant 0 : i32
    return %arg0, %c0_i32 : i32, i32
  }
  func.func @transform_1(%arg0: i32) -> (i32, i32) {
    %c0_i32 = arith.constant 0 : i32
    %c0_i32_0 = arith.constant 0 : i32
    %c0_i32_1 = arith.constant 0 : i32
    return %c0_i32, %c0_i32_0 : i32, i32
  }
  func.func @transform_2(%arg0: i32) -> (i32, i32) {
    %c0_i32 = arith.constant 0 : i32
    %c0_i32_0 = arith.constant 0 : i32
    %c0_i32_1 = arith.constant 0 : i32
    return %c0_i32, %c0_i32_0 : i32, i32
  }
  func.func @transform_3(%arg0: i32) -> (i32, i32) {
    %c0_i32 = arith.constant 0 : i32
    %c0_i32_0 = arith.constant 0 : i32
    %c0_i32_1 = arith.constant 0 : i32
    return %c0_i32, %c0_i32_0 : i32, i32
  }
  func.func @transform_4(%arg0: i32) -> (i32, i32) {
    %c0_i32 = arith.constant 0 : i32
    %c0_i32_0 = arith.constant 0 : i32
    %c0_i32_1 = arith.constant 0 : i32
    return %c0_i32, %c0_i32_0 : i32, i32
  }
  func.func @transform_5(%arg0: i32) -> (i32, i32) {
    %c0_i32 = arith.constant 0 : i32
    %c0_i32_0 = arith.constant 0 : i32
    %c0_i32_1 = arith.constant 0 : i32
    return %c0_i32, %c0_i32_0 : i32, i32
  }
  func.func @transform_6(%arg0: i32) -> (i32, i32) {
    %c0_i32 = arith.constant 0 : i32
    %c0_i32_0 = arith.constant 0 : i32
    %c0_i32_1 = arith.constant 0 : i32
    return %c0_i32, %c0_i32_0 : i32, i32
  }
  func.func @transform_7(%arg0: i32) -> (i32, i32) {
    %c0_i32 = arith.constant 0 : i32
    %c0_i32_0 = arith.constant 0 : i32
    %c0_i32_1 = arith.constant 0 : i32
    return %c0_i32, %c0_i32_0 : i32, i32
  }
  func.func @transform_8(%arg0: i32) -> (i32, i32) {
    %c0_i32 = arith.constant 0 : i32
    %c0_i32_0 = arith.constant 0 : i32
    %c0_i32_1 = arith.constant 0 : i32
    return %c0_i32, %c0_i32_0 : i32, i32
  }
  func.func @transform_9(%arg0: i32) -> (i32, i32) {
    %c0_i32 = arith.constant 0 : i32
    %c0_i32_0 = arith.constant 0 : i32
    return %arg0, %c0_i32 : i32, i32
  }
}

</mosaic_0001>

<bundles_post_ra>
// kernel: generator_forward.1
= control target key start
LH: loop header
LB: loop body
LE: loop exit
PB: predicated region body
PF: predicated region fallthrough
CT: control target
= control target key end

     0   :  { %s8976_s30 = smov 0   ;;  %s11494_s0 = inlined_call_operand.vmem [shape: bf16[512,32], index: 0, kind: input, shape index: {}]   ;;  %s11495_s1 = inlined_call_operand.vmem [shape: bf16[32,1024], index: 1, kind: input, shape index: {}]   ;;  %s11496_s2 = inlined_call_operand.vmem [shape: f32[1,1024], index: 2, kind: input, shape index: {}]   ;;  %s11497_s3 = inlined_call_operand.vmem [shape: bf16[1024,512], index: 3, kind: input, shape index: {}]   ;;  %s11498_s4 = inlined_call_operand.vmem [shape: f32[1,512], index: 4, kind: input, shape index: {}]   ;;  %s11499_s5 = inlined_call_operand.vmem [shape: bf16[512,256], index: 5, kind: input, shape index: {}]   ;;  %s11500_s6 = inlined_call_operand.vmem [shape: f32[1,256], index: 6, kind: input, shape index: {}]   ;;  %s11501_s7 = inlined_call_operand.vmem [shape: bf16[256,128], index: 7, kind: input, shape index: {}]   ;;  %s11502_s8 = inlined_call_operand.vmem [shape: f32[1,128], index: 8, kind: input, shape index: {}]   ;;  %s11503_s9 = inlined_call_operand.vmem [shape: bf16[512,128], index: 9, kind: output, shape index: {}]  }
   0x1 LB: > { %s6956_s10 = sadd.s32 4294967295, %s8923_s30   ;;  %p6960_p0 = scmp.ge.s32.totalorder %s8923_s30, 1  ;;  %s8923_s30 = sphi %s8976_s30, %s19_s30  }
   0x2   : > { %p288_p1 = scmp.lt.s32.totalorder %s8923_s30, 3 }
   0x4   : > { %p289_p2 = pnand %p6960_p0, %p288_p1 }
   0x6   : > { %292 = sbr.rel (%p289_p2) target bundleno = 1562 (0x61a), region = 56 }
   0xd   : > { %v369_v0 = vld [vmem:[%s11495_s1] sm:$0xff]  ;;  %s6961_s17 = sshll.u32 %s6956_s10, 5  ;;  %v11506_v6 = vmov 0   ;;  %v370_v7 = vld [vmem:[%s11495_s1 + $0x8] sm:$0xff]  ;;  %v371_v10 = vld [vmem:[%s11495_s1 + $0x10] sm:$0xff]  ;;  %vm587_vm0 = vcmask 261120  }
   0xe   : > { %v373_v1 = vld [vmem:[%s11495_s1 + $0x20] sm:$0xff]  ;;  %668 = vmatprep.mubr.bf16.mxu0 %v11506_v6  ;;  %748 = vmatprep.mubr.bf16.mxu1 %v11506_v6  ;;  %p325_p3 = scmp.lt.s32.totalorder %s6961_s17, 63  ;;  %v374_v9 = vld [vmem:[%s11495_s1 + $0x28] sm:$0xff]  ;;  %v375_v11 = vld [vmem:[%s11495_s1 + $0x30] sm:$0xff] }
   0xf   : > { %v377_v2 = vld [vmem:[%s11495_s1 + $0x40] sm:$0xff]  ;;  %v6982_v3 = vcombine.high %v369_v0, %v373_v1  ;;  %v6981_v4 = vcombine.low %v369_v0, %v373_v1  ;;  %v6984_v13 = vcombine.high %v370_v7, %v374_v9  ;;  %v6986_v14 = vcombine.high %v371_v10, %v375_v11  ;;  %v378_v15 = vld [vmem:[%s11495_s1 + $0x48] sm:$0xff]  ;;  %v379_v17 = vld [vmem:[%s11495_s1 + $0x50] sm:$0xff] }
  0x10   : > { %v381_v5 = vld [vmem:[%s11495_s1 + $0x60] sm:$0xff]  ;;  %s11697_s17 = smov (!%p325_p3, %s6961_s17), 63  ;;  %v382_v16 = vld [vmem:[%s11495_s1 + $0x68] sm:$0xff]  ;;  %v383_v18 = vld [vmem:[%s11495_s1 + $0x70] sm:$0xff]  ;;  %v6983_v21 = vcombine.low %v370_v7, %v374_v9  ;;  %v6985_v22 = vcombine.low %v371_v10, %v375_v11 }
  0x11   : > { %v6990_v8 = vcombine.high %v377_v2, %v381_v5  ;;  %636 = vmatprep.subr.bf16.mxu0 %v6982_v3  ;;  %7671 = vmatprep.subr.bf16.mxu1 %v6982_v3  ;;  %v6989_v12 = vcombine.low %v377_v2, %v381_v5  ;;  %s6962_s28 = sshll.u32 %s11697_s17, 2  ;;  %v6992_v23 = vcombine.high %v378_v15, %v382_v16  ;;  %v9041_v25 = vld [vmem:[%s11495_s1 + $0x18] sm:$0xff]  ;;  %v8342_v29 = vld [vmem:[%s11497_s3 + $0x4] ss:$16 sps:$4 sm:$0xff]   ;;  %v8340_v47 = vld [vmem:[%s11497_s3] ss:$16 sps:$4 sm:$0xff]  }
  0x12   : > { %637 = vmatpush1.bf16.msra.mxu0 %v6981_v4  ;;  %7673 = vmatpush1.bf16.msra.mxu1 %v6981_v4  ;;  %s9027_s18 = scalar_lea.vmem %s11494_s0, %s6962_s28  ;;  %v6994_v24 = vcombine.high %v379_v17, %v383_v18  ;;  %v9050_v26 = vld [vmem:[%s11495_s1 + $0x38] sm:$0xff]  ;;  %v6991_v27 = vcombine.low %v378_v15, %v382_v16  ;;  %v6993_v28 = vcombine.low %v379_v17, %v383_v18  ;;  %v8345_v49 = vld [vmem:[%s11497_s3 + $0x24] ss:$16 sps:$4 sm:$0xff]   ;;  %v8343_v51 = vld [vmem:[%s11497_s3 + $0x20] ss:$16 sps:$4 sm:$0xff]  }
  0x13   : > { %638 = vmatprep.subr.bf16.mxu0 %v6990_v8  ;;  %7672 = vmatprep.subr.bf16.mxu1 %v6990_v8  ;;  %v9033_v19 = vld [vmem:[%s9027_s18] sm:$0xff]   ;;  %v9058_v30 = vld [vmem:[%s9027_s18 + $0x8] sm:$0xff]   ;;  %v6988_v31 = vcombine.high %v9041_v25, %v9050_v26  ;;  %v9072_v33 = vld [vmem:[%s9027_s18 + $0x10] sm:$0xff]   ;;  %v6987_v48 = vcombine.low %v9041_v25, %v9050_v26  ;;  %v387_v25 = vlaneseq }
  0x14   : > { %v9036_v20 = vld [vmem:[%s9027_s18 + $0x40] sm:$0xff]   ;;  %v9063_v32 = vld [vmem:[%s9027_s18 + $0x48] sm:$0xff]   ;;  %v9075_v34 = vld [vmem:[%s9027_s18 + $0x50] sm:$0xff]  }
  0x15   : > { %v9084_v35 = vld [vmem:[%s9027_s18 + $0x18] sm:$0xff]   ;;  %v9096_v37 = vld [vmem:[%s9027_s18 + $0x20] sm:$0xff]   ;;  %v9108_v39 = vld [vmem:[%s9027_s18 + $0x28] sm:$0xff]  }
  0x16   : > { %639 = vmatpush1.bf16.msra.mxu0 %v6989_v12  ;;  %7674 = vmatpush1.bf16.msra.mxu1 %v6989_v12  ;;  %v9087_v36 = vld [vmem:[%s9027_s18 + $0x58] sm:$0xff]   ;;  %v9099_v38 = vld [vmem:[%s9027_s18 + $0x60] sm:$0xff]   ;;  %v9111_v40 = vld [vmem:[%s9027_s18 + $0x68] sm:$0xff]  }
  0x17   : > { %829 = vmatprep.subr.bf16.mxu1 %v6984_v13  ;;  %1022 = vmatprep.subr.bf16.mxu0 %v6986_v14  ;;  %v9120_v41 = vld [vmem:[%s9027_s18 + $0x30] sm:$0xff]   ;;  %v9132_v43 = vld [vmem:[%s9027_s18 + $0x38] sm:$0xff]  }
  0x18   : > { %v9123_v42 = vld [vmem:[%s9027_s18 + $0x70] sm:$0xff]   ;;  %v9135_v44 = vld [vmem:[%s9027_s18 + $0x78] sm:$0xff]  }
  0x19   : > { %6997 = vmatmul.mubr.msk.bf16.vlgmr.msra.gmra.mrb[0].mxu0 %vm587_vm0, %v9033_v19  ;;  %7005 = vmatmul.mubr.msk.bf16.vlgmr.msra.gmra.mrb[0].mxu1 %vm587_vm0, %v9036_v20  ;;  %v380_v45 = vld [vmem:[%s11495_s1 + $0x58] sm:$0xff]  ;;  %v8348_v52 = vld [vmem:[%s11497_s3 + $0x44] ss:$16 sps:$4 sm:$0xff]   ;;  %v8346_v54 = vld [vmem:[%s11497_s3 + $0x40] ss:$16 sps:$4 sm:$0xff]  }
  0x1a   : > { %678 = vmatprep.mubr.bf16.mxu0 %v11506_v6  ;;  %758 = vmatprep.mubr.bf16.mxu1 %v11506_v6  ;;  %v384_v46 = vld [vmem:[%s11495_s1 + $0x78] sm:$0xff]  ;;  %v8351_v55 = vld [vmem:[%s11497_s3 + $0x64] ss:$16 sps:$4 sm:$0xff]   ;;  %v8349_v56 = vld [vmem:[%s11497_s3 + $0x60] ss:$16 sps:$4 sm:$0xff]  }
  0x1b   : > { %830 = vmatpush1.bf16.msra.mxu1 %v6983_v21  ;;  %1023 = vmatpush1.bf16.msra.mxu0 %v6985_v22  ;;  %v6996_v50 = vcombine.high %v380_v45, %v384_v46  ;;  %v6995_v53 = vcombine.low %v380_v45, %v384_v46  ;;  %v8354_v57 = vld [vmem:[%s11497_s3 + $0x84] ss:$16 sps:$4 sm:$0xff]   ;;  %v8352_v58 = vld [vmem:[%s11497_s3 + $0x80] ss:$16 sps:$4 sm:$0xff]   ;;  %v8393_v8 = vld [vmem:[%s11497_s3 + $0xc] ss:$16 sps:$4 sm:$0xff]  }
  0x1c   : > { %831 = vmatprep.subr.bf16.mxu1 %v6992_v23  ;;  %1024 = vmatprep.subr.bf16.mxu0 %v6994_v24  ;;  %v8357_v59 = vld [vmem:[%s11497_s3 + $0xa4] ss:$16 sps:$4 sm:$0xff]   ;;  %v8355_v60 = vld [vmem:[%s11497_s3 + $0xa0] ss:$16 sps:$4 sm:$0xff]   ;;  %v8399_v21 = vld [vmem:[%s11497_s3 + $0x2c] ss:$16 sps:$4 sm:$0xff]  }
  0x1d   : > { %v8360_v61 = vld [vmem:[%s11497_s3 + $0xc4] ss:$16 sps:$4 sm:$0xff]   ;;  %v8358_v62 = vld [vmem:[%s11497_s3 + $0xc0] ss:$16 sps:$4 sm:$0xff]   ;;  %v8397_v23 = vld [vmem:[%s11497_s3 + $0x28] ss:$16 sps:$4 sm:$0xff]  }
  0x1e   : > { %v8363_v63 = vld [vmem:[%s11497_s3 + $0xe4] ss:$16 sps:$4 sm:$0xff]   ;;  %v8361_v0 = vld [vmem:[%s11497_s3 + $0xe0] ss:$16 sps:$4 sm:$0xff]   ;;  %v8405_v24 = vld [vmem:[%s11497_s3 + $0x4c] ss:$16 sps:$4 sm:$0xff]  }
  0x1f   : > { %832 = vmatpush1.bf16.msra.mxu1 %v6991_v27  ;;  %1025 = vmatpush1.bf16.msra.mxu0 %v6993_v28  ;;  %v8366_v1 = vld [vmem:[%s11497_s3 + $0x104] ss:$16 sps:$4 sm:$0xff]   ;;  %v8364_v2 = vld [vmem:[%s11497_s3 + $0x100] ss:$16 sps:$4 sm:$0xff]   ;;  %v8403_v26 = vld [vmem:[%s11497_s3 + $0x48] ss:$16 sps:$4 sm:$0xff]  }
  0x20   : > { %1215 = vmatprep.subr.bf16.mxu1 %v6988_v31  ;;  %3606 = vmatprep.subr.bf16.mxu0 %v8342_v29  ;;  %v8369_v3 = vld [vmem:[%s11497_s3 + $0x124] ss:$16 sps:$4 sm:$0xff]   ;;  %v8367_v4 = vld [vmem:[%s11497_s3 + $0x120] ss:$16 sps:$4 sm:$0xff]   ;;  %v8411_v27 = vld [vmem:[%s11497_s3 + $0x6c] ss:$16 sps:$4 sm:$0xff]  }
  0x21   : > { %6998 = vmatmul.mubr.msk.bf16.gmra.mrb[4].mxu0 %vm587_vm0, %v9058_v30  ;;  %7006 = vmatmul.mubr.msk.bf16.gmra.mrb[4].mxu1 %vm587_vm0, %v9063_v32  ;;  %v8372_v5 = vld [vmem:[%s11497_s3 + $0x144] ss:$16 sps:$4 sm:$0xff]   ;;  %v8370_v7 = vld [vmem:[%s11497_s3 + $0x140] ss:$16 sps:$4 sm:$0xff]   ;;  %v8901_v28 = vld [vmem:[%s9027_s18 + $0x8] sm:$0xff]   ;;  %v9368_v29 = vshrl.u32 %v387_v25, 7 }
  0x22   : > { %688 = vmatprep.mubr.bf16.mxu0 %v11506_v6  ;;  %768 = vmatprep.mubr.bf16.mxu1 %v11506_v6  ;;  %v8375_v9 = vld [vmem:[%s11497_s3 + $0x164] ss:$16 sps:$4 sm:$0xff]   ;;  %v8373_v10 = vld [vmem:[%s11497_s3 + $0x160] ss:$16 sps:$4 sm:$0xff]   ;;  %v8417_v31 = vld [vmem:[%s11497_s3 + $0x8c] ss:$16 sps:$4 sm:$0xff]  }
  0x23   : > { %v8378_v11 = vld [vmem:[%s11497_s3 + $0x184] ss:$16 sps:$4 sm:$0xff]   ;;  %v8376_v12 = vld [vmem:[%s11497_s3 + $0x180] ss:$16 sps:$4 sm:$0xff]   ;;  %11572 = vst [vmem:[#allocation2_spill] sm:$0xff] %v9368_v29 }
  0x24   : > { %v8381_v13 = vld [vmem:[%s11497_s3 + $0x1a4] ss:$16 sps:$4 sm:$0xff]   ;;  %v8379_v14 = vld [vmem:[%s11497_s3 + $0x1a0] ss:$16 sps:$4 sm:$0xff]  }
  0x25   : > { %v8384_v15 = vld [vmem:[%s11497_s3 + $0x1c4] ss:$16 sps:$4 sm:$0xff]   ;;  %v8382_v16 = vld [vmem:[%s11497_s3 + $0x1c0] ss:$16 sps:$4 sm:$0xff]  }
  0x26   : > { %v8387_v17 = vld [vmem:[%s11497_s3 + $0x1e4] ss:$16 sps:$4 sm:$0xff]   ;;  %v8385_v18 = vld [vmem:[%s11497_s3 + $0x1e0] ss:$16 sps:$4 sm:$0xff]  }
  0x27   : > { %v8900_v22 = vld [vmem:[%s9027_s18] sm:$0xff]  }
  0x29   : > { %6999 = vmatmul.mubr.msk.bf16.gmra.mrb[8].mxu0 %vm587_vm0, %v9072_v33  ;;  %7007 = vmatmul.mubr.msk.bf16.gmra.mrb[8].mxu1 %vm587_vm0, %v9075_v34 }
  0x2a   : > { %698 = vmatprep.mubr.bf16.mxu0 %v11506_v6  ;;  %778 = vmatprep.mubr.bf16.mxu1 %v11506_v6 }
  0x31   : > { %7000 = vmatmul.mubr.msk.bf16.gmra.mrb[12].mxu0 %vm587_vm0, %v9084_v35  ;;  %7008 = vmatmul.mubr.msk.bf16.gmra.mrb[12].mxu1 %vm587_vm0, %v9087_v36 }
  0x32   : > { %708 = vmatprep.mubr.bf16.mxu0 %v11506_v6  ;;  %788 = vmatprep.mubr.bf16.mxu1 %v11506_v6 }
  0x39   : > { %7001 = vmatmul.mubr.msk.bf16.gmra.mrb[16].mxu0 %vm587_vm0, %v9096_v37  ;;  %7009 = vmatmul.mubr.msk.bf16.gmra.mrb[16].mxu1 %vm587_vm0, %v9099_v38 }
  0x3a   : > { %718 = vmatprep.mubr.bf16.mxu0 %v11506_v6  ;;  %798 = vmatprep.mubr.bf16.mxu1 %v11506_v6 }
  0x41   : > { %7002 = vmatmul.mubr.msk.bf16.gmra.mrb[20].mxu0 %vm587_vm0, %v9108_v39  ;;  %7010 = vmatmul.mubr.msk.bf16.gmra.mrb[20].mxu1 %vm587_vm0, %v9111_v40 }
  0x42   : > { %728 = vmatprep.mubr.bf16.mxu0 %v11506_v6  ;;  %808 = vmatprep.mubr.bf16.mxu1 %v11506_v6 }
  0x49   : > { %7003 = vmatmul.mubr.msk.bf16.gmra.mrb[24].mxu0 %vm587_vm0, %v9120_v41  ;;  %7011 = vmatmul.mubr.msk.bf16.gmra.mrb[24].mxu1 %vm587_vm0, %v9123_v42 }
  0x4a   : > { %738 = vmatprep.mubr.bf16.mxu0 %v11506_v6  ;;  %818 = vmatprep.mubr.bf16.mxu1 %v11506_v6 }
  0x51   : > { %7004 = vmatmul.mubr.msk.bf16.gmra.mrb[28].mxu0 %vm587_vm0, %v9132_v43  ;;  %7012 = vmatmul.mubr.msk.bf16.gmra.mrb[28].mxu1 %vm587_vm0, %v9135_v44 }
  0x52   : > { %861 = vmatprep.mubr.bf16.mxu1 %v11506_v6  ;;  %1054 = vmatprep.mubr.bf16.mxu0 %v11506_v6 }
  0x59   : > { %7013 = vmatmul.mubr.msk.bf16.vlgmr.msra.gmra.mrb[32].mxu1 %vm587_vm0, %v9033_v19  ;;  %7029 = vmatmul.mubr.msk.bf16.vlgmr.msra.gmra.mrb[32].mxu0 %vm587_vm0, %v9033_v19  ;;  %v8390_v19 = vld [vmem:[%s11497_s3 + $0x204] ss:$16 sps:$4 sm:$0xff]  }
  0x5a   : > { %871 = vmatprep.mubr.bf16.mxu1 %v11506_v6  ;;  %1216 = vmatpush1.bf16.msra.mxu1 %v6987_v48 }
  0x5b   : > { %3607 = vmatpush1.bf16.msra.mxu0 %v8340_v47  ;;  %1064 = vmatprep.mubr.bf16.mxu0 %v11506_v6 }
  0x5c   : > { %3608 = vmatprep.subr.bf16.mxu0 %v8345_v49  ;;  %1217 = vmatprep.subr.bf16.mxu1 %v6996_v50 }
  0x5e   : > { %1218 = vmatpush1.bf16.msra.mxu1 %v6995_v53  ;;  %v8435_v53 = vld [vmem:[%s11497_s3 + $0xec] ss:$16 sps:$4 sm:$0xff]  }
  0x5f   : > { %3609 = vmatpush1.bf16.msra.mxu0 %v8343_v51  ;;  %4378 = vmatprep.subr.bf16.mxu1 %v8393_v8  ;;  %v8433_v8 = vld [vmem:[%s11497_s3 + $0xe8] ss:$16 sps:$4 sm:$0xff]  }
  0x60   : > { %3610 = vmatprep.subr.bf16.mxu0 %v8348_v52  ;;  %v8427_v52 = vld [vmem:[%s11497_s3 + $0xc8] ss:$16 sps:$4 sm:$0xff]  }
  0x61   : > { %7014 = vmatmul.mubr.msk.bf16.gmra.mrb[36].mxu1 %vm587_vm0, %v9058_v30  ;;  %7030 = vmatmul.mubr.msk.bf16.gmra.mrb[36].mxu0 %vm587_vm0, %v9058_v30  ;;  %v8409_v30 = vld [vmem:[%s11497_s3 + $0x68] ss:$16 sps:$4 sm:$0xff]  }
  0x62   : > { %881 = vmatprep.mubr.bf16.mxu1 %v11506_v6  ;;  %1074 = vmatprep.mubr.bf16.mxu0 %v11506_v6 }
  0x63   : > { %3611 = vmatpush1.bf16.msra.mxu0 %v8346_v54 }
  0x64   : > { %3612 = vmatprep.subr.bf16.mxu0 %v8351_v55 }
  0x67   : > { %3613 = vmatpush1.bf16.msra.mxu0 %v8349_v56 }
  0x68   : > { %3614 = vmatprep.subr.bf16.mxu0 %v8354_v57 }
  0x69   : > { %7015 = vmatmul.mubr.msk.bf16.gmra.mrb[40].mxu1 %vm587_vm0, %v9072_v33  ;;  %7031 = vmatmul.mubr.msk.bf16.gmra.mrb[40].mxu0 %vm587_vm0, %v9072_v33  ;;  %v9383_v33 = vld [vmem:[%s11496_s2] sm:$0xff] }
  0x6a   : > { %891 = vmatprep.mubr.bf16.mxu1 %v11506_v6  ;;  %1084 = vmatprep.mubr.bf16.mxu0 %v11506_v6 }
  0x6b   : > { %3615 = vmatpush1.bf16.msra.mxu0 %v8352_v58 }
  0x6c   : > { %3616 = vmatprep.subr.bf16.mxu0 %v8357_v59 }
  0x6f   : > { %3617 = vmatpush1.bf16.msra.mxu0 %v8355_v60 }
  0x70   : > { %3618 = vmatprep.subr.bf16.mxu0 %v8360_v61 }
  0x71   : > { %7016 = vmatmul.mubr.msk.bf16.gmra.mrb[44].mxu1 %vm587_vm0, %v9084_v35  ;;  %7032 = vmatmul.mubr.msk.bf16.gmra.mrb[44].mxu0 %vm587_vm0, %v9084_v35  ;;  %v8415_v35 = vld [vmem:[%s11497_s3 + $0x88] ss:$16 sps:$4 sm:$0xff]  }
  0x72   : > { %901 = vmatprep.mubr.bf16.mxu1 %v11506_v6  ;;  %1094 = vmatprep.mubr.bf16.mxu0 %v11506_v6 }
  0x73   : > { %3619 = vmatpush1.bf16.msra.mxu0 %v8358_v62 }
  0x74   : > { %3620 = vmatprep.subr.bf16.mxu0 %v8363_v63 }
  0x77   : > { %3621 = vmatpush1.bf16.msra.mxu0 %v8361_v0 }
  0x78   : > { %3622 = vmatprep.subr.bf16.mxu0 %v8366_v1  ;;  %v8903_v1 = vld [vmem:[%s9027_s18 + $0x18] sm:$0xff]  }
  0x79   : > { %7017 = vmatmul.mubr.msk.bf16.gmra.mrb[48].mxu1 %vm587_vm0, %v9096_v37  ;;  %7033 = vmatmul.mubr.msk.bf16.gmra.mrb[48].mxu0 %vm587_vm0, %v9096_v37  ;;  %v8902_v37 = vld [vmem:[%s9027_s18 + $0x10] sm:$0xff]  }
  0x7a   : > { %911 = vmatprep.mubr.bf16.mxu1 %v11506_v6  ;;  %1104 = vmatprep.mubr.bf16.mxu0 %v11506_v6 }
  0x7b   : > { %3623 = vmatpush1.bf16.msra.mxu0 %v8364_v2 }
  0x7c   : > { %3624 = vmatprep.subr.bf16.mxu0 %v8369_v3 }
  0x7f   : > { %3625 = vmatpush1.bf16.msra.mxu0 %v8367_v4 }
  0x80   : > { %3626 = vmatprep.subr.bf16.mxu0 %v8372_v5 }
  0x81   : > { %7018 = vmatmul.mubr.msk.bf16.gmra.mrb[52].mxu1 %vm587_vm0, %v9108_v39  ;;  %7034 = vmatmul.mubr.msk.bf16.gmra.mrb[52].mxu0 %vm587_vm0, %v9108_v39 }
  0x82   : > { %921 = vmatprep.mubr.bf16.mxu1 %v11506_v6  ;;  %1114 = vmatprep.mubr.bf16.mxu0 %v11506_v6 }
  0x83   : > { %3627 = vmatpush1.bf16.msra.mxu0 %v8370_v7 }
  0x84   : > { %3628 = vmatprep.subr.bf16.mxu0 %v8375_v9 }
  0x87   : > { %3629 = vmatpush1.bf16.msra.mxu0 %v8373_v10 }
  0x88   : > { %3630 = vmatprep.subr.bf16.mxu0 %v8378_v11 }
  0x89   : > { %7019 = vmatmul.mubr.msk.bf16.gmra.mrb[56].mxu1 %vm587_vm0, %v9120_v41  ;;  %7035 = vmatmul.mubr.msk.bf16.gmra.mrb[56].mxu0 %vm587_vm0, %v9120_v41  ;;  %v8429_v41 = vld [vmem:[%s11497_s3 + $0xcc] ss:$16 sps:$4 sm:$0xff]  }
  0x8a   : > { %931 = vmatprep.mubr.bf16.mxu1 %v11506_v6  ;;  %1124 = vmatprep.mubr.bf16.mxu0 %v11506_v6 }
  0x8b   : > { %3631 = vmatpush1.bf16.msra.mxu0 %v8376_v12  ;;  %v8441_v12 = vld [vmem:[%s11497_s3 + $0x10c] ss:$16 sps:$4 sm:$0xff]  }
  0x8c   : > { %3632 = vmatprep.subr.bf16.mxu0 %v8381_v13 }
  0x8f   : > { %3633 = vmatpush1.bf16.msra.mxu0 %v8379_v14 }
  0x90   : > { %3634 = vmatprep.subr.bf16.mxu0 %v8384_v15 }
  0x91   : > { %7020 = vmatmul.mubr.msk.bf16.gmra.mrb[60].mxu1 %vm587_vm0, %v9132_v43  ;;  %7036 = vmatmul.mubr.msk.bf16.gmra.mrb[60].mxu0 %vm587_vm0, %v9132_v43 }
  0x92   : > { %941 = vmatprep.mubr.bf16.mxu1 %v11506_v6  ;;  %1134 = vmatprep.mubr.bf16.mxu0 %v11506_v6 }
  0x93   : > { %3635 = vmatpush1.bf16.msra.mxu0 %v8382_v16 }
  0x94   : > { %3636 = vmatprep.subr.bf16.mxu0 %v8387_v17 }
  0x97   : > { %3637 = vmatpush1.bf16.msra.mxu0 %v8385_v18 }
  0x98   : > { %3799 = vmatprep.subr.bf16.mxu0 %v8390_v19 }
  0x99   : > { %7021 = vmatmul.mubr.msk.bf16.gmra.mrb[64].mxu1 %vm587_vm0, %v9036_v20  ;;  %7037 = vmatmul.mubr.msk.bf16.gmra.mrb[64].mxu0 %vm587_vm0, %v9036_v20  ;;  %v8391_v20 = vld [vmem:[%s11497_s3 + $0x8] ss:$16 sps:$4 sm:$0xff]  }
  0x9a   : > { %951 = vmatprep.mubr.bf16.mxu1 %v11506_v6  ;;  %1144 = vmatprep.mubr.bf16.mxu0 %v11506_v6 }
  0xa1   : > { %7022 = vmatmul.mubr.msk.bf16.gmra.mrb[68].mxu1 %vm587_vm0, %v9063_v32  ;;  %7038 = vmatmul.mubr.msk.bf16.gmra.mrb[68].mxu0 %vm587_vm0, %v9063_v32  ;;  %v9378_v32 = vsub.s32 0, %v9368_v29 }
  0xa2   : > { %961 = vmatprep.mubr.bf16.mxu1 %v11506_v6  ;;  %1154 = vmatprep.mubr.bf16.mxu0 %v11506_v6 }
  0xa3   : > { %11573 = vst [vmem:[#allocation3_spill] sm:$0xff] %v9378_v32 }
  0xa9   : > { %7023 = vmatmul.mubr.msk.bf16.gmra.mrb[72].mxu1 %vm587_vm0, %v9075_v34  ;;  %7039 = vmatmul.mubr.msk.bf16.gmra.mrb[72].mxu0 %vm587_vm0, %v9075_v34  ;;  %v9386_v34 = vsub.s32 1, %v9368_v29 }
  0xaa   : > { %971 = vmatprep.mubr.bf16.mxu1 %v11506_v6  ;;  %1164 = vmatprep.mubr.bf16.mxu0 %v11506_v6 }
  0xab   : > { %11574 = vst [vmem:[#allocation4_spill] sm:$0xff] %v9386_v34  ;;  %v9402_v39 = vrot.slane %v9383_v33, %v9386_v34 }
  0xb1   : > { %7024 = vmatmul.mubr.msk.bf16.gmra.mrb[76].mxu1 %vm587_vm0, %v9087_v36  ;;  %7040 = vmatmul.mubr.msk.bf16.gmra.mrb[76].mxu0 %vm587_vm0, %v9087_v36  ;;  %v8423_v36 = vld [vmem:[%s11497_s3 + $0xac] ss:$16 sps:$4 sm:$0xff]  }
  0xb2   : > { %981 = vmatprep.mubr.bf16.mxu1 %v11506_v6  ;;  %1174 = vmatprep.mubr.bf16.mxu0 %v11506_v6 }
  0xb9   : > { %7025 = vmatmul.mubr.msk.bf16.gmra.mrb[80].mxu1 %vm587_vm0, %v9099_v38  ;;  %7041 = vmatmul.mubr.msk.bf16.gmra.mrb[80].mxu0 %vm587_vm0, %v9099_v38  ;;  %v9398_v38 = vrot.slane %v9383_v33, %v9378_v32 }
  0xba   : > { %991 = vmatprep.mubr.bf16.mxu1 %v11506_v6  ;;  %1184 = vmatprep.mubr.bf16.mxu0 %v11506_v6 }
  0xc1   : > { %7026 = vmatmul.mubr.msk.bf16.gmra.mrb[84].mxu1 %vm587_vm0, %v9111_v40  ;;  %7042 = vmatmul.mubr.msk.bf16.gmra.mrb[84].mxu0 %vm587_vm0, %v9111_v40  ;;  %v8421_v40 = vld [vmem:[%s11497_s3 + $0xa8] ss:$16 sps:$4 sm:$0xff]  }
  0xc2   : > { %1001 = vmatprep.mubr.bf16.mxu1 %v11506_v6  ;;  %1194 = vmatprep.mubr.bf16.mxu0 %v11506_v6 }
  0xc9   : > { %7027 = vmatmul.mubr.msk.bf16.gmra.mrb[88].mxu1 %vm587_vm0, %v9123_v42  ;;  %7043 = vmatmul.mubr.msk.bf16.gmra.mrb[88].mxu0 %vm587_vm0, %v9123_v42 }
  0xca   : > { %1011 = vmatprep.mubr.bf16.mxu1 %v11506_v6  ;;  %1204 = vmatprep.mubr.bf16.mxu0 %v11506_v6 }
  0xd1   : > { %7028 = vmatmul.mubr.msk.bf16.gmra.mrb[92].mxu1 %vm587_vm0, %v9135_v44  ;;  %7044 = vmatmul.mubr.msk.bf16.gmra.mrb[92].mxu0 %vm587_vm0, %v9135_v44 }
  0xd2   : > { %1247 = vmatprep.mubr.bf16.mxu1 %v11506_v6 }
  0xd9   : > { %7045 = vmatmul.mubr.msk.bf16.vlgmr.msra.gmra.mrb[96].mxu1 %vm587_vm0, %v8900_v22 }
  0xda   : > { %1257 = vmatprep.mubr.bf16.mxu1 %v11506_v6  ;;  %4379 = vmatpush1.bf16.msra.mxu1 %v8391_v20 }
  0xdb   : > { %4380 = vmatprep.subr.bf16.mxu1 %v8399_v21  ;;  %v8388_v21 = vld [vmem:[%s11497_s3 + $0x200] ss:$16 sps:$4 sm:$0xff]  }
  0xde   : > { %4381 = vmatpush1.bf16.msra.mxu1 %v8397_v23 }
  0xdf   : > { %4382 = vmatprep.subr.bf16.mxu1 %v8405_v24 }
  0xe1   : > { %7046 = vmatmul.mubr.msk.bf16.gmra.mrb[100].mxu1 %vm587_vm0, %v8901_v28  ;;  %v8396_v28 = vld [vmem:[%s11497_s3 + $0x224] ss:$16 sps:$4 sm:$0xff]  }
  0xe2   : > { %1267 = vmatprep.mubr.bf16.mxu1 %v11506_v6  ;;  %4383 = vmatpush1.bf16.msra.mxu1 %v8403_v26 }
  0xe3   : > { %4384 = vmatprep.subr.bf16.mxu1 %v8411_v27 }
  0xe6   : > { %4385 = vmatpush1.bf16.msra.mxu1 %v8409_v30 }
  0xe7   : > { %4386 = vmatprep.subr.bf16.mxu1 %v8417_v31 }
  0xe9   : > { %7047 = vmatmul.mubr.msk.bf16.gmra.mrb[104].mxu1 %vm587_vm0, %v8902_v37 }
  0xea   : > { %1277 = vmatprep.mubr.bf16.mxu1 %v11506_v6  ;;  %4387 = vmatpush1.bf16.msra.mxu1 %v8415_v35 }
  0xeb   : > { %4388 = vmatprep.subr.bf16.mxu1 %v8423_v36  ;;  %v8439_v36 = vld [vmem:[%s11497_s3 + $0x108] ss:$16 sps:$4 sm:$0xff]  }
  0xec   : > { %v670_v42 = vpop.f32.mrb[0].mxu0  ;;  %v750_v43 = vpop.f32.mrb[0].mxu1 }
  0xed   : > { %v671_v44 = vadd.f32 %v670_v42, %v9398_v38  ;;  %v672_v45 = vpop.f32.mrb[1].mxu0  ;;  %v751_v46 = vadd.f32 %v750_v43, %v9398_v38  ;;  %v752_v47 = vpop.f32.mrb[1].mxu1 }
  0xee   : > { %v673_v48 = vadd.f32 %v672_v45, %v9402_v39  ;;  %v674_v49 = vpop.f32.mrb[2].mxu0  ;;  %v753_v50 = vadd.f32 %v752_v47, %v9402_v39  ;;  %v754_v51 = vpop.f32.mrb[2].mxu1  ;;  %4389 = vmatpush1.bf16.msra.mxu1 %v8421_v40 }
  0xef   : > { %v1408_v54 = vmul.f32 0.2, %v671_v44  ;;  %v675_v55 = vadd.f32 %v674_v49, %v9398_v38  ;;  %v676_v56 = vpop.f32.mrb[3].mxu0  ;;  %v1536_v57 = vmul.f32 0.2, %v751_v46  ;;  %v755_v58 = vadd.f32 %v754_v51, %v9398_v38  ;;  %v756_v59 = vpop.f32.mrb[3].mxu1  ;;  %4390 = vmatprep.subr.bf16.mxu1 %v8429_v41 }
  0xf0   : > { %v1409_v60 = vmul.f32 0.2, %v673_v48  ;;  %v677_v61 = vadd.f32 %v676_v56, %v9402_v39  ;;  %v1537_v62 = vmul.f32 0.2, %v753_v50  ;;  %v757_v63 = vadd.f32 %v756_v59, %v9402_v39  ;;  %v8444_v49 = vld [vmem:[%s11497_s3 + $0x12c] ss:$16 sps:$4 sm:$0xff]  }
  0xf1   : > { %v1416_v0 = vmul.f32 0.2, %v675_v55  ;;  %7048 = vmatmul.mubr.msk.bf16.gmra.mrb[108].mxu1 %vm587_vm0, %v8903_v1  ;;  %v1792_v2 = vmax.f32 %v751_v46, %v1536_v57  ;;  %v1544_v3 = vmul.f32 0.2, %v755_v58  ;;  %v1664_v9 = vmax.f32 %v671_v44, %v1408_v54  ;;  %v8904_v51 = vld [vmem:[%s9027_s18 + $0x20] sm:$0xff]  }
  0xf2   : > { %v1417_v4 = vmul.f32 0.2, %v677_v61  ;;  %1287 = vmatprep.mubr.bf16.mxu1 %v11506_v6  ;;  %v1793_v5 = vmax.f32 %v753_v50, %v1537_v62  ;;  %v1545_v7 = vmul.f32 0.2, %v757_v63  ;;  %4391 = vmatpush1.bf16.msra.mxu1 %v8427_v52  ;;  %v1665_v13 = vmax.f32 %v673_v48, %v1409_v60  ;;  %v8402_v60 = vld [vmem:[%s11497_s3 + $0x244] ss:$16 sps:$4 sm:$0xff]  }
  0xf3   : > { %v1672_v10 = vmax.f32 %v675_v55, %v1416_v0  ;;  %v1800_v11 = vmax.f32 %v755_v58, %v1544_v3  ;;  %4392 = vmatprep.subr.bf16.mxu1 %v8435_v53  ;;  %v8394_v55 = vld [vmem:[%s11497_s3 + $0x220] ss:$16 sps:$4 sm:$0xff]   ;;  %v8442_v62 = vld [vmem:[%s11497_s3 + $0x128] ss:$16 sps:$4 sm:$0xff]  }
  0xf4   : > { %v1673_v14 = vmax.f32 %v677_v61, %v1417_v4  ;;  %v680_v15 = vpop.f32.mrb[4].mxu0  ;;  %v1801_v16 = vmax.f32 %v757_v63, %v1545_v7  ;;  %v760_v17 = vpop.f32.mrb[4].mxu1  ;;  %v8450_v4 = vld [vmem:[%s11497_s3 + $0x14c] ss:$16 sps:$4 sm:$0xff]  }
  0xf5   : > { %v9434_v18 = vpack.c.bf16 %v1672_v10, %v1664_v9  ;;  %v681_v19 = vadd.f32 %v680_v15, %v9398_v38  ;;  %v682_v20 = vpop.f32.mrb[5].mxu0  ;;  %v761_v22 = vadd.f32 %v760_v17, %v9398_v38  ;;  %v762_v23 = vpop.f32.mrb[5].mxu1  ;;  %v9441_v24 = vpack.c.bf16 %v1800_v11, %v1792_v2  ;;  %v8400_v9 = vld [vmem:[%s11497_s3 + $0x240] ss:$16 sps:$4 sm:$0xff]  }
  0xf6   : > { %v683_v25 = vadd.f32 %v682_v20, %v9402_v39  ;;  %v684_v26 = vpop.f32.mrb[6].mxu0  ;;  %v9444_v27 = vpack.c.bf16 %v1673_v14, %v1665_v13  ;;  %v763_v30 = vadd.f32 %v762_v23, %v9402_v39  ;;  %v764_v31 = vpop.f32.mrb[6].mxu1  ;;  %4393 = vmatpush1.bf16.msra.mxu1 %v8433_v8  ;;  %v9450_v35 = vpack.c.bf16 %v1801_v16, %v1793_v5  ;;  %v8408_v16 = vld [vmem:[%s11497_s3 + $0x264] ss:$16 sps:$4 sm:$0xff]  }
  0xf7   : > { %11575 = vst [vmem:[#allocation5_spill] sm:$0xff] %v9441_v24  ;;  %v1424_v37 = vmul.f32 0.2, %v681_v19  ;;  %v685_v40 = vadd.f32 %v684_v26, %v9398_v38  ;;  %v686_v41 = vpop.f32.mrb[7].mxu0  ;;  %v1552_v42 = vmul.f32 0.2, %v761_v22  ;;  %v765_v43 = vadd.f32 %v764_v31, %v9398_v38  ;;  %4394 = vmatprep.subr.bf16.mxu1 %v8441_v12 }
  0xf8   : > { %11576 = vst [vmem:[#allocation6_spill] sm:$0xff] %v9450_v35  ;;  %v766_v44 = vpop.f32.mrb[7].mxu1  ;;  %v1425_v45 = vmul.f32 0.2, %v683_v25  ;;  %v687_v46 = vadd.f32 %v686_v41, %v9402_v39  ;;  %3638 = vmatprep.mubr.bf16.mxu0 %v9444_v27  ;;  %v1553_v47 = vmul.f32 0.2, %v763_v30 }
  0xf9   : > { %v767_v48 = vadd.f32 %v766_v44, %v9402_v39  ;;  %v1432_v50 = vmul.f32 0.2, %v685_v40  ;;  %7049 = vmatmul.mubr.msk.bf16.gmra.mrb[112].mxu1 %vm587_vm0, %v8904_v51  ;;  %3639 = vmatmul.mubr.bf16.vlgmr.msra.gmra.mrb[96].mxu0 %v9434_v18  ;;  %v1808_v52 = vmax.f32 %v761_v22, %v1552_v42  ;;  %v1560_v53 = vmul.f32 0.2, %v765_v43  ;;  %v8453_v41 = vld [vmem:[%s11497_s3 + $0x16c] ss:$16 sps:$4 sm:$0xff]  }
  0xfa   : > { %v1433_v54 = vmul.f32 0.2, %v687_v46  ;;  %3800 = vmatpush1.bf16.msra.mxu0 %v8388_v21  ;;  %1297 = vmatprep.mubr.bf16.mxu1 %v11506_v6  ;;  %v1809_v56 = vmax.f32 %v763_v30, %v1553_v47  ;;  %v1680_v58 = vmax.f32 %v681_v19, %v1424_v37  ;;  %v1681_v63 = vmax.f32 %v683_v25, %v1425_v45  ;;  %v8448_v21 = vld [vmem:[%s11497_s3 + $0x148] ss:$16 sps:$4 sm:$0xff]   ;;  %v8406_v47 = vld [vmem:[%s11497_s3 + $0x260] ss:$16 sps:$4 sm:$0xff]  }
  0xfb   : > { %v1561_v57 = vmul.f32 0.2, %v767_v48  ;;  %v1688_v59 = vmax.f32 %v685_v40, %v1432_v50  ;;  %3801 = vmatprep.subr.bf16.mxu0 %v8396_v28  ;;  %v1816_v61 = vmax.f32 %v765_v43, %v1560_v53  ;;  %4395 = vmatpush1.bf16.msra.mxu1 %v8439_v36  ;;  %v8905_v43 = vld [vmem:[%s9027_s18 + $0x28] sm:$0xff]  }
  0xfc   : > { %v1689_v0 = vmax.f32 %v687_v46, %v1433_v54  ;;  %v690_v1 = vpop.f32.mrb[8].mxu0  ;;  %v770_v3 = vpop.f32.mrb[8].mxu1  ;;  %4396 = vmatprep.subr.bf16.mxu1 %v8444_v49  ;;  %v8451_v54 = vld [vmem:[%s11497_s3 + $0x168] ss:$16 sps:$4 sm:$0xff]  }
  0xfd   : > { %v1817_v2 = vmax.f32 %v767_v48, %v1561_v57  ;;  %v691_v5 = vadd.f32 %v690_v1, %v9398_v38  ;;  %v692_v7 = vpop.f32.mrb[9].mxu0  ;;  %v9480_v8 = vpack.c.bf16 %v1688_v59, %v1680_v58  ;;  %v771_v10 = vadd.f32 %v770_v3, %v9398_v38  ;;  %v772_v11 = vpop.f32.mrb[9].mxu1 }
  0xfe   : > { %v9486_v12 = vpack.c.bf16 %v1816_v61, %v1808_v52  ;;  %v693_v13 = vadd.f32 %v692_v7, %v9402_v39  ;;  %v694_v14 = vpop.f32.mrb[10].mxu0  ;;  %v9489_v15 = vpack.c.bf16 %v1689_v0, %v1681_v63  ;;  %3802 = vmatpush1.bf16.msra.mxu0 %v8394_v55  ;;  %v773_v17 = vadd.f32 %v772_v11, %v9402_v39  ;;  %v774_v19 = vpop.f32.mrb[10].mxu1  ;;  %v8414_v52 = vld [vmem:[%s11497_s3 + $0x284] ss:$16 sps:$4 sm:$0xff]   ;;  %v8412_v0 = vld [vmem:[%s11497_s3 + $0x280] ss:$16 sps:$4 sm:$0xff]  }
  0xff   : > { %v9495_v20 = vpack.c.bf16 %v1817_v2, %v1809_v56  ;;  %v1440_v22 = vmul.f32 0.2, %v691_v5  ;;  %v695_v23 = vadd.f32 %v694_v14, %v9398_v38  ;;  %v696_v25 = vpop.f32.mrb[11].mxu0  ;;  %3803 = vmatprep.subr.bf16.mxu0 %v8402_v60  ;;  %v1568_v26 = vmul.f32 0.2, %v771_v10  ;;  %v776_v30 = vpop.f32.mrb[11].mxu1  ;;  %4397 = vmatpush1.bf16.msra.mxu1 %v8442_v62 }
 0x100   : > { %11577 = vst [vmem:[#allocation7_spill] sm:$0xff] %v9486_v12  ;;  %v775_v28 = vadd.f32 %v774_v19, %v9398_v38  ;;  %v1441_v31 = vmul.f32 0.2, %v693_v13  ;;  %v697_v36 = vadd.f32 %v696_v25, %v9402_v39  ;;  %3648 = vmatprep.mubr.bf16.mxu0 %v9489_v15  ;;  %v1569_v37 = vmul.f32 0.2, %v773_v17  ;;  %4398 = vmatprep.subr.bf16.mxu1 %v8450_v4 }
 0x101   : > { %11578 = vst [vmem:[#allocation8_spill] sm:$0xff] %v9495_v20  ;;  %v777_v40 = vadd.f32 %v776_v30, %v9402_v39  ;;  %v1448_v42 = vmul.f32 0.2, %v695_v23  ;;  %7050 = vmatmul.mubr.msk.bf16.gmra.mrb[116].mxu1 %vm587_vm0, %v8905_v43  ;;  %3649 = vmatmul.mubr.bf16.gmra.mrb[100].mxu0 %v9480_v8  ;;  %v1824_v44 = vmax.f32 %v771_v10, %v1568_v26  ;;  %v8459_v60 = vld [vmem:[%s11497_s3 + $0x18c] ss:$16 sps:$4 sm:$0xff]  }
 0x102   : > { %v1576_v45 = vmul.f32 0.2, %v775_v28  ;;  %v1449_v46 = vmul.f32 0.2, %v697_v36  ;;  %1307 = vmatprep.mubr.bf16.mxu1 %v11506_v6  ;;  %3804 = vmatpush1.bf16.msra.mxu0 %v8400_v9  ;;  %v1825_v48 = vmax.f32 %v773_v17, %v1569_v37  ;;  %v1696_v50 = vmax.f32 %v691_v5, %v1440_v22  ;;  %v8420_v10 = vld [vmem:[%s11497_s3 + $0x2a4] ss:$16 sps:$4 sm:$0xff]  }
 0x103   : > { %v1577_v49 = vmul.f32 0.2, %v777_v40  ;;  %v1704_v51 = vmax.f32 %v695_v23, %v1448_v42  ;;  %3805 = vmatprep.subr.bf16.mxu0 %v8408_v16  ;;  %4399 = vmatpush1.bf16.msra.mxu1 %v8448_v21  ;;  %v1697_v55 = vmax.f32 %v693_v13, %v1441_v31  ;;  %v8457_v14 = vld [vmem:[%s11497_s3 + $0x188] ss:$16 sps:$4 sm:$0xff]   ;;  %v8462_v31 = vld [vmem:[%s11497_s3 + $0x1ac] ss:$16 sps:$4 sm:$0xff]  }
 0x104   : > { %v1832_v53 = vmax.f32 %v775_v28, %v1576_v45  ;;  %v1705_v56 = vmax.f32 %v697_v36, %v1449_v46  ;;  %v700_v57 = vpop.f32.mrb[12].mxu0  ;;  %v780_v59 = vpop.f32.mrb[12].mxu1  ;;  %4400 = vmatprep.subr.bf16.mxu1 %v8453_v41  ;;  %v8906_v37 = vld [vmem:[%s9027_s18 + $0x30] sm:$0xff]  }
 0x105   : > { %v1833_v58 = vmax.f32 %v777_v40, %v1577_v49  ;;  %v701_v61 = vadd.f32 %v700_v57, %v9398_v38  ;;  %v702_v62 = vpop.f32.mrb[13].mxu0  ;;  %v9525_v63 = vpack.c.bf16 %v1704_v51, %v1696_v50  ;;  %v781_v1 = vadd.f32 %v780_v59, %v9398_v38  ;;  %v782_v2 = vpop.f32.mrb[13].mxu1  ;;  %v8426_v49 = vld [vmem:[%s11497_s3 + $0x2c4] ss:$16 sps:$4 sm:$0xff]   ;;  %v8460_v50 = vld [vmem:[%s11497_s3 + $0x1a8] ss:$16 sps:$4 sm:$0xff]  }
 0x106   : > { %v9531_v3 = vpack.c.bf16 %v1832_v53, %v1824_v44  ;;  %v703_v4 = vadd.f32 %v702_v62, %v9402_v39  ;;  %v704_v5 = vpop.f32.mrb[14].mxu0  ;;  %v9534_v7 = vpack.c.bf16 %v1705_v56, %v1697_v55  ;;  %3806 = vmatpush1.bf16.msra.mxu0 %v8406_v47  ;;  %v783_v9 = vadd.f32 %v782_v2, %v9402_v39  ;;  %v784_v11 = vpop.f32.mrb[14].mxu1  ;;  %v8418_v44 = vld [vmem:[%s11497_s3 + $0x2a0] ss:$16 sps:$4 sm:$0xff]   ;;  %v8468_v56 = vld [vmem:[%s11497_s3 + $0x1cc] ss:$16 sps:$4 sm:$0xff]  }
 0x107   : > { %v9540_v13 = vpack.c.bf16 %v1833_v58, %v1825_v48  ;;  %v1456_v16 = vmul.f32 0.2, %v701_v61  ;;  %v705_v17 = vadd.f32 %v704_v5, %v9398_v38  ;;  %v706_v19 = vpop.f32.mrb[15].mxu0  ;;  %3807 = vmatprep.subr.bf16.mxu0 %v8414_v52  ;;  %v1584_v21 = vmul.f32 0.2, %v781_v1  ;;  %v786_v23 = vpop.f32.mrb[15].mxu1  ;;  %4401 = vmatpush1.bf16.msra.mxu1 %v8451_v54 }
 0x108   : > { %11579 = vst [vmem:[#allocation9_spill] sm:$0xff] %v9531_v3  ;;  %v785_v22 = vadd.f32 %v784_v11, %v9398_v38  ;;  %v1457_v25 = vmul.f32 0.2, %v703_v4  ;;  %v707_v26 = vadd.f32 %v706_v19, %v9402_v39  ;;  %3658 = vmatprep.mubr.bf16.mxu0 %v9534_v7  ;;  %v1585_v28 = vmul.f32 0.2, %v783_v9  ;;  %4402 = vmatprep.subr.bf16.mxu1 %v8459_v60 }
 0x109   : > { %11580 = vst [vmem:[#allocation10_spill] sm:$0xff] %v9540_v13  ;;  %v787_v30 = vadd.f32 %v786_v23, %v9402_v39  ;;  %v1464_v36 = vmul.f32 0.2, %v705_v17  ;;  %7051 = vmatmul.mubr.msk.bf16.gmra.mrb[120].mxu1 %vm587_vm0, %v8906_v37  ;;  %3659 = vmatmul.mubr.bf16.gmra.mrb[104].mxu0 %v9525_v63  ;;  %v1840_v40 = vmax.f32 %v781_v1, %v1584_v21  ;;  %v8424_v62 = vld [vmem:[%s11497_s3 + $0x2c0] ss:$16 sps:$4 sm:$0xff]   ;;  %v8907_v37 = vld [vmem:[%s9027_s18 + $0x38] sm:$0xff]  }
 0x10a   : > { %v1592_v41 = vmul.f32 0.2, %v785_v22  ;;  %v1465_v42 = vmul.f32 0.2, %v707_v26  ;;  %1317 = vmatprep.mubr.bf16.mxu1 %v11506_v6  ;;  %3808 = vmatpush1.bf16.msra.mxu0 %v8412_v0  ;;  %v1841_v43 = vmax.f32 %v783_v9, %v1585_v28  ;;  %v1712_v46 = vmax.f32 %v701_v61, %v1456_v16 }
 0x10b   : > { %v1593_v45 = vmul.f32 0.2, %v787_v30  ;;  %v1720_v47 = vmax.f32 %v705_v17, %v1464_v36  ;;  %3809 = vmatprep.subr.bf16.mxu0 %v8420_v10  ;;  %4403 = vmatpush1.bf16.msra.mxu1 %v8457_v14  ;;  %v1713_v51 = vmax.f32 %v703_v4, %v1457_v25  ;;  %v8432_v10 = vld [vmem:[%s11497_s3 + $0x2e4] ss:$16 sps:$4 sm:$0xff]   ;;  %v8466_v14 = vld [vmem:[%s11497_s3 + $0x1c8] ss:$16 sps:$4 sm:$0xff]  }
 0x10c   : > { %v1848_v48 = vmax.f32 %v785_v22, %v1592_v41  ;;  %v1721_v52 = vmax.f32 %v707_v26, %v1465_v42  ;;  %v710_v53 = vpop.f32.mrb[16].mxu0  ;;  %v790_v55 = vpop.f32.mrb[16].mxu1  ;;  %4404 = vmatprep.subr.bf16.mxu1 %v8462_v31  ;;  %v8471_v31 = vld [vmem:[%s11497_s3 + $0x1ec] ss:$16 sps:$4 sm:$0xff]  }
 0x10d   : > { %v1849_v54 = vmax.f32 %v787_v30, %v1593_v45  ;;  %v711_v57 = vadd.f32 %v710_v53, %v9398_v38  ;;  %v712_v58 = vpop.f32.mrb[17].mxu0  ;;  %v9570_v59 = vpack.c.bf16 %v1720_v47, %v1712_v46  ;;  %v791_v60 = vadd.f32 %v790_v55, %v9398_v38  ;;  %v792_v61 = vpop.f32.mrb[17].mxu1  ;;  %v8430_v45 = vld [vmem:[%s11497_s3 + $0x2e0] ss:$16 sps:$4 sm:$0xff]  }
 0x10e   : > { %v9576_v0 = vpack.c.bf16 %v1848_v48, %v1840_v40  ;;  %v713_v1 = vadd.f32 %v712_v58, %v9402_v39  ;;  %v714_v2 = vpop.f32.mrb[18].mxu0  ;;  %v9579_v4 = vpack.c.bf16 %v1721_v52, %v1713_v51  ;;  %3810 = vmatpush1.bf16.msra.mxu0 %v8418_v44  ;;  %v793_v5 = vadd.f32 %v792_v61, %v9402_v39  ;;  %v794_v9 = vpop.f32.mrb[18].mxu1 }
 0x10f   : > { %v9585_v11 = vpack.c.bf16 %v1849_v54, %v1841_v43  ;;  %v1472_v16 = vmul.f32 0.2, %v711_v57  ;;  %v715_v17 = vadd.f32 %v714_v2, %v9398_v38  ;;  %v716_v19 = vpop.f32.mrb[19].mxu0  ;;  %v1600_v21 = vmul.f32 0.2, %v791_v60  ;;  %3811 = vmatprep.subr.bf16.mxu0 %v8426_v49  ;;  %v796_v23 = vpop.f32.mrb[19].mxu1  ;;  %4405 = vmatpush1.bf16.msra.mxu1 %v8460_v50 }
 0x110   : > { %v795_v22 = vadd.f32 %v794_v9, %v9398_v38  ;;  %v1473_v25 = vmul.f32 0.2, %v713_v1  ;;  %v717_v26 = vadd.f32 %v716_v19, %v9402_v39  ;;  %3668 = vmatprep.mubr.bf16.mxu0 %v9579_v4  ;;  %v1601_v28 = vmul.f32 0.2, %v793_v5  ;;  %4406 = vmatprep.subr.bf16.mxu1 %v8468_v56  ;;  %v8438_v49 = vld [vmem:[%s11497_s3 + $0x304] ss:$16 sps:$4 sm:$0xff]  }
 0x111   : > { %11581 = vst [vmem:[#allocation11_spill] sm:$0xff] %v9585_v11  ;;  %v797_v30 = vadd.f32 %v796_v23, %v9402_v39  ;;  %v1480_v36 = vmul.f32 0.2, %v715_v17  ;;  %7052 = vmatmul.mubr.msk.bf16.gmra.mrb[124].mxu1 %vm587_vm0, %v8907_v37  ;;  %3669 = vmatmul.mubr.bf16.gmra.mrb[108].mxu0 %v9570_v59  ;;  %v1856_v40 = vmax.f32 %v791_v60, %v1600_v21  ;;  %v8469_v50 = vld [vmem:[%s11497_s3 + $0x1e8] ss:$16 sps:$4 sm:$0xff]  }
 0x112   : > { %v1608_v41 = vmul.f32 0.2, %v795_v22  ;;  %v1481_v42 = vmul.f32 0.2, %v717_v26  ;;  %1327 = vmatprep.mubr.bf16.mxu1 %v11506_v6  ;;  %v1857_v43 = vmax.f32 %v793_v5, %v1601_v28  ;;  %3812 = vmatpush1.bf16.msra.mxu0 %v8424_v62  ;;  %v1728_v46 = vmax.f32 %v711_v57, %v1472_v16  ;;  %v8489_v56 = vld [vmem:[%s11497_s3 + $0x20c] ss:$16 sps:$4 sm:$0xff]  }
 0x113   : > { %v1609_v44 = vmul.f32 0.2, %v797_v30  ;;  %v1736_v47 = vmax.f32 %v715_v17, %v1480_v36  ;;  %3813 = vmatprep.subr.bf16.mxu0 %v8432_v10  ;;  %4407 = vmatpush1.bf16.msra.mxu1 %v8466_v14  ;;  %v1729_v51 = vmax.f32 %v713_v1, %v1473_v25  ;;  %v8436_v16 = vld [vmem:[%s11497_s3 + $0x300] ss:$16 sps:$4 sm:$0xff]   ;;  %v8447_v17 = vld [vmem:[%s11497_s3 + $0x324] ss:$16 sps:$4 sm:$0xff]  }
 0x114   : > { %v1864_v48 = vmax.f32 %v795_v22, %v1608_v41  ;;  %v1737_v52 = vmax.f32 %v717_v26, %v1481_v42  ;;  %v720_v53 = vpop.f32.mrb[20].mxu0  ;;  %v800_v55 = vpop.f32.mrb[20].mxu1  ;;  %4408 = vmatprep.subr.bf16.mxu1 %v8471_v31  ;;  %v8908_v41 = vld [vmem:[%s9027_s18 + $0x40] sm:$0xff]  }
 0x115   : > { %v1865_v54 = vmax.f32 %v797_v30, %v1609_v44  ;;  %v721_v57 = vadd.f32 %v720_v53, %v9398_v38  ;;  %v722_v58 = vpop.f32.mrb[21].mxu0  ;;  %v9615_v60 = vpack.c.bf16 %v1736_v47, %v1728_v46  ;;  %v801_v61 = vadd.f32 %v800_v55, %v9398_v38  ;;  %v802_v62 = vpop.f32.mrb[21].mxu1  ;;  %v8445_v44 = vld [vmem:[%s11497_s3 + $0x320] ss:$16 sps:$4 sm:$0xff]   ;;  %v8456_v53 = vld [vmem:[%s11497_s3 + $0x344] ss:$16 sps:$4 sm:$0xff]  }
 0x116   : > { %v9618_v2 = vpack.c.bf16 %v1864_v48, %v1856_v40  ;;  %v723_v1 = vadd.f32 %v722_v58, %v9402_v39  ;;  %v724_v5 = vpop.f32.mrb[22].mxu0  ;;  %v9621_v9 = vpack.c.bf16 %v1737_v52, %v1729_v51  ;;  %v803_v10 = vadd.f32 %v802_v62, %v9402_v39  ;;  %v804_v14 = vpop.f32.mrb[22].mxu1  ;;  %3814 = vmatpush1.bf16.msra.mxu0 %v8430_v45 }
 0x117   : > { %v9630_v19 = vpack.c.bf16 %v1865_v54, %v1857_v43  ;;  %v1488_v21 = vmul.f32 0.2, %v721_v57  ;;  %v725_v22 = vadd.f32 %v724_v5, %v9398_v38  ;;  %v726_v23 = vpop.f32.mrb[23].mxu0  ;;  %v1616_v25 = vmul.f32 0.2, %v801_v61  ;;  %v806_v28 = vpop.f32.mrb[23].mxu1  ;;  %3815 = vmatprep.subr.bf16.mxu0 %v8438_v49  ;;  %4409 = vmatpush1.bf16.msra.mxu1 %v8469_v50 }
 0x118   : > { %v805_v26 = vadd.f32 %v804_v14, %v9398_v38  ;;  %v1489_v30 = vmul.f32 0.2, %v723_v1  ;;  %v727_v31 = vadd.f32 %v726_v23, %v9402_v39  ;;  %3678 = vmatprep.mubr.bf16.mxu0 %v9621_v9  ;;  %v1617_v36 = vmul.f32 0.2, %v803_v10  ;;  %4571 = vmatprep.subr.bf16.mxu1 %v8489_v56 }
 0x119   : > { %v807_v37 = vadd.f32 %v806_v28, %v9402_v39  ;;  %v1496_v40 = vmul.f32 0.2, %v725_v22  ;;  %7053 = vmatmul.mubr.msk.bf16.gmra.mrb[128].mxu1 %vm587_vm0, %v8908_v41  ;;  %3679 = vmatmul.mubr.bf16.gmra.mrb[112].mxu0 %v9615_v60  ;;  %v1872_v42 = vmax.f32 %v801_v61, %v1616_v25  ;;  %v11505_v48 = vsub.s32 2, %v9368_v29  ;;  %v8465_v28 = vld [vmem:[%s11497_s3 + $0x364] ss:$16 sps:$4 sm:$0xff]  }
 0x11a   : > { %v1624_v43 = vmul.f32 0.2, %v805_v26  ;;  %v1497_v45 = vmul.f32 0.2, %v727_v31  ;;  %1337 = vmatprep.mubr.bf16.mxu1 %v11506_v6  ;;  %v1873_v46 = vmax.f32 %v803_v10, %v1617_v36  ;;  %3816 = vmatpush1.bf16.msra.mxu0 %v8436_v16  ;;  %v1744_v49 = vmax.f32 %v721_v57, %v1488_v21 }
 0x11b   : > { %v1625_v47 = vmul.f32 0.2, %v807_v37  ;;  %v1752_v50 = vmax.f32 %v725_v22, %v1496_v40  ;;  %3817 = vmatprep.subr.bf16.mxu0 %v8447_v17  ;;  %v405_v52 = vsub.s32 4, %v9368_v29  ;;  %v1745_v54 = vmax.f32 %v723_v1, %v1489_v30 }
 0x11c   : > { %v1880_v51 = vmax.f32 %v805_v26, %v1624_v43  ;;  %v1753_v55 = vmax.f32 %v727_v31, %v1497_v45  ;;  %v730_v56 = vpop.f32.mrb[24].mxu0  ;;  %v810_v61 = vpop.f32.mrb[24].mxu1  ;;  %v11504_v62 = vsub.s32 3, %v9368_v29  ;;  %v8454_v26 = vld [vmem:[%s11497_s3 + $0x340] ss:$16 sps:$4 sm:$0xff]  }
 0x11d   : > { %v1881_v58 = vmax.f32 %v807_v37, %v1625_v47  ;;  %v731_v5 = vadd.f32 %v730_v56, %v9398_v38  ;;  %v732_v10 = vpop.f32.mrb[25].mxu0  ;;  %v9651_v57 = vpack.c.bf16 %v1752_v50, %v1744_v49  ;;  %v811_v14 = vadd.f32 %v810_v61, %v9398_v38  ;;  %v812_v16 = vpop.f32.mrb[25].mxu1 }
 0x11e   : > { %v9654_v17 = vpack.c.bf16 %v1880_v51, %v1872_v42  ;;  %v733_v21 = vadd.f32 %v732_v10, %v9402_v39  ;;  %v734_v22 = vpop.f32.mrb[26].mxu0  ;;  %v9657_v1 = vpack.c.bf16 %v1753_v55, %v1745_v54  ;;  %v813_v23 = vadd.f32 %v812_v16, %v9402_v39  ;;  %v814_v25 = vpop.f32.mrb[26].mxu1  ;;  %3818 = vmatpush1.bf16.msra.mxu0 %v8445_v44 }
 0x11f   : > { %v9666_v30 = vpack.c.bf16 %v1881_v58, %v1873_v46  ;;  %v1504_v31 = vmul.f32 0.2, %v731_v5  ;;  %v735_v36 = vadd.f32 %v734_v22, %v9398_v38  ;;  %v736_v37 = vpop.f32.mrb[27].mxu0  ;;  %v1632_v40 = vmul.f32 0.2, %v811_v14  ;;  %v816_v42 = vpop.f32.mrb[27].mxu1  ;;  %3819 = vmatprep.subr.bf16.mxu0 %v8456_v53 }
 0x120   : > { %v815_v41 = vadd.f32 %v814_v25, %v9398_v38  ;;  %v1505_v43 = vmul.f32 0.2, %v733_v21  ;;  %v737_v44 = vadd.f32 %v736_v37, %v9402_v39  ;;  %3688 = vmatprep.mubr.bf16.mxu0 %v9657_v1  ;;  %v1633_v45 = vmul.f32 0.2, %v813_v23  ;;  %v8909_v46 = vld [vmem:[%s9027_s18 + $0x48] sm:$0xff]  }
 0x121   : > { %v817_v47 = vadd.f32 %v816_v42, %v9402_v39  ;;  %v1512_v49 = vmul.f32 0.2, %v735_v36  ;;  %7054 = vmatmul.mubr.msk.bf16.gmra.mrb[132].mxu1 %vm587_vm0, %v8909_v46  ;;  %3689 = vmatmul.mubr.bf16.gmra.mrb[116].mxu0 %v9651_v57  ;;  %v1888_v50 = vmax.f32 %v811_v14, %v1632_v40  ;;  %v409_v54 = vsub.s32 5, %v9368_v29  ;;  %v8463_v58 = vld [vmem:[%s11497_s3 + $0x360] ss:$16 sps:$4 sm:$0xff]  }
 0x122   : > { %v1640_v51 = vmul.f32 0.2, %v815_v41  ;;  %v1513_v55 = vmul.f32 0.2, %v737_v44  ;;  %1347 = vmatprep.mubr.bf16.mxu1 %v11506_v6  ;;  %v1889_v53 = vmax.f32 %v813_v23, %v1633_v45  ;;  %3820 = vmatpush1.bf16.msra.mxu0 %v8454_v26  ;;  %v1760_v61 = vmax.f32 %v731_v5, %v1504_v31  ;;  %v8474_v22 = vld [vmem:[%s11497_s3 + $0x384] ss:$16 sps:$4 sm:$0xff]  }
 0x123   : > { %v1641_v56 = vmul.f32 0.2, %v817_v47  ;;  %v1768_v10 = vmax.f32 %v735_v36, %v1512_v49  ;;  %v9684_v14 = vrot.slane %v9383_v33, %v11505_v48  ;;  %3821 = vmatprep.subr.bf16.mxu0 %v8465_v28  ;;  %v1761_v23 = vmax.f32 %v733_v21, %v1505_v43  ;;  %v8477_v46 = vld [vmem:[%s11497_s3 + $0x3a4] ss:$16 sps:$4 sm:$0xff]  }
 0x124   : > { %v1896_v16 = vmax.f32 %v815_v41, %v1640_v51  ;;  %v1769_v25 = vmax.f32 %v737_v44, %v1513_v55  ;;  %v740_v26 = vpop.f32.mrb[28].mxu0  ;;  %v820_v40 = vpop.f32.mrb[28].mxu1  ;;  %v9690_v42 = vrot.slane %v9383_v33, %v405_v52  ;;  %v8472_v52 = vld [vmem:[%s11497_s3 + $0x380] ss:$16 sps:$4 sm:$0xff]  }
 0x125   : > { %v1897_v37 = vmax.f32 %v817_v47, %v1641_v56  ;;  %v741_v5 = vadd.f32 %v740_v26, %v9398_v38  ;;  %v742_v31 = vpop.f32.mrb[29].mxu0  ;;  %v9693_v36 = vpack.c.bf16 %v1768_v10, %v1760_v61  ;;  %v821_v41 = vadd.f32 %v820_v40, %v9398_v38  ;;  %v822_v28 = vpop.f32.mrb[29].mxu1 }
 0x126   : > { %v9696_v45 = vpack.c.bf16 %v1896_v16, %v1888_v50  ;;  %v743_v49 = vadd.f32 %v742_v31, %v9402_v39  ;;  %v744_v21 = vpop.f32.mrb[30].mxu0  ;;  %v9699_v43 = vpack.c.bf16 %v1769_v25, %v1761_v23  ;;  %v823_v44 = vadd.f32 %v822_v28, %v9402_v39  ;;  %v824_v47 = vpop.f32.mrb[30].mxu1  ;;  %3822 = vmatpush1.bf16.msra.mxu0 %v8463_v58 }
 0x127   : > { %11582 = vst [vmem:[#allocation12_spill] sm:$0xff] %v9693_v36  ;;  %v9708_v50 = vpack.c.bf16 %v1897_v37, %v1889_v53  ;;  %v1520_v51 = vmul.f32 0.2, %v741_v5  ;;  %v745_v55 = vadd.f32 %v744_v21, %v9398_v38  ;;  %v746_v56 = vpop.f32.mrb[31].mxu0  ;;  %v1648_v61 = vmul.f32 0.2, %v821_v41  ;;  %3823 = vmatprep.subr.bf16.mxu0 %v8474_v22 }
 0x128   : > { %v825_v10 = vadd.f32 %v824_v47, %v9398_v38  ;;  %v826_v16 = vpop.f32.mrb[31].mxu1  ;;  %v1521_v58 = vmul.f32 0.2, %v743_v49  ;;  %v747_v23 = vadd.f32 %v746_v56, %v9402_v39  ;;  %3698 = vmatprep.mubr.bf16.mxu0 %v9699_v43  ;;  %v1649_v25 = vmul.f32 0.2, %v823_v44  ;;  %v8910_v53 = vld [vmem:[%s9027_s18 + $0x50] sm:$0xff]  }
 0x129   : > { %v827_v26 = vadd.f32 %v826_v16, %v9402_v39  ;;  %v1528_v40 = vmul.f32 0.2, %v745_v55  ;;  %7055 = vmatmul.mubr.msk.bf16.gmra.mrb[136].mxu1 %vm587_vm0, %v8910_v53  ;;  %3699 = vmatmul.mubr.bf16.gmra.mrb[120].mxu0 %v9693_v36  ;;  %v1904_v37 = vmax.f32 %v821_v41, %v1648_v61  ;;  %v9721_v38 = vrot.slane %v9383_v33, %v11504_v62  ;;  %v8475_v47 = vld [vmem:[%s11497_s3 + $0x3a0] ss:$16 sps:$4 sm:$0xff]   ;;  %v8480_v16 = vld [vmem:[%s11497_s3 + $0x3c4] ss:$16 sps:$4 sm:$0xff]  }
 0x12a   : > { %v1656_v31 = vmul.f32 0.2, %v825_v10  ;;  %v1529_v22 = vmul.f32 0.2, %v747_v23  ;;  %1357 = vmatprep.mubr.bf16.mxu1 %v11506_v6  ;;  %v1905_v28 = vmax.f32 %v823_v44, %v1649_v25  ;;  %v9725_v39 = vrot.slane %v9383_v33, %v409_v54  ;;  %3824 = vmatpush1.bf16.msra.mxu0 %v8472_v52 }
 0x12b   : > { %v1657_v21 = vmul.f32 0.2, %v827_v26  ;;  %v1776_v41 = vmax.f32 %v741_v5, %v1520_v51  ;;  %v1784_v56 = vmax.f32 %v745_v55, %v1528_v40  ;;  %3825 = vmatprep.subr.bf16.mxu0 %v8477_v46  ;;  %v1777_v53 = vmax.f32 %v743_v49, %v1521_v58 }
 0x12c   : > { %v1912_v61 = vmax.f32 %v825_v10, %v1656_v31  ;;  %v1785_v62 = vmax.f32 %v747_v23, %v1529_v22  ;;  %v863_v25 = vpop.f32.mrb[32].mxu1  ;;  %v1056_v48 = vpop.f32.mrb[32].mxu0  ;;  %v8478_v23 = vld [vmem:[%s11497_s3 + $0x3c0] ss:$16 sps:$4 sm:$0xff]  }
 0x12d   : > { %v1913_v44 = vmax.f32 %v827_v26, %v1657_v21  ;;  %v9733_v33 = vpack.c.bf16 %v1784_v56, %v1776_v41  ;;  %v864_v54 = vadd.f32 %v863_v25, %v9684_v14  ;;  %v1057_v52 = vadd.f32 %v1056_v48, %v9690_v42  ;;  %v865_v6 = vpop.f32.mrb[33].mxu1  ;;  %v1058_v5 = vpop.f32.mrb[33].mxu0  ;;  %v8911_v56 = vld [vmem:[%s9027_s18 + $0x58] sm:$0xff]  }
 0x12e   : > { %v9737_v51 = vpack.c.bf16 %v1912_v61, %v1904_v37  ;;  %v9739_v46 = vpack.c.bf16 %v1785_v62, %v1777_v53  ;;  %v866_v55 = vadd.f32 %v865_v6, %v9721_v38  ;;  %v1059_v49 = vadd.f32 %v1058_v5, %v9725_v39  ;;  %v867_v10 = vpop.f32.mrb[34].mxu1  ;;  %v1060_v58 = vpop.f32.mrb[34].mxu0  ;;  %3826 = vmatpush1.bf16.msra.mxu0 %v8475_v47 }
 0x12f   : > { %11583 = vst [vmem:[#allocation13_spill] sm:$0xff] %v9733_v33  ;;  %v9746_v26 = vpack.c.bf16 %v1913_v44, %v1905_v28  ;;  %v1410_v48 = vmul.f32 0.2, %v864_v54  ;;  %v1412_v40 = vmul.f32 0.2, %v1057_v52  ;;  %v868_v37 = vadd.f32 %v867_v10, %v9684_v14  ;;  %v869_v31 = vpop.f32.mrb[35].mxu1  ;;  %3827 = vmatprep.subr.bf16.mxu0 %v8480_v16 }
 0x130   : > { %11584 = vst [vmem:[#allocation14_spill] sm:$0xff] %v9739_v46  ;;  %v1061_v62 = vadd.f32 %v1060_v58, %v9690_v42  ;;  %v1062_v6 = vpop.f32.mrb[35].mxu0  ;;  %3708 = vmatprep.mubr.bf16.mxu0 %v9739_v46  ;;  %v1411_v22 = vmul.f32 0.2, %v866_v55  ;;  %v1413_v21 = vmul.f32 0.2, %v1059_v49  ;;  %v870_v47 = vadd.f32 %v869_v31, %v9721_v38 }
 0x131   : > { %v1063_v41 = vadd.f32 %v1062_v6, %v9725_v39  ;;  %v8483_v28 = vld [vmem:[%s11497_s3 + $0x3e4] ss:$16 sps:$4 sm:$0xff]   ;;  %7056 = vmatmul.mubr.msk.bf16.gmra.mrb[140].mxu1 %vm587_vm0, %v8911_v56  ;;  %3709 = vmatmul.mubr.bf16.gmra.mrb[124].mxu0 %v9733_v33  ;;  %v1666_v61 = vmax.f32 %v864_v54, %v1410_v48  ;;  %v1668_v53 = vmax.f32 %v1057_v52, %v1412_v40  ;;  %v1418_v16 = vmul.f32 0.2, %v868_v37  ;;  %v8481_v56 = vld [vmem:[%s11497_s3 + $0x3e0] ss:$16 sps:$4 sm:$0xff]  }
 0x132   : > { %v1420_v44 = vmul.f32 0.2, %v1061_v62  ;;  %3718 = vmatprep.mubr.bf16.mxu0 %v9450_v35  ;;  %v11585_v25 = vmov 0   ;;  %v1667_v5 = vmax.f32 %v866_v55, %v1411_v22  ;;  %v1669_v10 = vmax.f32 %v1059_v49, %v1413_v21  ;;  %3828 = vmatpush1.bf16.msra.mxu0 %v8478_v23  ;;  %v8486_v40 = vld [vmem:[%s11497_s3 + $0x404] ss:$16 sps:$4 sm:$0xff]  }
 0x133   : > { %1367 = vmatprep.mubr.bf16.mxu1 %v11585_v25  ;;  %v1419_v58 = vmul.f32 0.2, %v870_v47  ;;  %v1421_v31 = vmul.f32 0.2, %v1063_v41  ;;  %v1674_v6 = vmax.f32 %v868_v37, %v1418_v16  ;;  %3829 = vmatprep.subr.bf16.mxu0 %v8483_v28 }
 0x134   : > { %v1676_v34 = vmax.f32 %v1061_v62, %v1420_v44  ;;  %v873_v52 = vpop.f32.mrb[36].mxu1  ;;  %v1066_v48 = vpop.f32.mrb[36].mxu0 }
 0x135   : > { %v1675_v32 = vmax.f32 %v870_v47, %v1419_v58  ;;  %v1677_v54 = vmax.f32 %v1063_v41, %v1421_v31  ;;  %v9767_v55 = vpack.c.bf16 %v1674_v6, %v1666_v61  ;;  %v874_v37 = vadd.f32 %v873_v52, %v9684_v14  ;;  %v875_v62 = vpop.f32.mrb[37].mxu1  ;;  %v1068_v22 = vpop.f32.mrb[37].mxu0 }
 0x136   : > { %v9769_v49 = vpack.c.bf16 %v1676_v34, %v1668_v53  ;;  %v1067_v23 = vadd.f32 %v1066_v48, %v9690_v42  ;;  %v876_v21 = vadd.f32 %v875_v62, %v9721_v38  ;;  %v1069_v47 = vadd.f32 %v1068_v22, %v9725_v39  ;;  %v877_v41 = vpop.f32.mrb[38].mxu1  ;;  %v1070_v28 = vpop.f32.mrb[38].mxu0  ;;  %3830 = vmatpush1.bf16.msra.mxu0 %v8481_v56 }
 0x137   : > { %v9775_v16 = vpack.c.bf16 %v1675_v32, %v1667_v5  ;;  %v9777_v44 = vpack.c.bf16 %v1677_v54, %v1669_v10  ;;  %v1426_v61 = vmul.f32 0.2, %v874_v37  ;;  %v878_v53 = vadd.f32 %v877_v41, %v9684_v14  ;;  %v879_v31 = vpop.f32.mrb[39].mxu1  ;;  %v1072_v6 = vpop.f32.mrb[39].mxu0  ;;  %3992 = vmatprep.subr.bf16.mxu0 %v8486_v40  ;;  %v8912_v32 = vld [vmem:[%s9027_s18 + $0x60] sm:$0xff]  }
 0x138   : > { %11586 = vst [vmem:[#allocation15_spill] sm:$0xff] %v9769_v49  ;;  %v1428_v34 = vmul.f32 0.2, %v1067_v23  ;;  %v1071_v58 = vadd.f32 %v1070_v28, %v9690_v42  ;;  %v1427_v52 = vmul.f32 0.2, %v876_v21  ;;  %v880_v62 = vadd.f32 %v879_v31, %v9721_v38 }
 0x139   : > { %11587 = vst [vmem:[#allocation16_spill] sm:$0xff] %v9777_v44  ;;  %v1429_v48 = vmul.f32 0.2, %v1069_v47  ;;  %v1073_v22 = vadd.f32 %v1072_v6, %v9725_v39  ;;  %7057 = vmatmul.mubr.msk.bf16.gmra.mrb[144].mxu1 %vm587_vm0, %v8912_v32  ;;  %3719 = vmatmul.mubr.bf16.gmra.mrb[128].mxu0 %v9441_v24  ;;  %v1682_v5 = vmax.f32 %v874_v37, %v1426_v61  ;;  %v1434_v54 = vmul.f32 0.2, %v878_v53 }
 0x13a   : > { %v1684_v10 = vmax.f32 %v1067_v23, %v1428_v34  ;;  %v1436_v41 = vmul.f32 0.2, %v1071_v58  ;;  %3728 = vmatprep.mubr.bf16.mxu0 %v9495_v20  ;;  %1377 = vmatprep.mubr.bf16.mxu1 %v11585_v25  ;;  %v1683_v56 = vmax.f32 %v876_v21, %v1427_v52  ;;  %v1435_v49 = vmul.f32 0.2, %v880_v62 }
 0x13b   : > { %v1685_v28 = vmax.f32 %v1069_v47, %v1429_v48  ;;  %v1437_v31 = vmul.f32 0.2, %v1073_v22  ;;  %v1690_v44 = vmax.f32 %v878_v53, %v1434_v54 }
 0x13c   : > { %v1692_v6 = vmax.f32 %v1071_v58, %v1436_v41  ;;  %v1691_v40 = vmax.f32 %v880_v62, %v1435_v49  ;;  %v883_v35 = vpop.f32.mrb[40].mxu1  ;;  %v1076_v32 = vpop.f32.mrb[40].mxu0 }
 0x13d   : > { %v1693_v29 = vmax.f32 %v1073_v22, %v1437_v31  ;;  %v884_v24 = vadd.f32 %v883_v35, %v9684_v14  ;;  %v9790_v37 = vadd.f32 %v1076_v32, %v9690_v42  ;;  %v885_v23 = vpop.f32.mrb[41].mxu1  ;;  %v1078_v61 = vpop.f32.mrb[41].mxu0  ;;  %v9792_v34 = vpack.c.bf16 %v1690_v44, %v1682_v5 }
 0x13e   : > { %v9794_v20 = vpack.c.bf16 %v1692_v6, %v1684_v10  ;;  %v886_v21 = vadd.f32 %v885_v23, %v9721_v38  ;;  %v9798_v47 = vadd.f32 %v1078_v61, %v9725_v39  ;;  %v887_v49 = vpop.f32.mrb[42].mxu1  ;;  %v1080_v53 = vpop.f32.mrb[42].mxu0  ;;  %v9800_v58 = vpack.c.bf16 %v1691_v40, %v1683_v56 }
 0x13f   : > { %v9802_v35 = vpack.c.bf16 %v1693_v29, %v1685_v28  ;;  %v1442_v52 = vmul.f32 0.2, %v884_v24  ;;  %v9805_v48 = vmul.f32 0.2, %v9790_v37  ;;  %v888_v44 = vadd.f32 %v887_v49, %v9684_v14  ;;  %v889_v22 = vpop.f32.mrb[43].mxu1  ;;  %v1082_v5 = vpop.f32.mrb[43].mxu0 }
 0x140   : > { %11588 = vst [vmem:[#allocation17_spill] sm:$0xff] %v9794_v20  ;;  %v9809_v62 = vadd.f32 %v1080_v53, %v9690_v42  ;;  %v1443_v10 = vmul.f32 0.2, %v886_v21  ;;  %v1445_v54 = vmul.f32 0.2, %v9798_v47  ;;  %v890_v41 = vadd.f32 %v889_v22, %v9721_v38  ;;  %v8913_v29 = vld [vmem:[%s9027_s18 + $0x68] sm:$0xff]  }
 0x141   : > { %11589 = vst [vmem:[#allocation18_spill] sm:$0xff] %v9802_v35  ;;  %v1083_v56 = vadd.f32 %v1082_v5, %v9725_v39  ;;  %7058 = vmatmul.mubr.msk.bf16.gmra.mrb[148].mxu1 %vm587_vm0, %v8913_v29  ;;  %3729 = vmatmul.mubr.bf16.gmra.mrb[132].mxu0 %v9486_v12  ;;  %v1698_v28 = vmax.f32 %v884_v24, %v1442_v52  ;;  %v1450_v31 = vmul.f32 0.2, %v888_v44 }
 0x142   : > { %v1452_v6 = vmul.f32 0.2, %v9809_v62  ;;  %3738 = vmatprep.mubr.bf16.mxu0 %v9540_v13  ;;  %1387 = vmatprep.mubr.bf16.mxu1 %v11585_v25  ;;  %v1699_v40 = vmax.f32 %v886_v21, %v1443_v10  ;;  %v1451_v32 = vmul.f32 0.2, %v890_v41  ;;  %v1700_v49 = vmax.f32 %v9790_v37, %v9805_v48 }
 0x143   : > { %v1453_v23 = vmul.f32 0.2, %v1083_v56  ;;  %v1706_v61 = vmax.f32 %v888_v44, %v1450_v31  ;;  %v1701_v53 = vmax.f32 %v9798_v47, %v1445_v54 }
 0x144   : > { %v1707_v22 = vmax.f32 %v890_v41, %v1451_v32  ;;  %v893_v5 = vpop.f32.mrb[44].mxu1  ;;  %v1086_v29 = vpop.f32.mrb[44].mxu0  ;;  %v1708_v24 = vmax.f32 %v9809_v62, %v1452_v6 }
 0x145   : > { %v894_v52 = vadd.f32 %v893_v5, %v9684_v14  ;;  %v1087_v20 = vadd.f32 %v1086_v29, %v9690_v42  ;;  %v895_v35 = vpop.f32.mrb[45].mxu1  ;;  %v1088_v13 = vpop.f32.mrb[45].mxu0  ;;  %v9826_v21 = vpack.c.bf16 %v1706_v61, %v1698_v28  ;;  %v1709_v10 = vmax.f32 %v1083_v56, %v1453_v23  ;;  %v8914_v23 = vld [vmem:[%s9027_s18 + $0x70] sm:$0xff]  }
 0x146   : > { %v896_v44 = vadd.f32 %v895_v35, %v9721_v38  ;;  %v1089_v37 = vadd.f32 %v1088_v13, %v9725_v39  ;;  %v897_v47 = vpop.f32.mrb[46].mxu1  ;;  %v1090_v48 = vpop.f32.mrb[46].mxu0  ;;  %v9830_v54 = vpack.c.bf16 %v1707_v22, %v1699_v40  ;;  %v9843_v36 = vpack.c.bf16 %v1708_v24, %v1700_v49 }
 0x147   : > { %v1458_v41 = vmul.f32 0.2, %v894_v52  ;;  %v1460_v62 = vmul.f32 0.2, %v1087_v20  ;;  %v898_v31 = vadd.f32 %v897_v47, %v9684_v14  ;;  %v1091_v6 = vadd.f32 %v1090_v48, %v9690_v42  ;;  %v899_v32 = vpop.f32.mrb[47].mxu1  ;;  %v1092_v5 = vpop.f32.mrb[47].mxu0 }
 0x148   : > { %v1459_v28 = vmul.f32 0.2, %v896_v44  ;;  %v1461_v61 = vmul.f32 0.2, %v1089_v37  ;;  %v900_v56 = vadd.f32 %v899_v32, %v9721_v38  ;;  %v1093_v35 = vadd.f32 %v1092_v5, %v9725_v39  ;;  %11591 = vst [vmem:[#allocation20_spill] sm:$0xff] %v9843_v36 }
 0x149   : > { %7059 = vmatmul.mubr.msk.bf16.gmra.mrb[152].mxu1 %vm587_vm0, %v8914_v23  ;;  %3739 = vmatmul.mubr.bf16.gmra.mrb[136].mxu0 %v9531_v3  ;;  %v1714_v13 = vmax.f32 %v894_v52, %v1458_v41  ;;  %v1716_v40 = vmax.f32 %v1087_v20, %v1460_v62  ;;  %v1466_v22 = vmul.f32 0.2, %v898_v31  ;;  %v1468_v29 = vmul.f32 0.2, %v1091_v6 }
 0x14a   : > { %3748 = vmatprep.mubr.bf16.mxu0 %v9585_v11  ;;  %1397 = vmatprep.mubr.bf16.mxu1 %v11585_v25  ;;  %v1715_v47 = vmax.f32 %v896_v44, %v1459_v28  ;;  %v1717_v48 = vmax.f32 %v1089_v37, %v1461_v61  ;;  %v1467_v12 = vmul.f32 0.2, %v900_v56  ;;  %v1469_v33 = vmul.f32 0.2, %v1093_v35 }
 0x14b   : > { %v1722_v32 = vmax.f32 %v898_v31, %v1466_v22  ;;  %v1724_v46 = vmax.f32 %v1091_v6, %v1468_v29  ;;  %v9841_v5 = vpack.c.bf16 %v1709_v10, %v1701_v53  ;;  %v8915_v22 = vld [vmem:[%s9027_s18 + $0x78] sm:$0xff]   ;;  %s11445_s18 = scalar_lea.vmem %s11503_s9, %s6962_s28 }
 0x14c   : > { %v1723_v23 = vmax.f32 %v900_v56, %v1467_v12  ;;  %v1725_v3 = vmax.f32 %v1093_v35, %v1469_v33  ;;  %v903_v52 = vpop.f32.mrb[48].mxu1  ;;  %v1096_v20 = vpop.f32.mrb[48].mxu0 }
 0x14d   : > { %11590 = vst [vmem:[#allocation19_spill] sm:$0xff] %v9841_v5  ;;  %v904_v41 = vadd.f32 %v903_v52, %v9684_v14  ;;  %v1097_v62 = vadd.f32 %v1096_v20, %v9690_v42  ;;  %v905_v11 = vpop.f32.mrb[49].mxu1  ;;  %v1098_v25 = vpop.f32.mrb[49].mxu0  ;;  %v9847_v44 = vpack.c.bf16 %v1722_v32, %v1714_v13  ;;  %v9849_v37 = vpack.c.bf16 %v1724_v46, %v1716_v40 }
 0x14e   : > { %v906_v31 = vadd.f32 %v905_v11, %v9721_v38  ;;  %v1099_v49 = vadd.f32 %v1098_v25, %v9725_v39  ;;  %v907_v53 = vpop.f32.mrb[50].mxu1  ;;  %v1100_v12 = vpop.f32.mrb[50].mxu0  ;;  %v9853_v33 = vpack.c.bf16 %v1723_v23, %v1715_v47  ;;  %v9855_v24 = vpack.c.bf16 %v1725_v3, %v1717_v48 }
 0x14f   : > { %11592 = vst [vmem:[#allocation21_spill] sm:$0xff] %v9847_v44  ;;  %11593 = vst [vmem:[#allocation22_spill] sm:$0xff] %v9849_v37  ;;  %v1474_v10 = vmul.f32 0.2, %v904_v41  ;;  %v1476_v6 = vmul.f32 0.2, %v1097_v62  ;;  %v908_v28 = vadd.f32 %v907_v53, %v9684_v14  ;;  %v1101_v61 = vadd.f32 %v1100_v12, %v9690_v42 }
 0x150   : > { %11594 = vst [vmem:[#allocation23_spill] sm:$0xff] %v9853_v33  ;;  %11595 = vst [vmem:[#allocation24_spill] sm:$0xff] %v9855_v24  ;;  %v909_v56 = vpop.f32.mrb[51].mxu1  ;;  %v1102_v46 = vpop.f32.mrb[51].mxu0  ;;  %v1475_v35 = vmul.f32 0.2, %v906_v31 }
 0x151   : > { %v1477_v13 = vmul.f32 0.2, %v1099_v49  ;;  %v910_v11 = vadd.f32 %v909_v56, %v9721_v38  ;;  %v1103_v40 = vadd.f32 %v1102_v46, %v9725_v39  ;;  %7060 = vmatmul.mubr.msk.bf16.gmra.mrb[156].mxu1 %vm587_vm0, %v8915_v22  ;;  %3749 = vmatmul.mubr.bf16.gmra.mrb[140].mxu0 %v9576_v0  ;;  %v1730_v3 = vmax.f32 %v904_v41, %v1474_v10 }
 0x152   : > { %v1732_v29 = vmax.f32 %v1097_v62, %v1476_v6  ;;  %v1482_v47 = vmul.f32 0.2, %v908_v28  ;;  %v1484_v48 = vmul.f32 0.2, %v1101_v61  ;;  %3758 = vmatprep.mubr.bf16.mxu0 %v9630_v19  ;;  %4410 = vmatprep.mubr.bf16.mxu1 %v9444_v27  ;;  %v1731_v32 = vmax.f32 %v906_v31, %v1475_v35 }
 0x153   : > { %v1733_v23 = vmax.f32 %v1099_v49, %v1477_v13  ;;  %v1483_v52 = vmul.f32 0.2, %v910_v11  ;;  %v1485_v20 = vmul.f32 0.2, %v1103_v40 }
 0x154   : > { %v1738_v25 = vmax.f32 %v908_v28, %v1482_v47  ;;  %v1740_v53 = vmax.f32 %v1101_v61, %v1484_v48  ;;  %v913_v46 = vpop.f32.mrb[52].mxu1  ;;  %v1106_v22 = vpop.f32.mrb[52].mxu0  ;;  %v8487_v61 = vld [vmem:[%s11497_s3 + $0x208] ss:$16 sps:$4 sm:$0xff]  }
 0x155   : > { %v1739_v12 = vmax.f32 %v910_v11, %v1483_v52  ;;  %v1741_v56 = vmax.f32 %v1103_v40, %v1485_v20  ;;  %v914_v37 = vadd.f32 %v913_v46, %v9684_v14  ;;  %v1107_v41 = vadd.f32 %v1106_v22, %v9690_v42  ;;  %v915_v62 = vpop.f32.mrb[53].mxu1  ;;  %v1108_v10 = vpop.f32.mrb[53].mxu0 }
 0x156   : > { %v9868_v6 = vpack.c.bf16 %v1738_v25, %v1730_v3  ;;  %v9870_v24 = vpack.c.bf16 %v1740_v53, %v1732_v29  ;;  %v916_v27 = vadd.f32 %v915_v62, %v9721_v38  ;;  %v1109_v31 = vadd.f32 %v1108_v10, %v9725_v39  ;;  %v917_v49 = vpop.f32.mrb[54].mxu1  ;;  %v1110_v28 = vpop.f32.mrb[54].mxu0 }
 0x157   : > { %v9877_v35 = vpack.c.bf16 %v1739_v12, %v1731_v32  ;;  %v9879_v13 = vpack.c.bf16 %v1741_v56, %v1733_v23  ;;  %v1490_v11 = vmul.f32 0.2, %v914_v37  ;;  %v1492_v40 = vmul.f32 0.2, %v1107_v41  ;;  %v919_v47 = vpop.f32.mrb[55].mxu1  ;;  %v1112_v48 = vpop.f32.mrb[55].mxu0 }
 0x158   : > { %11596 = vst [vmem:[#allocation25_spill] sm:$0xff] %v9868_v6  ;;  %11597 = vst [vmem:[#allocation26_spill] sm:$0xff] %v9870_v24  ;;  %v918_v3 = vadd.f32 %v917_v49, %v9684_v14  ;;  %v1111_v29 = vadd.f32 %v1110_v28, %v9690_v42  ;;  %v1491_v52 = vmul.f32 0.2, %v916_v27  ;;  %v1493_v20 = vmul.f32 0.2, %v1109_v31 }
 0x159   : > { %11598 = vst [vmem:[#allocation27_spill] sm:$0xff] %v9877_v35  ;;  %11599 = vst [vmem:[#allocation28_spill] sm:$0xff] %v9879_v13  ;;  %v920_v25 = vadd.f32 %v919_v47, %v9721_v38  ;;  %v1113_v53 = vadd.f32 %v1112_v48, %v9725_v39  ;;  %v8495_v32 = vld [vmem:[%s11497_s3 + $0x22c] ss:$16 sps:$4 sm:$0xff]   ;;  %3759 = vmatmul.mubr.bf16.gmra.mrb[144].mxu0 %v9618_v2  ;;  %4411 = vmatmul.mubr.bf16.vlgmr.msra.gmra.mrb[160].mxu1 %v9434_v18  ;;  %v8493_v48 = vld [vmem:[%s11497_s3 + $0x228] ss:$16 sps:$4 sm:$0xff]  }
 0x15a   : > { %v1746_v23 = vmax.f32 %v914_v37, %v1490_v11  ;;  %v1748_v12 = vmax.f32 %v1107_v41, %v1492_v40  ;;  %v1498_v56 = vmul.f32 0.2, %v918_v3  ;;  %v1500_v46 = vmul.f32 0.2, %v1111_v29  ;;  %3768 = vmatprep.mubr.bf16.mxu0 %v9666_v30  ;;  %4420 = vmatprep.mubr.bf16.mxu1 %v9489_v15  ;;  %v8501_v15 = vld [vmem:[%s11497_s3 + $0x24c] ss:$16 sps:$4 sm:$0xff]  }
 0x15b   : > { %v1747_v22 = vmax.f32 %v916_v27, %v1491_v52  ;;  %v1749_v62 = vmax.f32 %v1109_v31, %v1493_v20  ;;  %v1499_v10 = vmul.f32 0.2, %v920_v25  ;;  %v1501_v49 = vmul.f32 0.2, %v1113_v53  ;;  %4572 = vmatpush1.bf16.msra.mxu1 %v8487_v61 }
 0x15c   : > { %v1754_v28 = vmax.f32 %v918_v3, %v1498_v56  ;;  %v1756_v47 = vmax.f32 %v1111_v29, %v1500_v46  ;;  %v923_v41 = vpop.f32.mrb[56].mxu1  ;;  %v1116_v11 = vpop.f32.mrb[56].mxu0  ;;  %4573 = vmatprep.subr.bf16.mxu1 %v8495_v32  ;;  %v8499_v32 = vld [vmem:[%s11497_s3 + $0x248] ss:$16 sps:$4 sm:$0xff]  }
 0x15d   : > { %v1755_v18 = vmax.f32 %v920_v25, %v1499_v10  ;;  %v1757_v37 = vmax.f32 %v1113_v53, %v1501_v49  ;;  %v924_v27 = vadd.f32 %v923_v41, %v9684_v14  ;;  %v1117_v31 = vadd.f32 %v1116_v11, %v9690_v42  ;;  %v925_v40 = vpop.f32.mrb[57].mxu1  ;;  %v1118_v3 = vpop.f32.mrb[57].mxu0 }
 0x15e   : > { %v9900_v61 = vpack.c.bf16 %v1754_v28, %v1746_v23  ;;  %v9902_v29 = vpack.c.bf16 %v1756_v47, %v1748_v12  ;;  %v926_v52 = vadd.f32 %v925_v40, %v9721_v38  ;;  %v1119_v20 = vadd.f32 %v1118_v3, %v9725_v39  ;;  %v927_v25 = vpop.f32.mrb[58].mxu1  ;;  %v1120_v53 = vpop.f32.mrb[58].mxu0 }
 0x15f   : > { %v9909_v56 = vpack.c.bf16 %v1755_v18, %v1747_v22  ;;  %v9911_v46 = vpack.c.bf16 %v1757_v37, %v1749_v62  ;;  %v1506_v10 = vmul.f32 0.2, %v924_v27  ;;  %v1508_v49 = vmul.f32 0.2, %v1117_v31  ;;  %v929_v28 = vpop.f32.mrb[59].mxu1  ;;  %v1122_v47 = vpop.f32.mrb[59].mxu0  ;;  %4574 = vmatpush1.bf16.msra.mxu1 %v8493_v48 }
 0x160   : > { %11600 = vst [vmem:[#allocation29_spill] sm:$0xff] %v9900_v61  ;;  %11601 = vst [vmem:[#allocation30_spill] sm:$0xff] %v9902_v29  ;;  %v928_v23 = vadd.f32 %v927_v25, %v9684_v14  ;;  %v1121_v12 = vadd.f32 %v1120_v53, %v9690_v42  ;;  %v1507_v41 = vmul.f32 0.2, %v926_v52  ;;  %v1509_v11 = vmul.f32 0.2, %v1119_v20  ;;  %4575 = vmatprep.subr.bf16.mxu1 %v8501_v15 }
 0x161   : > { %11602 = vst [vmem:[#allocation31_spill] sm:$0xff] %v9909_v56  ;;  %11603 = vst [vmem:[#allocation32_spill] sm:$0xff] %v9911_v46  ;;  %v930_v40 = vadd.f32 %v929_v28, %v9721_v38  ;;  %v1123_v3 = vadd.f32 %v1122_v47, %v9725_v39  ;;  %v8507_v22 = vld [vmem:[%s11497_s3 + $0x26c] ss:$16 sps:$4 sm:$0xff]   ;;  %3769 = vmatmul.mubr.bf16.gmra.mrb[148].mxu0 %v9654_v17  ;;  %4421 = vmatmul.mubr.bf16.gmra.mrb[164].mxu1 %v9480_v8  ;;  %v8505_v46 = vld [vmem:[%s11497_s3 + $0x268] ss:$16 sps:$4 sm:$0xff]  }
 0x162   : > { %v1762_v62 = vmax.f32 %v924_v27, %v1506_v10  ;;  %v1764_v18 = vmax.f32 %v1117_v31, %v1508_v49  ;;  %v1514_v37 = vmul.f32 0.2, %v928_v23  ;;  %v1516_v25 = vmul.f32 0.2, %v1121_v12  ;;  %3778 = vmatprep.mubr.bf16.mxu0 %v9708_v50  ;;  %4430 = vmatprep.mubr.bf16.mxu1 %v9534_v7  ;;  %v8513_v7 = vld [vmem:[%s11497_s3 + $0x28c] ss:$16 sps:$4 sm:$0xff]  }
 0x163   : > { %v1763_v48 = vmax.f32 %v926_v52, %v1507_v41  ;;  %v1765_v53 = vmax.f32 %v1119_v20, %v1509_v11  ;;  %v1515_v28 = vmul.f32 0.2, %v930_v40  ;;  %v1517_v15 = vmul.f32 0.2, %v1123_v3  ;;  %4576 = vmatpush1.bf16.msra.mxu1 %v8499_v32 }
 0x164   : > { %v1770_v47 = vmax.f32 %v928_v23, %v1514_v37  ;;  %v1772_v29 = vmax.f32 %v1121_v12, %v1516_v25  ;;  %v933_v31 = vpop.f32.mrb[60].mxu1  ;;  %v1126_v10 = vpop.f32.mrb[60].mxu0  ;;  %4577 = vmatprep.subr.bf16.mxu1 %v8507_v22  ;;  %v8511_v22 = vld [vmem:[%s11497_s3 + $0x288] ss:$16 sps:$4 sm:$0xff]  }
 0x165   : > { %v1771_v8 = vmax.f32 %v930_v40, %v1515_v28  ;;  %v1773_v27 = vmax.f32 %v1123_v3, %v1517_v15  ;;  %v934_v52 = vadd.f32 %v933_v31, %v9684_v14  ;;  %v1127_v20 = vadd.f32 %v1126_v10, %v9690_v42  ;;  %v935_v49 = vpop.f32.mrb[61].mxu1  ;;  %v1128_v23 = vpop.f32.mrb[61].mxu0 }
 0x166   : > { %v9932_v32 = vpack.c.bf16 %v1770_v47, %v1762_v62  ;;  %v9934_v12 = vpack.c.bf16 %v1772_v29, %v1764_v18  ;;  %v936_v41 = vadd.f32 %v935_v49, %v9721_v38  ;;  %v1129_v11 = vadd.f32 %v1128_v23, %v9725_v39  ;;  %v937_v40 = vpop.f32.mrb[62].mxu1  ;;  %v1130_v3 = vpop.f32.mrb[62].mxu0 }
 0x167   : > { %v9941_v37 = vpack.c.bf16 %v1771_v8, %v1763_v48  ;;  %v9943_v25 = vpack.c.bf16 %v1773_v27, %v1765_v53  ;;  %v1522_v28 = vmul.f32 0.2, %v934_v52  ;;  %v1524_v15 = vmul.f32 0.2, %v1127_v20  ;;  %v939_v18 = vpop.f32.mrb[63].mxu1  ;;  %v1132_v47 = vpop.f32.mrb[63].mxu0  ;;  %4578 = vmatpush1.bf16.msra.mxu1 %v8505_v46 }
 0x168   : > { %11604 = vst [vmem:[#allocation33_spill] sm:$0xff] %v9934_v12  ;;  %v938_v62 = vadd.f32 %v937_v40, %v9684_v14  ;;  %v1131_v29 = vadd.f32 %v1130_v3, %v9690_v42  ;;  %v1523_v31 = vmul.f32 0.2, %v936_v41  ;;  %v1525_v10 = vmul.f32 0.2, %v1129_v11  ;;  %4579 = vmatprep.subr.bf16.mxu1 %v8513_v7 }
 0x169   : > { %11605 = vst [vmem:[#allocation34_spill] sm:$0xff] %v9943_v25  ;;  %v940_v49 = vadd.f32 %v939_v18, %v9721_v38  ;;  %v1133_v23 = vadd.f32 %v1132_v47, %v9725_v39  ;;  %v8519_v48 = vld [vmem:[%s11497_s3 + $0x2ac] ss:$16 sps:$4 sm:$0xff]   ;;  %3779 = vmatmul.mubr.bf16.gmra.mrb[152].mxu0 %v9696_v45  ;;  %4431 = vmatmul.mubr.bf16.gmra.mrb[168].mxu1 %v9525_v63  ;;  %v8517_v25 = vld [vmem:[%s11497_s3 + $0x2a8] ss:$16 sps:$4 sm:$0xff]  }
 0x16a   : > { %v1778_v53 = vmax.f32 %v934_v52, %v1522_v28  ;;  %v1780_v8 = vmax.f32 %v1127_v20, %v1524_v15  ;;  %v1530_v27 = vmul.f32 0.2, %v938_v62  ;;  %v1532_v40 = vmul.f32 0.2, %v1131_v29  ;;  %3788 = vmatprep.mubr.bf16.mxu0 %v9746_v26  ;;  %4440 = vmatprep.mubr.bf16.mxu1 %v9579_v4  ;;  %v8525_v4 = vld [vmem:[%s11497_s3 + $0x2cc] ss:$16 sps:$4 sm:$0xff]  }
 0x16b   : > { %v1779_v46 = vmax.f32 %v936_v41, %v1523_v31  ;;  %v1781_v3 = vmax.f32 %v1129_v11, %v1525_v10  ;;  %v1531_v18 = vmul.f32 0.2, %v940_v49  ;;  %v1533_v7 = vmul.f32 0.2, %v1133_v23  ;;  %4580 = vmatpush1.bf16.msra.mxu1 %v8511_v22 }
 0x16c   : > { %v1786_v47 = vmax.f32 %v938_v62, %v1530_v27  ;;  %v1788_v12 = vmax.f32 %v1131_v29, %v1532_v40  ;;  %v943_v20 = vpop.f32.mrb[64].mxu1  ;;  %v1136_v28 = vpop.f32.mrb[64].mxu0  ;;  %4581 = vmatprep.subr.bf16.mxu1 %v8519_v48  ;;  %v8523_v48 = vld [vmem:[%s11497_s3 + $0x2c8] ss:$16 sps:$4 sm:$0xff]  }
 0x16d   : > { %v1787_v63 = vmax.f32 %v940_v49, %v1531_v18  ;;  %v1789_v52 = vmax.f32 %v1133_v23, %v1533_v7  ;;  %v944_v41 = vadd.f32 %v943_v20, %v9684_v14  ;;  %v1137_v11 = vadd.f32 %v1136_v28, %v9690_v42  ;;  %v945_v15 = vpop.f32.mrb[65].mxu1  ;;  %v1138_v62 = vpop.f32.mrb[65].mxu0 }
 0x16e   : > { %v9964_v22 = vpack.c.bf16 %v1786_v47, %v1778_v53  ;;  %v9966_v29 = vpack.c.bf16 %v1788_v12, %v1780_v8  ;;  %v946_v31 = vadd.f32 %v945_v15, %v9721_v38  ;;  %v1139_v10 = vadd.f32 %v1138_v62, %v9725_v39  ;;  %v947_v49 = vpop.f32.mrb[66].mxu1  ;;  %v1140_v23 = vpop.f32.mrb[66].mxu0 }
 0x16f   : > { %v9973_v27 = vpack.c.bf16 %v1787_v63, %v1779_v46  ;;  %v9975_v40 = vpack.c.bf16 %v1789_v52, %v1781_v3  ;;  %v1538_v18 = vmul.f32 0.2, %v944_v41  ;;  %v1540_v7 = vmul.f32 0.2, %v1137_v11  ;;  %v949_v8 = vpop.f32.mrb[67].mxu1  ;;  %v1142_v47 = vpop.f32.mrb[67].mxu0  ;;  %4582 = vmatpush1.bf16.msra.mxu1 %v8517_v25 }
 0x170   : > { %11606 = vst [vmem:[#allocation35_spill] sm:$0xff] %v9966_v29  ;;  %v948_v53 = vadd.f32 %v947_v49, %v9684_v14  ;;  %v1141_v12 = vadd.f32 %v1140_v23, %v9690_v42  ;;  %v1539_v20 = vmul.f32 0.2, %v946_v31  ;;  %v1541_v28 = vmul.f32 0.2, %v1139_v10  ;;  %4583 = vmatprep.subr.bf16.mxu1 %v8525_v4 }
 0x171   : > { %11607 = vst [vmem:[#allocation36_spill] sm:$0xff] %v9975_v40  ;;  %v950_v15 = vadd.f32 %v949_v8, %v9721_v38  ;;  %v1143_v62 = vadd.f32 %v1142_v47, %v9725_v39  ;;  %v8531_v46 = vld [vmem:[%s11497_s3 + $0x2ec] ss:$16 sps:$4 sm:$0xff]   ;;  %3789 = vmatmul.mubr.bf16.gmra.mrb[156].mxu0 %v9737_v51  ;;  %4441 = vmatmul.mubr.bf16.gmra.mrb[172].mxu1 %v9570_v59  ;;  %v8529_v40 = vld [vmem:[%s11497_s3 + $0x2e8] ss:$16 sps:$4 sm:$0xff]  }
 0x172   : > { %v1794_v3 = vmax.f32 %v944_v41, %v1538_v18  ;;  %v1796_v63 = vmax.f32 %v1137_v11, %v1540_v7  ;;  %v1546_v52 = vmul.f32 0.2, %v948_v53  ;;  %v1548_v49 = vmul.f32 0.2, %v1141_v12  ;;  %3831 = vmatprep.mubr.bf16.mxu0 %v9775_v16  ;;  %4450 = vmatprep.mubr.bf16.mxu1 %v9621_v9  ;;  %v8537_v9 = vld [vmem:[%s11497_s3 + $0x30c] ss:$16 sps:$4 sm:$0xff]  }
 0x173   : > { %v1795_v25 = vmax.f32 %v946_v31, %v1539_v20  ;;  %v1797_v23 = vmax.f32 %v1139_v10, %v1541_v28  ;;  %v1547_v8 = vmul.f32 0.2, %v950_v15  ;;  %v1549_v4 = vmul.f32 0.2, %v1143_v62  ;;  %4584 = vmatpush1.bf16.msra.mxu1 %v8523_v48  ;;  %v8484_v20 = vld [vmem:[%s11497_s3 + $0x400] ss:$16 sps:$4 sm:$0xff]  }
 0x174   : > { %v1802_v47 = vmax.f32 %v948_v53, %v1546_v52  ;;  %v1804_v29 = vmax.f32 %v1141_v12, %v1548_v49  ;;  %v953_v11 = vpop.f32.mrb[68].mxu1  ;;  %v1146_v18 = vpop.f32.mrb[68].mxu0  ;;  %4585 = vmatprep.subr.bf16.mxu1 %v8531_v46  ;;  %v8492_v28 = vld [vmem:[%s11497_s3 + $0x424] ss:$16 sps:$4 sm:$0xff]  }
 0x175   : > { %v1803_v59 = vmax.f32 %v950_v15, %v1547_v8  ;;  %v1805_v41 = vmax.f32 %v1143_v62, %v1549_v4  ;;  %v954_v31 = vadd.f32 %v953_v11, %v9684_v14  ;;  %v1147_v10 = vadd.f32 %v1146_v18, %v9690_v42  ;;  %v955_v7 = vpop.f32.mrb[69].mxu1  ;;  %v1148_v53 = vpop.f32.mrb[69].mxu0 }
 0x176   : > { %v9996_v48 = vpack.c.bf16 %v1802_v47, %v1794_v3  ;;  %v9998_v12 = vpack.c.bf16 %v1804_v29, %v1796_v63  ;;  %v956_v15 = vadd.f32 %v955_v7, %v9721_v38  ;;  %v1149_v62 = vadd.f32 %v1148_v53, %v9725_v39  ;;  %v957_v46 = vpop.f32.mrb[70].mxu1  ;;  %v1150_v52 = vpop.f32.mrb[70].mxu0 }
 0x177   : > { %v10008_v49 = vpack.c.bf16 %v1803_v59, %v1795_v25  ;;  %v10010_v3 = vpack.c.bf16 %v1805_v41, %v1797_v23  ;;  %v1554_v29 = vmul.f32 0.2, %v954_v31  ;;  %v1556_v63 = vmul.f32 0.2, %v1147_v10  ;;  %v959_v47 = vpop.f32.mrb[71].mxu1  ;;  %v1152_v11 = vpop.f32.mrb[71].mxu0  ;;  %4586 = vmatpush1.bf16.msra.mxu1 %v8529_v40 }
 0x178   : > { %11608 = vst [vmem:[#allocation37_spill] sm:$0xff] %v9998_v12  ;;  %v958_v8 = vadd.f32 %v957_v46, %v9684_v14  ;;  %v1151_v4 = vadd.f32 %v1150_v52, %v9690_v42  ;;  %v1555_v18 = vmul.f32 0.2, %v956_v15  ;;  %v1557_v12 = vmul.f32 0.2, %v1149_v62  ;;  %4587 = vmatprep.subr.bf16.mxu1 %v8537_v9 }
 0x179   : > { %11609 = vst [vmem:[#allocation38_spill] sm:$0xff] %v10010_v3  ;;  %v960_v7 = vadd.f32 %v959_v47, %v9721_v38  ;;  %v1153_v53 = vadd.f32 %v1152_v11, %v9725_v39  ;;  %v8535_v25 = vld [vmem:[%s11497_s3 + $0x308] ss:$16 sps:$4 sm:$0xff]   ;;  %3832 = vmatmul.mubr.bf16.vlgmr.msra.gmra.mrb[96].mxu0 %v9767_v55  ;;  %4451 = vmatmul.mubr.bf16.gmra.mrb[176].mxu1 %v9615_v60  ;;  %v8540_v40 = vld [vmem:[%s11497_s3 + $0x32c] ss:$16 sps:$4 sm:$0xff]  }
 0x17a   : > { %v1810_v23 = vmax.f32 %v954_v31, %v1554_v29  ;;  %v1812_v59 = vmax.f32 %v1147_v10, %v1556_v63  ;;  %v1562_v41 = vmul.f32 0.2, %v958_v8  ;;  %v1564_v46 = vmul.f32 0.2, %v1151_v4  ;;  %3993 = vmatpush1.bf16.msra.mxu0 %v8484_v20  ;;  %3841 = vmatprep.mubr.bf16.mxu0 %v9800_v58  ;;  %v8490_v52 = vld [vmem:[%s11497_s3 + $0x420] ss:$16 sps:$4 sm:$0xff]  }
 0x17b   : > { %v1811_v9 = vmax.f32 %v956_v15, %v1555_v18  ;;  %v1813_v47 = vmax.f32 %v1149_v62, %v1557_v12  ;;  %v1563_v11 = vmul.f32 0.2, %v960_v7  ;;  %v1565_v3 = vmul.f32 0.2, %v1153_v53  ;;  %4460 = vmatprep.mubr.bf16.mxu1 %v9657_v1  ;;  %3994 = vmatprep.subr.bf16.mxu0 %v8492_v28  ;;  %v8498_v60 = vld [vmem:[%s11497_s3 + $0x444] ss:$16 sps:$4 sm:$0xff]  }
 0x17c   : > { %v1818_v31 = vmax.f32 %v958_v8, %v1562_v41  ;;  %v1820_v10 = vmax.f32 %v1151_v4, %v1564_v46  ;;  %v963_v63 = vpop.f32.mrb[72].mxu1  ;;  %v1156_v24 = vpop.f32.mrb[72].mxu0  ;;  %4588 = vmatpush1.bf16.msra.mxu1 %v8535_v25  ;;  %v8538_v12 = vld [vmem:[%s11497_s3 + $0x328] ss:$16 sps:$4 sm:$0xff]   ;;  %v8496_v1 = vld [vmem:[%s11497_s3 + $0x440] ss:$16 sps:$4 sm:$0xff]  }
 0x17d   : > { %v1819_v20 = vmax.f32 %v960_v7, %v1563_v11  ;;  %v1821_v29 = vmax.f32 %v1153_v53, %v1565_v3  ;;  %v964_v28 = vadd.f32 %v963_v63, %v9684_v14  ;;  %v1157_v15 = vadd.f32 %v1156_v24, %v9690_v42  ;;  %v965_v62 = vpop.f32.mrb[73].mxu1  ;;  %v1158_v8 = vpop.f32.mrb[73].mxu0  ;;  %4589 = vmatprep.subr.bf16.mxu1 %v8540_v40  ;;  %v8504_v18 = vld [vmem:[%s11497_s3 + $0x464] ss:$16 sps:$4 sm:$0xff]   ;;  %v8546_v24 = vld [vmem:[%s11497_s3 + $0x34c] ss:$16 sps:$4 sm:$0xff]  }
 0x17e   : > { %v10040_v4 = vpack.c.bf16 %v1818_v31, %v1810_v23  ;;  %v10042_v3 = vpack.c.bf16 %v1820_v10, %v1812_v59  ;;  %3995 = vmatpush1.bf16.msra.mxu0 %v8490_v52  ;;  %v966_v7 = vadd.f32 %v965_v62, %v9721_v38  ;;  %v1159_v53 = vadd.f32 %v1158_v8, %v9725_v39  ;;  %v967_v25 = vpop.f32.mrb[74].mxu1  ;;  %v1160_v41 = vpop.f32.mrb[74].mxu0 }
 0x17f   : > { %v10049_v46 = vpack.c.bf16 %v1819_v20, %v1811_v9  ;;  %v10054_v23 = vpack.c.bf16 %v1821_v29, %v1813_v47  ;;  %3996 = vmatprep.subr.bf16.mxu0 %v8498_v60  ;;  %v1570_v59 = vmul.f32 0.2, %v964_v28  ;;  %v1572_v40 = vmul.f32 0.2, %v1157_v15  ;;  %v969_v31 = vpop.f32.mrb[75].mxu1  ;;  %v1162_v10 = vpop.f32.mrb[75].mxu0 }
 0x180   : > { %11610 = vst [vmem:[#allocation39_spill] sm:$0xff] %v10042_v3  ;;  %v968_v52 = vadd.f32 %v967_v25, %v9684_v14  ;;  %v1161_v11 = vadd.f32 %v1160_v41, %v9690_v42  ;;  %v1571_v63 = vmul.f32 0.2, %v966_v7  ;;  %v1573_v62 = vmul.f32 0.2, %v1159_v53  ;;  %4590 = vmatpush1.bf16.msra.mxu1 %v8538_v12 }
 0x181   : > { %11611 = vst [vmem:[#allocation40_spill] sm:$0xff] %v10054_v23  ;;  %v970_v9 = vadd.f32 %v969_v31, %v9721_v38  ;;  %v1163_v20 = vadd.f32 %v1162_v10, %v9725_v39  ;;  %v8544_v47 = vld [vmem:[%s11497_s3 + $0x348] ss:$16 sps:$4 sm:$0xff]   ;;  %3842 = vmatmul.mubr.bf16.gmra.mrb[100].mxu0 %v9792_v34  ;;  %4461 = vmatmul.mubr.bf16.gmra.mrb[180].mxu1 %v9651_v57  ;;  %v8549_v41 = vld [vmem:[%s11497_s3 + $0x36c] ss:$16 sps:$4 sm:$0xff]  }
 0x182   : > { %v1826_v60 = vmax.f32 %v964_v28, %v1570_v59  ;;  %v1828_v29 = vmax.f32 %v1157_v15, %v1572_v40  ;;  %v1578_v8 = vmul.f32 0.2, %v968_v52  ;;  %v1580_v25 = vmul.f32 0.2, %v1161_v11  ;;  %3851 = vmatprep.mubr.bf16.mxu0 %v9830_v54  ;;  %4470 = vmatprep.mubr.bf16.mxu1 %v9699_v43  ;;  %v8502_v57 = vld [vmem:[%s11497_s3 + $0x460] ss:$16 sps:$4 sm:$0xff]  }
 0x183   : > { %v1827_v12 = vmax.f32 %v966_v7, %v1571_v63  ;;  %v1829_v31 = vmax.f32 %v1159_v53, %v1573_v62  ;;  %v1579_v10 = vmul.f32 0.2, %v970_v9  ;;  %v1581_v3 = vmul.f32 0.2, %v1163_v20  ;;  %3997 = vmatpush1.bf16.msra.mxu0 %v8496_v1  ;;  %4591 = vmatprep.subr.bf16.mxu1 %v8546_v24  ;;  %v8510_v59 = vld [vmem:[%s11497_s3 + $0x484] ss:$16 sps:$4 sm:$0xff]  }
 0x184   : > { %v1834_v28 = vmax.f32 %v968_v52, %v1578_v8  ;;  %v1836_v15 = vmax.f32 %v1161_v11, %v1580_v25  ;;  %3998 = vmatprep.subr.bf16.mxu0 %v8504_v18  ;;  %v973_v43 = vpop.f32.mrb[76].mxu1  ;;  %v1166_v7 = vpop.f32.mrb[76].mxu0  ;;  %4592 = vmatpush1.bf16.msra.mxu1 %v8544_v47  ;;  %v8547_v1 = vld [vmem:[%s11497_s3 + $0x368] ss:$16 sps:$4 sm:$0xff]   ;;  %v8508_v53 = vld [vmem:[%s11497_s3 + $0x480] ss:$16 sps:$4 sm:$0xff]  }
 0x185   : > { %v1835_v40 = vmax.f32 %v970_v9, %v1579_v10  ;;  %v1837_v23 = vmax.f32 %v1163_v20, %v1581_v3  ;;  %v974_v24 = vadd.f32 %v973_v43, %v9684_v14  ;;  %v1167_v18 = vadd.f32 %v1166_v7, %v9690_v42  ;;  %v975_v52 = vpop.f32.mrb[77].mxu1  ;;  %v1168_v11 = vpop.f32.mrb[77].mxu0  ;;  %4593 = vmatprep.subr.bf16.mxu1 %v8549_v41  ;;  %v8516_v20 = vld [vmem:[%s11497_s3 + $0x4a4] ss:$16 sps:$4 sm:$0xff]  }
 0x186   : > { %v10084_v63 = vpack.c.bf16 %v1834_v28, %v1826_v60  ;;  %v10086_v3 = vpack.c.bf16 %v1836_v15, %v1828_v29  ;;  %v976_v62 = vadd.f32 %v975_v52, %v9721_v38  ;;  %v10090_v9 = vadd.f32 %v1168_v11, %v9725_v39  ;;  %v977_v47 = vpop.f32.mrb[78].mxu1  ;;  %v1170_v8 = vpop.f32.mrb[78].mxu0  ;;  %v8555_v60 = vld [vmem:[%s11497_s3 + $0x38c] ss:$16 sps:$4 sm:$0xff]  }
 0x187   : > { %v10095_v25 = vpack.c.bf16 %v1835_v40, %v1827_v12  ;;  %v10100_v41 = vpack.c.bf16 %v1837_v23, %v1829_v31  ;;  %3999 = vmatpush1.bf16.msra.mxu0 %v8502_v57  ;;  %v1586_v29 = vmul.f32 0.2, %v974_v24  ;;  %v1588_v10 = vmul.f32 0.2, %v1167_v18  ;;  %v979_v43 = vpop.f32.mrb[79].mxu1  ;;  %v1172_v7 = vpop.f32.mrb[79].mxu0 }
 0x188   : > { %11612 = vst [vmem:[#allocation41_spill] sm:$0xff] %v10086_v3  ;;  %v978_v28 = vadd.f32 %v977_v47, %v9684_v14  ;;  %v1171_v15 = vadd.f32 %v1170_v8, %v9690_v42  ;;  %4000 = vmatprep.subr.bf16.mxu0 %v8510_v59  ;;  %v1587_v52 = vmul.f32 0.2, %v976_v62  ;;  %v1589_v12 = vmul.f32 0.2, %v10090_v9  ;;  %4594 = vmatpush1.bf16.msra.mxu1 %v8547_v1  ;;  %v11614_v31 = vld [vmem:[#allocation12_spill] sm:$0xff] }
 0x189   : > { %11613 = vst [vmem:[#allocation42_spill] sm:$0xff] %v10100_v41  ;;  %v980_v40 = vadd.f32 %v979_v43, %v9721_v38  ;;  %v1173_v11 = vadd.f32 %v1172_v7, %v9725_v39  ;;  %v8553_v23 = vld [vmem:[%s11497_s3 + $0x388] ss:$16 sps:$4 sm:$0xff]   ;;  %3852 = vmatmul.mubr.bf16.gmra.mrb[104].mxu0 %v9826_v21  ;;  %4471 = vmatmul.mubr.bf16.gmra.mrb[184].mxu1 %v11614_v31  ;;  %v8558_v3 = vld [vmem:[%s11497_s3 + $0x3ac] ss:$16 sps:$4 sm:$0xff]   ;;  %v11615_v43 = vld [vmem:[#allocation14_spill] sm:$0xff] }
 0x18a   : > { %v1842_v57 = vmax.f32 %v974_v24, %v1586_v29  ;;  %v1844_v47 = vmax.f32 %v1167_v18, %v1588_v10  ;;  %v1594_v8 = vmul.f32 0.2, %v978_v28  ;;  %v1596_v59 = vmul.f32 0.2, %v1171_v15  ;;  %3861 = vmatprep.mubr.bf16.mxu0 %v9853_v33  ;;  %4480 = vmatprep.mubr.bf16.mxu1 %v11615_v43  ;;  %v8514_v24 = vld [vmem:[%s11497_s3 + $0x4a0] ss:$16 sps:$4 sm:$0xff]  }
 0x18b   : > { %v1843_v1 = vmax.f32 %v976_v62, %v1587_v52  ;;  %v1845_v7 = vmax.f32 %v10090_v9, %v1589_v12  ;;  %v1595_v41 = vmul.f32 0.2, %v980_v40  ;;  %v1597_v13 = vmul.f32 0.2, %v1173_v11  ;;  %4001 = vmatpush1.bf16.msra.mxu0 %v8508_v53  ;;  %4595 = vmatprep.subr.bf16.mxu1 %v8555_v60  ;;  %v8522_v62 = vld [vmem:[%s11497_s3 + $0x4c4] ss:$16 sps:$4 sm:$0xff]  }
 0x18c   : > { %v1850_v18 = vmax.f32 %v978_v28, %v1594_v8  ;;  %v1852_v29 = vmax.f32 %v1171_v15, %v1596_v59  ;;  %4002 = vmatprep.subr.bf16.mxu0 %v8516_v20  ;;  %v983_v36 = vpop.f32.mrb[80].mxu1  ;;  %v1176_v5 = vpop.f32.mrb[80].mxu0  ;;  %4596 = vmatpush1.bf16.msra.mxu1 %v8553_v23  ;;  %v8556_v53 = vld [vmem:[%s11497_s3 + $0x3a8] ss:$16 sps:$4 sm:$0xff]  }
 0x18d   : > { %v1851_v10 = vmax.f32 %v980_v40, %v1595_v41  ;;  %v1853_v31 = vmax.f32 %v1173_v11, %v1597_v13  ;;  %v984_v9 = vadd.f32 %v983_v36, %v9684_v14  ;;  %v1177_v28 = vadd.f32 %v1176_v5, %v9690_v42  ;;  %v985_v15 = vpop.f32.mrb[81].mxu1  ;;  %v1178_v60 = vpop.f32.mrb[81].mxu0  ;;  %v8520_v13 = vld [vmem:[%s11497_s3 + $0x4c0] ss:$16 sps:$4 sm:$0xff]   ;;  %4597 = vmatprep.subr.bf16.mxu1 %v8558_v3  ;;  %v8528_v36 = vld [vmem:[%s11497_s3 + $0x4e4] ss:$16 sps:$4 sm:$0xff]  }
 0x18e   : > { %v10132_v20 = vpack.c.bf16 %v1850_v18, %v1842_v57  ;;  %v10134_v41 = vpack.c.bf16 %v1852_v29, %v1844_v47  ;;  %v986_v52 = vadd.f32 %v985_v15, %v9721_v38  ;;  %v1179_v12 = vadd.f32 %v1178_v60, %v9725_v39  ;;  %v987_v40 = vpop.f32.mrb[82].mxu1  ;;  %v1180_v11 = vpop.f32.mrb[82].mxu0  ;;  %v8564_v3 = vld [vmem:[%s11497_s3 + $0x3cc] ss:$16 sps:$4 sm:$0xff]  }
 0x18f   : > { %v10141_v5 = vpack.c.bf16 %v1851_v10, %v1843_v1  ;;  %v10146_v23 = vpack.c.bf16 %v1853_v31, %v1845_v7  ;;  %4003 = vmatpush1.bf16.msra.mxu0 %v8514_v24  ;;  %v1602_v57 = vmul.f32 0.2, %v984_v9  ;;  %v1604_v47 = vmul.f32 0.2, %v1177_v28  ;;  %v989_v43 = vpop.f32.mrb[83].mxu1  ;;  %v1182_v18 = vpop.f32.mrb[83].mxu0 }
 0x190   : > { %11616 = vst [vmem:[#allocation12_spill] sm:$0xff] %v10134_v41  ;;  %v988_v8 = vadd.f32 %v987_v40, %v9684_v14  ;;  %v1181_v59 = vadd.f32 %v1180_v11, %v9690_v42  ;;  %v1603_v29 = vmul.f32 0.2, %v986_v52  ;;  %v1605_v15 = vmul.f32 0.2, %v1179_v12  ;;  %4004 = vmatprep.subr.bf16.mxu0 %v8522_v62  ;;  %4598 = vmatpush1.bf16.msra.mxu1 %v8556_v53  ;;  %v11618_v24 = vld [vmem:[#allocation13_spill] sm:$0xff] }
 0x191   : > { %11617 = vst [vmem:[#allocation14_spill] sm:$0xff] %v10146_v23  ;;  %v990_v1 = vadd.f32 %v989_v43, %v9721_v38  ;;  %v1183_v10 = vadd.f32 %v1182_v18, %v9725_v39  ;;  %v8562_v7 = vld [vmem:[%s11497_s3 + $0x3c8] ss:$16 sps:$4 sm:$0xff]   ;;  %3862 = vmatmul.mubr.bf16.gmra.mrb[108].mxu0 %v9847_v44  ;;  %4481 = vmatmul.mubr.bf16.gmra.mrb[188].mxu1 %v11618_v24  ;;  %v8567_v62 = vld [vmem:[%s11497_s3 + $0x3ec] ss:$16 sps:$4 sm:$0xff]   ;;  %v11619_v43 = vld [vmem:[#allocation6_spill] sm:$0xff] }
 0x192   : > { %v1858_v31 = vmax.f32 %v984_v9, %v1602_v57  ;;  %v1860_v60 = vmax.f32 %v1177_v28, %v1604_v47  ;;  %v1610_v40 = vmul.f32 0.2, %v988_v8  ;;  %v1612_v11 = vmul.f32 0.2, %v1181_v59  ;;  %3871 = vmatprep.mubr.bf16.mxu0 %v9877_v35  ;;  %4490 = vmatprep.mubr.bf16.mxu1 %v11619_v43  ;;  %v8526_v9 = vld [vmem:[%s11497_s3 + $0x4e0] ss:$16 sps:$4 sm:$0xff]  }
 0x193   : > { %v1859_v53 = vmax.f32 %v986_v52, %v1603_v29  ;;  %v1861_v18 = vmax.f32 %v1179_v12, %v1605_v15  ;;  %v1611_v41 = vmul.f32 0.2, %v990_v1  ;;  %v1613_v23 = vmul.f32 0.2, %v1183_v10  ;;  %4005 = vmatpush1.bf16.msra.mxu0 %v8520_v13  ;;  %4599 = vmatprep.subr.bf16.mxu1 %v8564_v3  ;;  %v8534_v52 = vld [vmem:[%s11497_s3 + $0x504] ss:$16 sps:$4 sm:$0xff]  }
 0x194   : > { %v1866_v33 = vmax.f32 %v988_v8, %v1610_v40  ;;  %v1868_v44 = vmax.f32 %v1181_v59, %v1612_v11  ;;  %v993_v47 = vpop.f32.mrb[84].mxu1  ;;  %v1186_v24 = vpop.f32.mrb[84].mxu0  ;;  %4006 = vmatprep.subr.bf16.mxu0 %v8528_v36  ;;  %4600 = vmatpush1.bf16.msra.mxu1 %v8562_v7  ;;  %v8565_v12 = vld [vmem:[%s11497_s3 + $0x3e8] ss:$16 sps:$4 sm:$0xff]   ;;  %v8585_v40 = vld [vmem:[%s11497_s3 + $0x40c] ss:$16 sps:$4 sm:$0xff]  }
 0x195   : > { %v1867_v28 = vmax.f32 %v990_v1, %v1611_v41  ;;  %v1869_v57 = vmax.f32 %v1183_v10, %v1613_v23  ;;  %v994_v13 = vadd.f32 %v993_v47, %v9684_v14  ;;  %v1187_v8 = vadd.f32 %v1186_v24, %v9690_v42  ;;  %v995_v59 = vpop.f32.mrb[85].mxu1  ;;  %v1188_v3 = vpop.f32.mrb[85].mxu0  ;;  %4601 = vmatprep.subr.bf16.mxu1 %v8567_v62  ;;  %v8532_v10 = vld [vmem:[%s11497_s3 + $0x500] ss:$16 sps:$4 sm:$0xff]  }
 0x196   : > { %v10173_v41 = vpack.c.bf16 %v1866_v33, %v1858_v31  ;;  %v10175_v23 = vpack.c.bf16 %v1868_v44, %v1860_v60  ;;  %v996_v36 = vadd.f32 %v995_v59, %v9721_v38  ;;  %v1189_v29 = vadd.f32 %v1188_v3, %v9725_v39  ;;  %v997_v15 = vpop.f32.mrb[86].mxu1  ;;  %v1190_v1 = vpop.f32.mrb[86].mxu0 }
 0x197   : > { %v10182_v7 = vpack.c.bf16 %v1867_v28, %v1859_v53  ;;  %v10187_v33 = vpack.c.bf16 %v1869_v57, %v1861_v18  ;;  %v1618_v44 = vmul.f32 0.2, %v994_v13  ;;  %v1620_v31 = vmul.f32 0.2, %v1187_v8  ;;  %4007 = vmatpush1.bf16.msra.mxu0 %v8526_v9  ;;  %v999_v62 = vpop.f32.mrb[87].mxu1  ;;  %v1192_v43 = vpop.f32.mrb[87].mxu0 }
 0x198   : > { %11620 = vst [vmem:[#allocation13_spill] sm:$0xff] %v10175_v23  ;;  %v998_v60 = vadd.f32 %v997_v15, %v9684_v14  ;;  %v1191_v11 = vadd.f32 %v1190_v1, %v9690_v42  ;;  %v1619_v47 = vmul.f32 0.2, %v996_v36  ;;  %v1621_v24 = vmul.f32 0.2, %v1189_v29  ;;  %4008 = vmatprep.subr.bf16.mxu0 %v8534_v52  ;;  %4602 = vmatpush1.bf16.msra.mxu1 %v8565_v12  ;;  %v11622_v57 = vld [vmem:[#allocation5_spill] sm:$0xff] }
 0x199   : > { %11621 = vst [vmem:[#allocation6_spill] sm:$0xff] %v10187_v33  ;;  %v1000_v53 = vadd.f32 %v999_v62, %v9721_v38  ;;  %v1193_v28 = vadd.f32 %v1192_v43, %v9725_v39  ;;  %v8543_v18 = vld [vmem:[%s11497_s3 + $0x524] ss:$16 sps:$4 sm:$0xff]   ;;  %3872 = vmatmul.mubr.bf16.gmra.mrb[112].mxu0 %v9868_v6  ;;  %4491 = vmatmul.mubr.bf16.gmra.mrb[192].mxu1 %v11622_v57  ;;  %v8541_v12 = vld [vmem:[%s11497_s3 + $0x520] ss:$16 sps:$4 sm:$0xff]  }
 0x19a   : > { %v1874_v59 = vmax.f32 %v994_v13, %v1618_v44  ;;  %v1876_v9 = vmax.f32 %v1187_v8, %v1620_v31  ;;  %v1626_v3 = vmul.f32 0.2, %v998_v60  ;;  %v1628_v15 = vmul.f32 0.2, %v1191_v11  ;;  %3881 = vmatprep.mubr.bf16.mxu0 %v9909_v56  ;;  %v11623_v1 = vld [vmem:[#allocation8_spill] sm:$0xff]  ;;  %4764 = vmatprep.subr.bf16.mxu1 %v8585_v40  ;;  %v11624_v57 = vld [vmem:[#allocation2_spill] sm:$0xff] }
 0x19b   : > { %4500 = vmatprep.mubr.bf16.mxu1 %v11623_v1  ;;  %v1875_v62 = vmax.f32 %v996_v36, %v1619_v47  ;;  %v1877_v43 = vmax.f32 %v1189_v29, %v1621_v24  ;;  %v1627_v52 = vmul.f32 0.2, %v1000_v53  ;;  %v1629_v23 = vmul.f32 0.2, %v1193_v28  ;;  %4009 = vmatpush1.bf16.msra.mxu0 %v8532_v10  ;;  %v8552_v29 = vld [vmem:[%s11497_s3 + $0x544] ss:$16 sps:$4 sm:$0xff]  }
 0x19c   : > { %v1882_v33 = vmax.f32 %v998_v60, %v1626_v3  ;;  %v1884_v35 = vmax.f32 %v1191_v11, %v1628_v15  ;;  %v1003_v44 = vpop.f32.mrb[88].mxu1  ;;  %v1196_v31 = vpop.f32.mrb[88].mxu0  ;;  %4010 = vmatprep.subr.bf16.mxu0 %v8543_v18  ;;  %v413_v56 = vsub.s32 6, %v11624_v57  ;;  %v417_v36 = vsub.s32 7, %v11624_v57  ;;  %v8550_v3 = vld [vmem:[%s11497_s3 + $0x540] ss:$16 sps:$4 sm:$0xff]  }
 0x19d   : > { %v1883_v13 = vmax.f32 %v1000_v53, %v1627_v52  ;;  %v1885_v8 = vmax.f32 %v1193_v28, %v1629_v23  ;;  %v1004_v10 = vadd.f32 %v1003_v44, %v9684_v14  ;;  %v1197_v60 = vadd.f32 %v1196_v31, %v9690_v42  ;;  %v1005_v11 = vpop.f32.mrb[89].mxu1  ;;  %v1198_v47 = vpop.f32.mrb[89].mxu0 }
 0x19e   : > { %v10210_v40 = vpack.c.bf16 %v1882_v33, %v1874_v59  ;;  %v10212_v23 = vpack.c.bf16 %v1884_v35, %v1876_v9  ;;  %v1006_v24 = vadd.f32 %v1005_v11, %v9721_v38  ;;  %v1199_v53 = vadd.f32 %v1198_v47, %v9725_v39  ;;  %v1007_v28 = vpop.f32.mrb[90].mxu1  ;;  %v1200_v18 = vpop.f32.mrb[90].mxu0 }
 0x19f   : > { %v10219_v15 = vpack.c.bf16 %v1883_v13, %v1875_v62  ;;  %v10221_v1 = vpack.c.bf16 %v1885_v8, %v1877_v43  ;;  %v1634_v52 = vmul.f32 0.2, %v1004_v10  ;;  %v1636_v44 = vmul.f32 0.2, %v1197_v60  ;;  %v1009_v59 = vpop.f32.mrb[91].mxu1  ;;  %v1202_v9 = vpop.f32.mrb[91].mxu0  ;;  %4011 = vmatpush1.bf16.msra.mxu0 %v8541_v12 }
 0x1a0   : > { %11625 = vst [vmem:[#allocation5_spill] sm:$0xff] %v10212_v23  ;;  %v1008_v33 = vadd.f32 %v1007_v28, %v9684_v14  ;;  %v1201_v35 = vadd.f32 %v1200_v18, %v9690_v42  ;;  %v1635_v31 = vmul.f32 0.2, %v1006_v24  ;;  %v1637_v11 = vmul.f32 0.2, %v1199_v53  ;;  %4012 = vmatprep.subr.bf16.mxu0 %v8552_v29  ;;  %v11627_v43 = vld [vmem:[#allocation7_spill] sm:$0xff] }
 0x1a1   : > { %11626 = vst [vmem:[#allocation8_spill] sm:$0xff] %v10221_v1  ;;  %v1010_v47 = vadd.f32 %v1009_v59, %v9721_v38  ;;  %v1203_v57 = vadd.f32 %v1202_v9, %v9725_v39  ;;  %v8561_v62 = vld [vmem:[%s11497_s3 + $0x564] ss:$16 sps:$4 sm:$0xff]   ;;  %3882 = vmatmul.mubr.bf16.gmra.mrb[116].mxu0 %v9900_v61  ;;  %4501 = vmatmul.mubr.bf16.gmra.mrb[196].mxu1 %v11627_v43  ;;  %v8559_v61 = vld [vmem:[%s11497_s3 + $0x560] ss:$16 sps:$4 sm:$0xff]  }
 0x1a2   : > { %v1890_v13 = vmax.f32 %v1004_v10, %v1634_v52  ;;  %v1892_v8 = vmax.f32 %v1197_v60, %v1636_v44  ;;  %v1642_v28 = vmul.f32 0.2, %v1008_v33  ;;  %v1644_v18 = vmul.f32 0.2, %v1201_v35  ;;  %3891 = vmatprep.mubr.bf16.mxu0 %v9941_v37  ;;  %v11628_v12 = vld [vmem:[#allocation10_spill] sm:$0xff] }
 0x1a3   : > { %4510 = vmatprep.mubr.bf16.mxu1 %v11628_v12  ;;  %v1891_v59 = vmax.f32 %v1006_v24, %v1635_v31  ;;  %v1893_v23 = vmax.f32 %v1199_v53, %v1637_v11  ;;  %v1643_v9 = vmul.f32 0.2, %v1010_v47  ;;  %v1645_v29 = vmul.f32 0.2, %v1203_v57  ;;  %4013 = vmatpush1.bf16.msra.mxu0 %v8550_v3  ;;  %v8916_v44 = vld [vmem:[%s11496_s2] sm:$0xff] }
 0x1a4   : > { %v1898_v1 = vmax.f32 %v1008_v33, %v1642_v28  ;;  %v1900_v6 = vmax.f32 %v1201_v35, %v1644_v18  ;;  %v1013_v60 = vpop.f32.mrb[92].mxu1  ;;  %v1206_v52 = vpop.f32.mrb[92].mxu0  ;;  %v10240_v12 = vrot.slane %v8916_v44, %v413_v56  ;;  %v10242_v24 = vrot.slane %v8916_v44, %v417_v36  ;;  %4014 = vmatprep.subr.bf16.mxu0 %v8561_v62  ;;  %v8570_v53 = vld [vmem:[%s11497_s3 + $0x584] ss:$16 sps:$4 sm:$0xff]   ;;  %v8568_v28 = vld [vmem:[%s11497_s3 + $0x580] ss:$16 sps:$4 sm:$0xff]  }
 0x1a5   : > { %v1899_v43 = vmax.f32 %v1010_v47, %v1643_v9  ;;  %v1901_v10 = vmax.f32 %v1203_v57, %v1645_v29  ;;  %v1014_v3 = vadd.f32 %v1013_v60, %v9684_v14  ;;  %v1207_v33 = vadd.f32 %v1206_v52, %v9690_v42  ;;  %v1015_v57 = vpop.f32.mrb[93].mxu1  ;;  %v1208_v35 = vpop.f32.mrb[93].mxu0 }
 0x1a6   : > { %v10249_v31 = vpack.c.bf16 %v1898_v1, %v1890_v13  ;;  %v10251_v11 = vpack.c.bf16 %v1900_v6, %v1892_v8  ;;  %v1016_v56 = vadd.f32 %v1015_v57, %v9721_v38  ;;  %v1209_v36 = vadd.f32 %v1208_v35, %v9725_v39  ;;  %v1017_v47 = vpop.f32.mrb[94].mxu1  ;;  %v1210_v62 = vpop.f32.mrb[94].mxu0 }
 0x1a7   : > { %v10258_v18 = vpack.c.bf16 %v1899_v43, %v1891_v59  ;;  %v10260_v9 = vpack.c.bf16 %v1901_v10, %v1893_v23  ;;  %v1650_v29 = vmul.f32 0.2, %v1014_v3  ;;  %v1652_v60 = vmul.f32 0.2, %v1207_v33  ;;  %v1019_v13 = vpop.f32.mrb[95].mxu1  ;;  %v1212_v8 = vpop.f32.mrb[95].mxu0  ;;  %4015 = vmatpush1.bf16.msra.mxu0 %v8559_v61 }
 0x1a8   : > { %v1018_v1 = vadd.f32 %v1017_v47, %v9684_v14  ;;  %v1211_v6 = vadd.f32 %v1210_v62, %v9690_v42  ;;  %v1651_v52 = vmul.f32 0.2, %v1016_v56  ;;  %v1653_v44 = vmul.f32 0.2, %v1209_v36  ;;  %4016 = vmatprep.subr.bf16.mxu0 %v8570_v53  ;;  %v8573_v23 = vld [vmem:[%s11497_s3 + $0x5a4] ss:$16 sps:$4 sm:$0xff]  }
 0x1a9   : > { %v1020_v57 = vadd.f32 %v1019_v13, %v9721_v38  ;;  %v1213_v35 = vadd.f32 %v1212_v8, %v9725_v39  ;;  %3892 = vmatmul.mubr.bf16.gmra.mrb[120].mxu0 %v9932_v32  ;;  %v11629_v59 = vld [vmem:[#allocation9_spill] sm:$0xff]  ;;  %v1906_v14 = vmax.f32 %v1014_v3, %v1650_v29  ;;  %v1908_v42 = vmax.f32 %v1207_v33, %v1652_v60  ;;  %v11630_v61 = vld [vmem:[#allocation11_spill] sm:$0xff]  ;;  %v8571_v8 = vld [vmem:[%s11497_s3 + $0x5a0] ss:$16 sps:$4 sm:$0xff]  }
 0x1aa   : > { %4511 = vmatmul.mubr.bf16.gmra.mrb[200].mxu1 %v11629_v59  ;;  %v1658_v43 = vmul.f32 0.2, %v1018_v1  ;;  %v1660_v10 = vmul.f32 0.2, %v1211_v6  ;;  %3901 = vmatprep.mubr.bf16.mxu0 %v9973_v27  ;;  %v1907_v38 = vmax.f32 %v1016_v56, %v1651_v52  ;;  %v1909_v47 = vmax.f32 %v1209_v36, %v1653_v44  ;;  %v8576_v29 = vld [vmem:[%s11497_s3 + $0x5c4] ss:$16 sps:$4 sm:$0xff]  }
 0x1ab   : > { %4520 = vmatprep.mubr.bf16.mxu1 %v11630_v61  ;;  %v1659_v39 = vmul.f32 0.2, %v1020_v57  ;;  %v1661_v53 = vmul.f32 0.2, %v1213_v35  ;;  %4017 = vmatpush1.bf16.msra.mxu0 %v8568_v28 }
 0x1ac   : > { %v1914_v62 = vmax.f32 %v1018_v1, %v1658_v43  ;;  %v1916_v13 = vmax.f32 %v1211_v6, %v1660_v10  ;;  %v1249_v33 = vpop.f32.mrb[96].mxu1  ;;  %4018 = vmatprep.subr.bf16.mxu0 %v8573_v23  ;;  %v8574_v43 = vld [vmem:[%s11497_s3 + $0x5c0] ss:$16 sps:$4 sm:$0xff]   ;;  %v8579_v10 = vld [vmem:[%s11497_s3 + $0x5e4] ss:$16 sps:$4 sm:$0xff]  }
 0x1ad   : > { %v1915_v59 = vmax.f32 %v1020_v57, %v1659_v39  ;;  %v1917_v3 = vmax.f32 %v1213_v35, %v1661_v53  ;;  %v1250_v56 = vadd.f32 %v1249_v33, %v10240_v12  ;;  %v1251_v36 = vpop.f32.mrb[97].mxu1 }
 0x1ae   : > { %v10280_v60 = vpack.c.bf16 %v1914_v62, %v1906_v14  ;;  %v10282_v1 = vpack.c.bf16 %v1916_v13, %v1908_v42  ;;  %v1252_v28 = vadd.f32 %v1251_v36, %v10242_v24  ;;  %v1253_v6 = vpop.f32.mrb[98].mxu1  ;;  %v8577_v62 = vld [vmem:[%s11497_s3 + $0x5e0] ss:$16 sps:$4 sm:$0xff]  }
 0x1af   : > { %v10285_v52 = vpack.c.bf16 %v1915_v59, %v1907_v38  ;;  %v10287_v44 = vpack.c.bf16 %v1917_v3, %v1909_v47  ;;  %v1414_v57 = vmul.f32 0.2, %v1250_v56  ;;  %v1254_v35 = vadd.f32 %v1253_v6, %v10240_v12  ;;  %v1255_v23 = vpop.f32.mrb[99].mxu1  ;;  %4019 = vmatpush1.bf16.msra.mxu0 %v8571_v8 }
 0x1b0   : > { %v1415_v14 = vmul.f32 0.2, %v1252_v28  ;;  %v1256_v42 = vadd.f32 %v1255_v23, %v10242_v24  ;;  %4020 = vmatprep.subr.bf16.mxu0 %v8576_v29 }
 0x1b1   : > { %3902 = vmatmul.mubr.bf16.gmra.mrb[124].mxu0 %v9964_v22  ;;  %v1670_v61 = vmax.f32 %v1250_v56, %v1414_v57  ;;  %v1422_v38 = vmul.f32 0.2, %v1254_v35 }
 0x1b2   : > { %4521 = vmatmul.mubr.bf16.gmra.mrb[204].mxu1 %v9576_v0  ;;  %3911 = vmatprep.mubr.bf16.mxu0 %v10008_v49  ;;  %v1671_v47 = vmax.f32 %v1252_v28, %v1415_v14  ;;  %v1423_v39 = vmul.f32 0.2, %v1256_v42  ;;  %v8582_v0 = vld [vmem:[%s11497_s3 + $0x604] ss:$16 sps:$4 sm:$0xff]  }
 0x1b3   : > { %4530 = vmatprep.mubr.bf16.mxu1 %v9630_v19  ;;  %v1678_v53 = vmax.f32 %v1254_v35, %v1422_v38  ;;  %4021 = vmatpush1.bf16.msra.mxu0 %v8574_v43 }
 0x1b4   : > { %v1679_v13 = vmax.f32 %v1256_v42, %v1423_v39  ;;  %v1259_v8 = vpop.f32.mrb[100].mxu1  ;;  %4022 = vmatprep.subr.bf16.mxu0 %v8579_v10 }
 0x1b5   : > { %v10307_v59 = vpack.c.bf16 %v1678_v53, %v1670_v61  ;;  %v1260_v3 = vadd.f32 %v1259_v8, %v10240_v12  ;;  %v1261_v19 = vpop.f32.mrb[101].mxu1 }
 0x1b6   : > { %v1262_v33 = vadd.f32 %v1261_v19, %v10242_v24  ;;  %v1263_v29 = vpop.f32.mrb[102].mxu1  ;;  %v10311_v56 = vpack.c.bf16 %v1679_v13, %v1671_v47 }
 0x1b7   : > { %v1430_v36 = vmul.f32 0.2, %v1260_v3  ;;  %v1264_v28 = vadd.f32 %v1263_v29, %v10240_v12  ;;  %v1265_v6 = vpop.f32.mrb[103].mxu1  ;;  %4023 = vmatpush1.bf16.msra.mxu0 %v8577_v62 }
 0x1b8   : > { %v1431_v57 = vmul.f32 0.2, %v1262_v33  ;;  %v1266_v35 = vadd.f32 %v1265_v6, %v10242_v24  ;;  %4185 = vmatprep.subr.bf16.mxu0 %v8582_v0 }
 0x1b9   : > { %3912 = vmatmul.mubr.bf16.gmra.mrb[128].mxu0 %v9996_v48  ;;  %v1686_v23 = vmax.f32 %v1260_v3, %v1430_v36  ;;  %v1438_v43 = vmul.f32 0.2, %v1264_v28 }
 0x1ba   : > { %4531 = vmatmul.mubr.bf16.gmra.mrb[208].mxu1 %v9618_v2  ;;  %3921 = vmatprep.mubr.bf16.mxu0 %v10049_v46  ;;  %v1687_v14 = vmax.f32 %v1262_v33, %v1431_v57  ;;  %v1439_v42 = vmul.f32 0.2, %v1266_v35 }
 0x1bb   : > { %4540 = vmatprep.mubr.bf16.mxu1 %v9666_v30  ;;  %v1694_v10 = vmax.f32 %v1264_v28, %v1438_v43 }
 0x1bc   : > { %v1695_v61 = vmax.f32 %v1266_v35, %v1439_v42  ;;  %v1269_v38 = vpop.f32.mrb[104].mxu1 }
 0x1bd   : > { %v1270_v47 = vadd.f32 %v1269_v38, %v10240_v12  ;;  %v1271_v39 = vpop.f32.mrb[105].mxu1  ;;  %v10320_v53 = vpack.c.bf16 %v1694_v10, %v1686_v23 }
 0x1be   : > { %v1272_v62 = vadd.f32 %v1271_v39, %v10242_v24  ;;  %v1273_v13 = vpop.f32.mrb[106].mxu1  ;;  %v10323_v2 = vpack.c.bf16 %v1695_v61, %v1687_v14 }
 0x1bf   : > { %v1446_v8 = vmul.f32 0.2, %v1270_v47  ;;  %v1274_v0 = vadd.f32 %v1273_v13, %v10240_v12  ;;  %v1275_v3 = vpop.f32.mrb[107].mxu1 }
 0x1c0   : > { %v1447_v30 = vmul.f32 0.2, %v1272_v62  ;;  %v1276_v19 = vadd.f32 %v1275_v3, %v10242_v24 }
 0x1c1   : > { %3922 = vmatmul.mubr.bf16.gmra.mrb[132].mxu0 %v10040_v4  ;;  %v1702_v33 = vmax.f32 %v1270_v47, %v1446_v8  ;;  %v1454_v29 = vmul.f32 0.2, %v1274_v0 }
 0x1c2   : > { %4541 = vmatmul.mubr.bf16.gmra.mrb[212].mxu1 %v9654_v17  ;;  %3931 = vmatprep.mubr.bf16.mxu0 %v10095_v25  ;;  %v1703_v36 = vmax.f32 %v1272_v62, %v1447_v30  ;;  %v1455_v28 = vmul.f32 0.2, %v1276_v19 }
 0x1c3   : > { %4550 = vmatprep.mubr.bf16.mxu1 %v9708_v50  ;;  %v1710_v6 = vmax.f32 %v1274_v0, %v1454_v29 }
 0x1c4   : > { %v1711_v57 = vmax.f32 %v1276_v19, %v1455_v28  ;;  %v1279_v35 = vpop.f32.mrb[108].mxu1 }
 0x1c5   : > { %v1280_v23 = vadd.f32 %v1279_v35, %v10240_v12  ;;  %v1281_v43 = vpop.f32.mrb[109].mxu1  ;;  %v10332_v14 = vpack.c.bf16 %v1710_v6, %v1702_v33 }
 0x1c6   : > { %v1282_v42 = vadd.f32 %v1281_v43, %v10242_v24  ;;  %v1283_v10 = vpop.f32.mrb[110].mxu1  ;;  %v10335_v17 = vpack.c.bf16 %v1711_v57, %v1703_v36 }
 0x1c7   : > { %v1462_v61 = vmul.f32 0.2, %v1280_v23  ;;  %v1284_v38 = vadd.f32 %v1283_v10, %v10240_v12  ;;  %v1285_v47 = vpop.f32.mrb[111].mxu1 }
 0x1c8   : > { %v1463_v50 = vmul.f32 0.2, %v1282_v42  ;;  %v1286_v39 = vadd.f32 %v1285_v47, %v10242_v24 }
 0x1c9   : > { %3932 = vmatmul.mubr.bf16.gmra.mrb[136].mxu0 %v10084_v63  ;;  %v1718_v62 = vmax.f32 %v1280_v23, %v1462_v61  ;;  %v1470_v13 = vmul.f32 0.2, %v1284_v38 }
 0x1ca   : > { %4551 = vmatmul.mubr.bf16.gmra.mrb[216].mxu1 %v9696_v45  ;;  %3941 = vmatprep.mubr.bf16.mxu0 %v10141_v5  ;;  %v1719_v8 = vmax.f32 %v1282_v42, %v1463_v50  ;;  %v1471_v0 = vmul.f32 0.2, %v1286_v39 }
 0x1cb   : > { %4560 = vmatprep.mubr.bf16.mxu1 %v9746_v26  ;;  %v1726_v3 = vmax.f32 %v1284_v38, %v1470_v13 }
 0x1cc   : > { %v1727_v30 = vmax.f32 %v1286_v39, %v1471_v0  ;;  %v1289_v19 = vpop.f32.mrb[112].mxu1 }
 0x1cd   : > { %v1290_v33 = vadd.f32 %v1289_v19, %v10240_v12  ;;  %v1291_v29 = vpop.f32.mrb[113].mxu1  ;;  %v10344_v36 = vpack.c.bf16 %v1726_v3, %v1718_v62 }
 0x1ce   : > { %v1292_v28 = vadd.f32 %v1291_v29, %v10242_v24  ;;  %v1293_v6 = vpop.f32.mrb[114].mxu1  ;;  %v10347_v45 = vpack.c.bf16 %v1727_v30, %v1719_v8 }
 0x1cf   : > { %v1478_v57 = vmul.f32 0.2, %v1290_v33  ;;  %v1294_v35 = vadd.f32 %v1293_v6, %v10240_v12  ;;  %v1295_v23 = vpop.f32.mrb[115].mxu1  ;;  %v8591_v6 = vld [vmem:[%s11497_s3 + $0x42c] ss:$16 sps:$4 sm:$0xff]  }
 0x1d0   : > { %v1479_v26 = vmul.f32 0.2, %v1292_v28  ;;  %v1296_v43 = vadd.f32 %v1295_v23, %v10242_v24 }
 0x1d1   : > { %3942 = vmatmul.mubr.bf16.gmra.mrb[140].mxu0 %v10132_v20  ;;  %v1734_v42 = vmax.f32 %v1290_v33, %v1478_v57  ;;  %v1486_v10 = vmul.f32 0.2, %v1294_v35 }
 0x1d2   : > { %4561 = vmatmul.mubr.bf16.gmra.mrb[220].mxu1 %v9737_v51  ;;  %3951 = vmatprep.mubr.bf16.mxu0 %v10182_v7  ;;  %v1735_v61 = vmax.f32 %v1292_v28, %v1479_v26  ;;  %v1487_v38 = vmul.f32 0.2, %v1296_v43 }
 0x1d3   : > { %4603 = vmatprep.mubr.bf16.mxu1 %v9775_v16  ;;  %v1742_v47 = vmax.f32 %v1294_v35, %v1486_v10  ;;  %v8583_v16 = vld [vmem:[%s11497_s3 + $0x408] ss:$16 sps:$4 sm:$0xff]  }
 0x1d4   : > { %v1743_v50 = vmax.f32 %v1296_v43, %v1487_v38  ;;  %v1299_v39 = vpop.f32.mrb[116].mxu1 }
 0x1d5   : > { %v1300_v62 = vadd.f32 %v1299_v39, %v10240_v12  ;;  %v1301_v13 = vpop.f32.mrb[117].mxu1  ;;  %v10356_v8 = vpack.c.bf16 %v1742_v47, %v1734_v42  ;;  %v8589_v42 = vld [vmem:[%s11497_s3 + $0x428] ss:$16 sps:$4 sm:$0xff]  }
 0x1d6   : > { %v1302_v0 = vadd.f32 %v1301_v13, %v10242_v24  ;;  %v1303_v3 = vpop.f32.mrb[118].mxu1  ;;  %v10359_v51 = vpack.c.bf16 %v1743_v50, %v1735_v61 }
 0x1d7   : > { %v1494_v30 = vmul.f32 0.2, %v1300_v62  ;;  %v1304_v19 = vadd.f32 %v1303_v3, %v10240_v12  ;;  %v1305_v33 = vpop.f32.mrb[119].mxu1 }
 0x1d8   : > { %v1495_v29 = vmul.f32 0.2, %v1302_v0  ;;  %v1306_v28 = vadd.f32 %v1305_v33, %v10242_v24 }
 0x1d9   : > { %3952 = vmatmul.mubr.bf16.gmra.mrb[144].mxu0 %v10173_v41  ;;  %v1750_v57 = vmax.f32 %v1300_v62, %v1494_v30  ;;  %v1502_v35 = vmul.f32 0.2, %v1304_v19  ;;  %v8595_v30 = vld [vmem:[%s11497_s3 + $0x448] ss:$16 sps:$4 sm:$0xff]  }
 0x1da   : > { %4604 = vmatmul.mubr.bf16.vlgmr.msra.gmra.mrb[160].mxu1 %v9767_v55  ;;  %3961 = vmatprep.mubr.bf16.mxu0 %v10219_v15  ;;  %v1751_v23 = vmax.f32 %v1302_v0, %v1495_v29  ;;  %v1503_v26 = vmul.f32 0.2, %v1306_v28  ;;  %v8597_v55 = vld [vmem:[%s11497_s3 + $0x44c] ss:$16 sps:$4 sm:$0xff]  }
 0x1db   : > { %4613 = vmatprep.mubr.bf16.mxu1 %v9800_v58  ;;  %v1758_v43 = vmax.f32 %v1304_v19, %v1502_v35  ;;  %4765 = vmatpush1.bf16.msra.mxu1 %v8583_v16  ;;  %v8603_v16 = vld [vmem:[%s11497_s3 + $0x46c] ss:$16 sps:$4 sm:$0xff]  }
 0x1dc   : > { %v1759_v10 = vmax.f32 %v1306_v28, %v1503_v26  ;;  %v1309_v61 = vpop.f32.mrb[120].mxu1  ;;  %4766 = vmatprep.subr.bf16.mxu1 %v8591_v6 }
 0x1dd   : > { %v1310_v38 = vadd.f32 %v1309_v61, %v10240_v12  ;;  %v1311_v47 = vpop.f32.mrb[121].mxu1  ;;  %v10380_v50 = vpack.c.bf16 %v1758_v43, %v1750_v57 }
 0x1de   : > { %v1312_v58 = vadd.f32 %v1311_v47, %v10242_v24  ;;  %v1313_v39 = vpop.f32.mrb[122].mxu1  ;;  %v10383_v62 = vpack.c.bf16 %v1759_v10, %v1751_v23  ;;  %v8601_v23 = vld [vmem:[%s11497_s3 + $0x468] ss:$16 sps:$4 sm:$0xff]  }
 0x1df   : > { %v1510_v13 = vmul.f32 0.2, %v1310_v38  ;;  %v1314_v0 = vadd.f32 %v1313_v39, %v10240_v12  ;;  %v1315_v3 = vpop.f32.mrb[123].mxu1  ;;  %4767 = vmatpush1.bf16.msra.mxu1 %v8589_v42 }
 0x1e0   : > { %v1511_v19 = vmul.f32 0.2, %v1312_v58  ;;  %v1316_v33 = vadd.f32 %v1315_v3, %v10242_v24  ;;  %4768 = vmatprep.subr.bf16.mxu1 %v8597_v55 }
 0x1e1   : > { %3962 = vmatmul.mubr.bf16.gmra.mrb[148].mxu0 %v10210_v40  ;;  %v1766_v29 = vmax.f32 %v1310_v38, %v1510_v13  ;;  %v1518_v28 = vmul.f32 0.2, %v1314_v0  ;;  %v8607_v13 = vld [vmem:[%s11497_s3 + $0x488] ss:$16 sps:$4 sm:$0xff]  }
 0x1e2   : > { %4614 = vmatmul.mubr.bf16.gmra.mrb[164].mxu1 %v9792_v34  ;;  %3971 = vmatprep.mubr.bf16.mxu0 %v10258_v18  ;;  %v1767_v6 = vmax.f32 %v1312_v58, %v1511_v19  ;;  %v1519_v57 = vmul.f32 0.2, %v1316_v33  ;;  %v8609_v34 = vld [vmem:[%s11497_s3 + $0x48c] ss:$16 sps:$4 sm:$0xff]  }
 0x1e3   : > { %4623 = vmatprep.mubr.bf16.mxu1 %v9830_v54  ;;  %v1774_v35 = vmax.f32 %v1314_v0, %v1518_v28  ;;  %4769 = vmatpush1.bf16.msra.mxu1 %v8595_v30  ;;  %v8615_v30 = vld [vmem:[%s11497_s3 + $0x4ac] ss:$16 sps:$4 sm:$0xff]  }
 0x1e4   : > { %v1775_v26 = vmax.f32 %v1316_v33, %v1519_v57  ;;  %v1319_v43 = vpop.f32.mrb[124].mxu1  ;;  %4770 = vmatprep.subr.bf16.mxu1 %v8603_v16  ;;  %v11631_v16 = vld [vmem:[#allocation23_spill] sm:$0xff] }
 0x1e5   : > { %v1320_v42 = vadd.f32 %v1319_v43, %v10240_v12  ;;  %v1321_v10 = vpop.f32.mrb[125].mxu1  ;;  %v10404_v61 = vpack.c.bf16 %v1774_v35, %v1766_v29  ;;  %v8613_v57 = vld [vmem:[%s11497_s3 + $0x4a8] ss:$16 sps:$4 sm:$0xff]  }
 0x1e6   : > { %v1322_v54 = vadd.f32 %v1321_v10, %v10242_v24  ;;  %v1323_v55 = vpop.f32.mrb[126].mxu1  ;;  %v10407_v38 = vpack.c.bf16 %v1775_v26, %v1767_v6 }
 0x1e7   : > { %v1526_v47 = vmul.f32 0.2, %v1320_v42  ;;  %v1324_v58 = vadd.f32 %v1323_v55, %v10240_v12  ;;  %v1325_v39 = vpop.f32.mrb[127].mxu1  ;;  %4771 = vmatpush1.bf16.msra.mxu1 %v8601_v23 }
 0x1e8   : > { %v1527_v0 = vmul.f32 0.2, %v1322_v54  ;;  %v1326_v3 = vadd.f32 %v1325_v39, %v10242_v24  ;;  %4772 = vmatprep.subr.bf16.mxu1 %v8609_v34  ;;  %v8619_v39 = vld [vmem:[%s11497_s3 + $0x4c8] ss:$16 sps:$4 sm:$0xff]  }
 0x1e9   : > { %3972 = vmatmul.mubr.bf16.gmra.mrb[152].mxu0 %v10249_v31  ;;  %v1782_v19 = vmax.f32 %v1320_v42, %v1526_v47  ;;  %v1534_v33 = vmul.f32 0.2, %v1324_v58 }
 0x1ea   : > { %4624 = vmatmul.mubr.bf16.gmra.mrb[168].mxu1 %v9826_v21  ;;  %3981 = vmatprep.mubr.bf16.mxu0 %v10285_v52  ;;  %v1783_v29 = vmax.f32 %v1322_v54, %v1527_v0  ;;  %v1535_v28 = vmul.f32 0.2, %v1326_v3  ;;  %v8621_v21 = vld [vmem:[%s11497_s3 + $0x4cc] ss:$16 sps:$4 sm:$0xff]  }
 0x1eb   : > { %4633 = vmatprep.mubr.bf16.mxu1 %v11631_v16  ;;  %v1790_v6 = vmax.f32 %v1324_v58, %v1534_v33  ;;  %4773 = vmatpush1.bf16.msra.mxu1 %v8607_v13  ;;  %v11634_v16 = vld [vmem:[#allocation16_spill] sm:$0xff] }
 0x1ec   : > { %v1791_v35 = vmax.f32 %v1326_v3, %v1535_v28  ;;  %v1329_v23 = vpop.f32.mrb[128].mxu1  ;;  %4774 = vmatprep.subr.bf16.mxu1 %v8615_v30  ;;  %v8627_v3 = vld [vmem:[%s11497_s3 + $0x4ec] ss:$16 sps:$4 sm:$0xff]  }
 0x1ed   : > { %v1330_v26 = vadd.f32 %v1329_v23, %v10240_v12  ;;  %v1331_v43 = vpop.f32.mrb[129].mxu1  ;;  %v10428_v34 = vpack.c.bf16 %v1790_v6, %v1782_v19  ;;  %v11633_v30 = vld [vmem:[#allocation21_spill] sm:$0xff] }
 0x1ee   : > { %v1332_v42 = vadd.f32 %v1331_v43, %v10242_v24  ;;  %v1333_v10 = vpop.f32.mrb[130].mxu1  ;;  %v10431_v54 = vpack.c.bf16 %v1791_v35, %v1783_v29  ;;  %v11635_v29 = vld [vmem:[#allocation27_spill] sm:$0xff] }
 0x1ef   : > { %11632 = vst [vmem:[#allocation7_spill] sm:$0xff] %v10428_v34  ;;  %v1542_v55 = vmul.f32 0.2, %v1330_v26  ;;  %v1334_v47 = vadd.f32 %v1333_v10, %v10240_v12  ;;  %v1335_v58 = vpop.f32.mrb[131].mxu1  ;;  %4775 = vmatpush1.bf16.msra.mxu1 %v8613_v57  ;;  %v8625_v35 = vld [vmem:[%s11497_s3 + $0x4e8] ss:$16 sps:$4 sm:$0xff]  }
 0x1f0   : > { %v1543_v13 = vmul.f32 0.2, %v1332_v42  ;;  %v1336_v0 = vadd.f32 %v1335_v58, %v10242_v24  ;;  %4776 = vmatprep.subr.bf16.mxu1 %v8621_v21 }
 0x1f1   : > { %3982 = vmatmul.mubr.bf16.gmra.mrb[156].mxu0 %v10280_v60  ;;  %v1798_v19 = vmax.f32 %v1330_v26, %v1542_v55  ;;  %v1550_v33 = vmul.f32 0.2, %v1334_v47  ;;  %v8633_v26 = vld [vmem:[%s11497_s3 + $0x50c] ss:$16 sps:$4 sm:$0xff]  }
 0x1f2   : > { %4634 = vmatmul.mubr.bf16.gmra.mrb[172].mxu1 %v11633_v30  ;;  %4024 = vmatprep.mubr.bf16.mxu0 %v11634_v16  ;;  %v1799_v28 = vmax.f32 %v1332_v42, %v1543_v13  ;;  %v1551_v6 = vmul.f32 0.2, %v1336_v0  ;;  %v8580_v42 = vld [vmem:[%s11497_s3 + $0x600] ss:$16 sps:$4 sm:$0xff]   ;;  %v8588_v13 = vld [vmem:[%s11497_s3 + $0x624] ss:$16 sps:$4 sm:$0xff]  }
 0x1f3   : > { %4643 = vmatprep.mubr.bf16.mxu1 %v11635_v29  ;;  %v1806_v57 = vmax.f32 %v1334_v47, %v1550_v33  ;;  %4777 = vmatpush1.bf16.msra.mxu1 %v8619_v39  ;;  %v8631_v29 = vld [vmem:[%s11497_s3 + $0x508] ss:$16 sps:$4 sm:$0xff]  }
 0x1f4   : > { %v1807_v23 = vmax.f32 %v1336_v0, %v1551_v6  ;;  %v1339_v21 = vpop.f32.mrb[132].mxu1  ;;  %4778 = vmatprep.subr.bf16.mxu1 %v8627_v3  ;;  %v11638_v6 = vld [vmem:[#allocation15_spill] sm:$0xff] }
 0x1f5   : > { %v1340_v43 = vadd.f32 %v1339_v21, %v10240_v12  ;;  %v1341_v10 = vpop.f32.mrb[133].mxu1  ;;  %v10452_v55 = vpack.c.bf16 %v1806_v57, %v1798_v19  ;;  %v8636_v21 = vld [vmem:[%s11497_s3 + $0x52c] ss:$16 sps:$4 sm:$0xff]  }
 0x1f6   : > { %v1342_v47 = vadd.f32 %v1341_v10, %v10242_v24  ;;  %v1343_v58 = vpop.f32.mrb[134].mxu1  ;;  %v10458_v39 = vpack.c.bf16 %v1807_v23, %v1799_v28  ;;  %v11639_v28 = vld [vmem:[#allocation25_spill] sm:$0xff]  ;;  %v8586_v10 = vld [vmem:[%s11497_s3 + $0x620] ss:$16 sps:$4 sm:$0xff]  }
 0x1f7   : > { %11636 = vst [vmem:[#allocation10_spill] sm:$0xff] %v10452_v55  ;;  %v1558_v0 = vmul.f32 0.2, %v1340_v43  ;;  %v1344_v3 = vadd.f32 %v1343_v58, %v10240_v12  ;;  %v1345_v30 = vpop.f32.mrb[135].mxu1  ;;  %4779 = vmatpush1.bf16.msra.mxu1 %v8625_v35  ;;  %v11640_v35 = vld [vmem:[#allocation18_spill] sm:$0xff] }
 0x1f8   : > { %11637 = vst [vmem:[#allocation9_spill] sm:$0xff] %v10458_v39  ;;  %v1559_v19 = vmul.f32 0.2, %v1342_v47  ;;  %v1346_v33 = vadd.f32 %v1345_v30, %v10242_v24  ;;  %4780 = vmatprep.subr.bf16.mxu1 %v8633_v26  ;;  %v11641_v26 = vld [vmem:[#allocation31_spill] sm:$0xff] }
 0x1f9   : > { %4025 = vmatmul.mubr.bf16.vlgmr.msra.gmra.mrb[96].mxu0 %v11638_v6  ;;  %v1814_v57 = vmax.f32 %v1340_v43, %v1558_v0  ;;  %v1566_v23 = vmul.f32 0.2, %v1344_v3  ;;  %v8594_v43 = vld [vmem:[%s11497_s3 + $0x644] ss:$16 sps:$4 sm:$0xff]  }
 0x1fa   : > { %4644 = vmatmul.mubr.bf16.gmra.mrb[176].mxu1 %v11639_v28  ;;  %4186 = vmatpush1.bf16.msra.mxu0 %v8580_v42  ;;  %v1815_v58 = vmax.f32 %v1342_v47, %v1559_v19  ;;  %v1567_v30 = vmul.f32 0.2, %v1346_v33  ;;  %v8634_v42 = vld [vmem:[%s11497_s3 + $0x528] ss:$16 sps:$4 sm:$0xff]  }
 0x1fb   : > { %4034 = vmatprep.mubr.bf16.mxu0 %v11640_v35  ;;  %4653 = vmatprep.mubr.bf16.mxu1 %v11641_v26  ;;  %v1822_v0 = vmax.f32 %v1344_v3, %v1566_v23  ;;  %v11645_v26 = vld [vmem:[#allocation29_spill] sm:$0xff] }
 0x1fc   : > { %4187 = vmatprep.subr.bf16.mxu0 %v8588_v13  ;;  %v1823_v28 = vmax.f32 %v1346_v33, %v1567_v30  ;;  %v1349_v55 = vpop.f32.mrb[136].mxu1  ;;  %4781 = vmatpush1.bf16.msra.mxu1 %v8631_v29  ;;  %v8592_v13 = vld [vmem:[%s11497_s3 + $0x640] ss:$16 sps:$4 sm:$0xff]  }
 0x1fd   : > { %v1350_v39 = vadd.f32 %v1349_v55, %v10240_v12  ;;  %v1351_v34 = vpop.f32.mrb[137].mxu1  ;;  %4782 = vmatprep.subr.bf16.mxu1 %v8636_v21  ;;  %v10485_v47 = vpack.c.bf16 %v1822_v0, %v1814_v57  ;;  %v8642_v55 = vld [vmem:[%s11497_s3 + $0x54c] ss:$16 sps:$4 sm:$0xff]   ;;  %v8600_v57 = vld [vmem:[%s11497_s3 + $0x664] ss:$16 sps:$4 sm:$0xff]  }
 0x1fe   : > { %4188 = vmatpush1.bf16.msra.mxu0 %v8586_v10  ;;  %v1352_v3 = vadd.f32 %v1351_v34, %v10242_v24  ;;  %v1353_v19 = vpop.f32.mrb[138].mxu1  ;;  %v10491_v33 = vpack.c.bf16 %v1823_v28, %v1815_v58  ;;  %v8640_v34 = vld [vmem:[%s11497_s3 + $0x548] ss:$16 sps:$4 sm:$0xff]   ;;  %v8645_v28 = vld [vmem:[%s11497_s3 + $0x56c] ss:$16 sps:$4 sm:$0xff]  }
 0x1ff   : > { %11642 = vst [vmem:[#allocation11_spill] sm:$0xff] %v10485_v47  ;;  %4189 = vmatprep.subr.bf16.mxu0 %v8594_v43  ;;  %v1574_v29 = vmul.f32 0.2, %v1350_v39  ;;  %v1354_v23 = vadd.f32 %v1353_v19, %v10240_v12  ;;  %v1355_v30 = vpop.f32.mrb[139].mxu1  ;;  %v11644_v58 = vld [vmem:[#allocation17_spill] sm:$0xff]  ;;  %v11646_v19 = vld [vmem:[#allocation19_spill] sm:$0xff] }
 0x200   : > { %11643 = vst [vmem:[#allocation23_spill] sm:$0xff] %v10491_v33  ;;  %v1575_v21 = vmul.f32 0.2, %v1352_v3  ;;  %v1356_v10 = vadd.f32 %v1355_v30, %v10242_v24  ;;  %4783 = vmatpush1.bf16.msra.mxu1 %v8634_v42  ;;  %v8598_v47 = vld [vmem:[%s11497_s3 + $0x660] ss:$16 sps:$4 sm:$0xff]  }
 0x201   : > { %4035 = vmatmul.mubr.bf16.gmra.mrb[100].mxu0 %v11644_v58  ;;  %v1830_v43 = vmax.f32 %v1350_v39, %v1574_v29  ;;  %v1582_v0 = vmul.f32 0.2, %v1354_v23  ;;  %4784 = vmatprep.subr.bf16.mxu1 %v8642_v55  ;;  %v8606_v39 = vld [vmem:[%s11497_s3 + $0x684] ss:$16 sps:$4 sm:$0xff]  }
 0x202   : > { %4654 = vmatmul.mubr.bf16.gmra.mrb[180].mxu1 %v11645_v26  ;;  %4044 = vmatprep.mubr.bf16.mxu0 %v11646_v19  ;;  %v1831_v30 = vmax.f32 %v1352_v3, %v1575_v21  ;;  %v1583_v42 = vmul.f32 0.2, %v1356_v10 }
 0x203   : > { %4663 = vmatprep.mubr.bf16.mxu1 %v9941_v37  ;;  %4190 = vmatpush1.bf16.msra.mxu0 %v8592_v13  ;;  %v1838_v33 = vmax.f32 %v1354_v23, %v1582_v0  ;;  %v8643_v37 = vld [vmem:[%s11497_s3 + $0x568] ss:$16 sps:$4 sm:$0xff]   ;;  %v8604_v23 = vld [vmem:[%s11497_s3 + $0x680] ss:$16 sps:$4 sm:$0xff]  }
 0x204   : > { %4191 = vmatprep.subr.bf16.mxu0 %v8600_v57  ;;  %v1839_v29 = vmax.f32 %v1356_v10, %v1583_v42  ;;  %v1359_v26 = vpop.f32.mrb[140].mxu1  ;;  %4785 = vmatpush1.bf16.msra.mxu1 %v8640_v34 }
 0x205   : > { %v1360_v13 = vadd.f32 %v1359_v26, %v10240_v12  ;;  %v1361_v3 = vpop.f32.mrb[141].mxu1  ;;  %4786 = vmatprep.subr.bf16.mxu1 %v8645_v28  ;;  %v10521_v21 = vpack.c.bf16 %v1838_v33, %v1830_v43  ;;  %v8651_v28 = vld [vmem:[%s11497_s3 + $0x58c] ss:$16 sps:$4 sm:$0xff]   ;;  %v8612_v43 = vld [vmem:[%s11497_s3 + $0x6a4] ss:$16 sps:$4 sm:$0xff]  }
 0x206   : > { %v1362_v55 = vadd.f32 %v1361_v3, %v10242_v24  ;;  %v1363_v57 = vpop.f32.mrb[142].mxu1  ;;  %v10527_v10 = vpack.c.bf16 %v1839_v29, %v1831_v30  ;;  %v11649_v30 = vld [vmem:[#allocation20_spill] sm:$0xff] }
 0x207   : > { %11647 = vst [vmem:[#allocation21_spill] sm:$0xff] %v10521_v21  ;;  %4192 = vmatpush1.bf16.msra.mxu0 %v8598_v47  ;;  %v1590_v34 = vmul.f32 0.2, %v1360_v13  ;;  %v1364_v0 = vadd.f32 %v1363_v57, %v10240_v12  ;;  %v1365_v42 = vpop.f32.mrb[143].mxu1  ;;  %v8649_v47 = vld [vmem:[%s11497_s3 + $0x588] ss:$16 sps:$4 sm:$0xff]  }
 0x208   : > { %11648 = vst [vmem:[#allocation16_spill] sm:$0xff] %v10527_v10  ;;  %4193 = vmatprep.subr.bf16.mxu0 %v8606_v39  ;;  %v1591_v33 = vmul.f32 0.2, %v1362_v55  ;;  %v1366_v26 = vadd.f32 %v1365_v42, %v10242_v24  ;;  %4787 = vmatpush1.bf16.msra.mxu1 %v8643_v37  ;;  %v8654_v39 = vld [vmem:[%s11497_s3 + $0x5ac] ss:$16 sps:$4 sm:$0xff]   ;;  %v11650_v57 = vld [vmem:[#allocation24_spill] sm:$0xff] }
 0x209   : > { %4045 = vmatmul.mubr.bf16.gmra.mrb[104].mxu0 %v11649_v30  ;;  %v1846_v29 = vmax.f32 %v1360_v13, %v1590_v34  ;;  %v1598_v3 = vmul.f32 0.2, %v1364_v0  ;;  %v8610_v21 = vld [vmem:[%s11497_s3 + $0x6a0] ss:$16 sps:$4 sm:$0xff]   ;;  %4788 = vmatprep.subr.bf16.mxu1 %v8651_v28  ;;  %v8618_v34 = vld [vmem:[%s11497_s3 + $0x6c4] ss:$16 sps:$4 sm:$0xff]  }
 0x20a   : > { %4664 = vmatmul.mubr.bf16.gmra.mrb[184].mxu1 %v9932_v32  ;;  %4054 = vmatprep.mubr.bf16.mxu0 %v11650_v57  ;;  %v1847_v42 = vmax.f32 %v1362_v55, %v1591_v33  ;;  %v1599_v37 = vmul.f32 0.2, %v1366_v26  ;;  %v8616_v28 = vld [vmem:[%s11497_s3 + $0x6c0] ss:$16 sps:$4 sm:$0xff]  }
 0x20b   : > { %4673 = vmatprep.mubr.bf16.mxu1 %v9973_v27  ;;  %4194 = vmatpush1.bf16.msra.mxu0 %v8604_v23  ;;  %v1854_v10 = vmax.f32 %v1364_v0, %v1598_v3  ;;  %v8652_v27 = vld [vmem:[%s11497_s3 + $0x5a8] ss:$16 sps:$4 sm:$0xff]  }
 0x20c   : > { %4195 = vmatprep.subr.bf16.mxu0 %v8612_v43  ;;  %v1855_v32 = vmax.f32 %v1366_v26, %v1599_v37  ;;  %v1369_v13 = vpop.f32.mrb[144].mxu1  ;;  %4789 = vmatpush1.bf16.msra.mxu1 %v8649_v47 }
 0x20d   : > { %v1370_v23 = vadd.f32 %v1369_v13, %v10240_v12  ;;  %v1371_v55 = vpop.f32.mrb[145].mxu1  ;;  %4790 = vmatprep.subr.bf16.mxu1 %v8654_v39  ;;  %v10557_v33 = vpack.c.bf16 %v1854_v10, %v1846_v29  ;;  %v8660_v39 = vld [vmem:[%s11497_s3 + $0x5cc] ss:$16 sps:$4 sm:$0xff]   ;;  %v8624_v13 = vld [vmem:[%s11497_s3 + $0x6e4] ss:$16 sps:$4 sm:$0xff]  }
 0x20e   : > { %v1372_v0 = vadd.f32 %v1371_v55, %v10242_v24  ;;  %v1373_v43 = vpop.f32.mrb[146].mxu1  ;;  %v10563_v26 = vpack.c.bf16 %v1855_v32, %v1847_v42  ;;  %v11653_v42 = vld [vmem:[#allocation22_spill] sm:$0xff] }
 0x20f   : > { %11651 = vst [vmem:[#allocation27_spill] sm:$0xff] %v10557_v33  ;;  %4196 = vmatpush1.bf16.msra.mxu0 %v8610_v21  ;;  %v1606_v47 = vmul.f32 0.2, %v1370_v23  ;;  %v1374_v3 = vadd.f32 %v1373_v43, %v10240_v12  ;;  %v1375_v37 = vpop.f32.mrb[147].mxu1  ;;  %v8658_v21 = vld [vmem:[%s11497_s3 + $0x5c8] ss:$16 sps:$4 sm:$0xff]  }
 0x210   : > { %11652 = vst [vmem:[#allocation15_spill] sm:$0xff] %v10563_v26  ;;  %v1607_v10 = vmul.f32 0.2, %v1372_v0  ;;  %4197 = vmatprep.subr.bf16.mxu0 %v8618_v34  ;;  %v1376_v29 = vadd.f32 %v1375_v37, %v10242_v24  ;;  %4791 = vmatpush1.bf16.msra.mxu1 %v8652_v27  ;;  %v8663_v34 = vld [vmem:[%s11497_s3 + $0x5ec] ss:$16 sps:$4 sm:$0xff]   ;;  %v11654_v43 = vld [vmem:[#allocation28_spill] sm:$0xff] }
 0x211   : > { %4055 = vmatmul.mubr.bf16.gmra.mrb[108].mxu0 %v11653_v42  ;;  %v1862_v32 = vmax.f32 %v1370_v23, %v1606_v47  ;;  %v1614_v55 = vmul.f32 0.2, %v1374_v3  ;;  %v8622_v26 = vld [vmem:[%s11497_s3 + $0x6e0] ss:$16 sps:$4 sm:$0xff]   ;;  %4792 = vmatprep.subr.bf16.mxu1 %v8660_v39  ;;  %v8630_v47 = vld [vmem:[%s11497_s3 + $0x704] ss:$16 sps:$4 sm:$0xff]  }
 0x212   : > { %4674 = vmatmul.mubr.bf16.gmra.mrb[188].mxu1 %v9964_v22  ;;  %4064 = vmatprep.mubr.bf16.mxu0 %v11654_v43  ;;  %v1863_v37 = vmax.f32 %v1372_v0, %v1607_v10  ;;  %v1615_v27 = vmul.f32 0.2, %v1376_v29 }
 0x213   : > { %4683 = vmatprep.mubr.bf16.mxu1 %v10008_v49  ;;  %v1870_v33 = vmax.f32 %v1374_v3, %v1614_v55  ;;  %4198 = vmatpush1.bf16.msra.mxu0 %v8616_v28  ;;  %v8661_v49 = vld [vmem:[%s11497_s3 + $0x5e8] ss:$16 sps:$4 sm:$0xff]  }
 0x214   : > { %v1871_v22 = vmax.f32 %v1376_v29, %v1615_v27  ;;  %v1379_v23 = vpop.f32.mrb[148].mxu1  ;;  %4199 = vmatprep.subr.bf16.mxu0 %v8624_v13  ;;  %4793 = vmatpush1.bf16.msra.mxu1 %v8658_v21  ;;  %v8628_v29 = vld [vmem:[%s11497_s3 + $0x700] ss:$16 sps:$4 sm:$0xff]  }
 0x215   : > { %v1380_v0 = vadd.f32 %v1379_v23, %v10240_v12  ;;  %v1381_v28 = vpop.f32.mrb[149].mxu1  ;;  %4794 = vmatprep.subr.bf16.mxu1 %v8663_v34  ;;  %v10593_v3 = vpack.c.bf16 %v1870_v33, %v1862_v32  ;;  %v8678_v34 = vld [vmem:[%s11497_s3 + $0x60c] ss:$16 sps:$4 sm:$0xff]   ;;  %v8639_v23 = vld [vmem:[%s11497_s3 + $0x724] ss:$16 sps:$4 sm:$0xff]  }
 0x216   : > { %v1382_v39 = vadd.f32 %v1381_v28, %v10242_v24  ;;  %v1383_v10 = vpop.f32.mrb[150].mxu1  ;;  %v10599_v13 = vpack.c.bf16 %v1871_v22, %v1863_v37  ;;  %v11657_v37 = vld [vmem:[#allocation26_spill] sm:$0xff]  ;;  %v11658_v28 = vld [vmem:[#allocation32_spill] sm:$0xff] }
 0x217   : > { %11655 = vst [vmem:[#allocation25_spill] sm:$0xff] %v10593_v3  ;;  %v1622_v21 = vmul.f32 0.2, %v1380_v0  ;;  %v1384_v55 = vadd.f32 %v1383_v10, %v10240_v12  ;;  %4200 = vmatpush1.bf16.msra.mxu0 %v8622_v26  ;;  %v1385_v27 = vpop.f32.mrb[151].mxu1 }
 0x218   : > { %11656 = vst [vmem:[#allocation18_spill] sm:$0xff] %v10599_v13  ;;  %v1623_v33 = vmul.f32 0.2, %v1382_v39  ;;  %v1386_v32 = vadd.f32 %v1385_v27, %v10242_v24  ;;  %4201 = vmatprep.subr.bf16.mxu0 %v8630_v47  ;;  %4795 = vmatpush1.bf16.msra.mxu1 %v8661_v49  ;;  %v8637_v47 = vld [vmem:[%s11497_s3 + $0x720] ss:$16 sps:$4 sm:$0xff]  }
 0x219   : > { %4065 = vmatmul.mubr.bf16.gmra.mrb[112].mxu0 %v11657_v37  ;;  %v1878_v22 = vmax.f32 %v1380_v0, %v1622_v21  ;;  %v1630_v26 = vmul.f32 0.2, %v1384_v55  ;;  %4957 = vmatprep.subr.bf16.mxu1 %v8678_v34 }
 0x21a   : > { %4684 = vmatmul.mubr.bf16.gmra.mrb[192].mxu1 %v9996_v48  ;;  %4074 = vmatprep.mubr.bf16.mxu0 %v11658_v28  ;;  %v1879_v10 = vmax.f32 %v1382_v39, %v1623_v33  ;;  %v1631_v3 = vmul.f32 0.2, %v1386_v32  ;;  %v8648_v48 = vld [vmem:[%s11497_s3 + $0x744] ss:$16 sps:$4 sm:$0xff]  }
 0x21b   : > { %4693 = vmatprep.mubr.bf16.mxu1 %v10049_v46  ;;  %v1886_v13 = vmax.f32 %v1384_v55, %v1630_v26  ;;  %4202 = vmatpush1.bf16.msra.mxu0 %v8628_v29 }
 0x21c   : > { %v1887_v49 = vmax.f32 %v1386_v32, %v1631_v3  ;;  %v1389_v27 = vpop.f32.mrb[152].mxu1  ;;  %4203 = vmatprep.subr.bf16.mxu0 %v8639_v23  ;;  %v8646_v32 = vld [vmem:[%s11497_s3 + $0x740] ss:$16 sps:$4 sm:$0xff]  }
 0x21d   : > { %v1390_v0 = vadd.f32 %v1389_v27, %v10240_v12  ;;  %v1391_v21 = vpop.f32.mrb[153].mxu1  ;;  %v10620_v46 = vpack.c.bf16 %v1886_v13, %v1878_v22  ;;  %v8657_v13 = vld [vmem:[%s11497_s3 + $0x764] ss:$16 sps:$4 sm:$0xff]  }
 0x21e   : > { %v1392_v39 = vadd.f32 %v1391_v21, %v10242_v24  ;;  %v1393_v29 = vpop.f32.mrb[154].mxu1  ;;  %v10623_v55 = vpack.c.bf16 %v1887_v49, %v1879_v10  ;;  %v11661_v22 = vld [vmem:[#allocation30_spill] sm:$0xff] }
 0x21f   : > { %11659 = vst [vmem:[#allocation31_spill] sm:$0xff] %v10620_v46  ;;  %v1638_v33 = vmul.f32 0.2, %v1390_v0  ;;  %v1394_v34 = vadd.f32 %v1393_v29, %v10240_v12  ;;  %v1395_v3 = vpop.f32.mrb[155].mxu1  ;;  %4204 = vmatpush1.bf16.msra.mxu0 %v8637_v47  ;;  %v11662_v27 = vld [vmem:[#allocation34_spill] sm:$0xff] }
 0x220   : > { %11660 = vst [vmem:[#allocation17_spill] sm:$0xff] %v10623_v55  ;;  %v1639_v23 = vmul.f32 0.2, %v1392_v39  ;;  %v1396_v26 = vadd.f32 %v1395_v3, %v10242_v24  ;;  %4205 = vmatprep.subr.bf16.mxu0 %v8648_v48  ;;  %v8655_v48 = vld [vmem:[%s11497_s3 + $0x760] ss:$16 sps:$4 sm:$0xff]  }
 0x221   : > { %4075 = vmatmul.mubr.bf16.gmra.mrb[116].mxu0 %v11661_v22  ;;  %v1894_v10 = vmax.f32 %v1390_v0, %v1638_v33  ;;  %v1646_v49 = vmul.f32 0.2, %v1394_v34 }
 0x222   : > { %4694 = vmatmul.mubr.bf16.gmra.mrb[196].mxu1 %v10040_v4  ;;  %4084 = vmatprep.mubr.bf16.mxu0 %v11662_v27  ;;  %v1895_v47 = vmax.f32 %v1392_v39, %v1639_v23  ;;  %v1647_v21 = vmul.f32 0.2, %v1396_v26  ;;  %v8666_v4 = vld [vmem:[%s11497_s3 + $0x784] ss:$16 sps:$4 sm:$0xff]  }
 0x223   : > { %4703 = vmatprep.mubr.bf16.mxu1 %v10095_v25  ;;  %v1902_v29 = vmax.f32 %v1394_v34, %v1646_v49  ;;  %4206 = vmatpush1.bf16.msra.mxu0 %v8646_v32 }
 0x224   : > { %v1903_v3 = vmax.f32 %v1396_v26, %v1647_v21  ;;  %v1399_v46 = vpop.f32.mrb[156].mxu1  ;;  %4207 = vmatprep.subr.bf16.mxu0 %v8657_v13  ;;  %v8664_v13 = vld [vmem:[%s11497_s3 + $0x780] ss:$16 sps:$4 sm:$0xff]   ;;  %v11663_v21 = vld [vmem:[#allocation33_spill] sm:$0xff] }
 0x225   : > { %v1400_v0 = vadd.f32 %v1399_v46, %v10240_v12  ;;  %v1401_v33 = vpop.f32.mrb[157].mxu1  ;;  %v10644_v55 = vpack.c.bf16 %v1902_v29, %v1894_v10  ;;  %v8669_v10 = vld [vmem:[%s11497_s3 + $0x7a4] ss:$16 sps:$4 sm:$0xff]  }
 0x226   : > { %v1402_v25 = vadd.f32 %v1401_v33, %v10242_v24  ;;  %v1403_v39 = vpop.f32.mrb[158].mxu1  ;;  %v10647_v34 = vpack.c.bf16 %v1903_v3, %v1895_v47  ;;  %v11664_v29 = vld [vmem:[#allocation36_spill] sm:$0xff] }
 0x227   : > { %v1654_v32 = vmul.f32 0.2, %v1400_v0  ;;  %v1404_v23 = vadd.f32 %v1403_v39, %v10240_v12  ;;  %v1405_v26 = vpop.f32.mrb[159].mxu1  ;;  %4208 = vmatpush1.bf16.msra.mxu0 %v8655_v48 }
 0x228   : > { %v1655_v49 = vmul.f32 0.2, %v1402_v25  ;;  %v1406_v46 = vadd.f32 %v1405_v26, %v10242_v24  ;;  %4209 = vmatprep.subr.bf16.mxu0 %v8666_v4  ;;  %v8667_v24 = vld [vmem:[%s11497_s3 + $0x7a0] ss:$16 sps:$4 sm:$0xff]  }
 0x229   : > { %4085 = vmatmul.mubr.bf16.gmra.mrb[120].mxu0 %v11663_v21  ;;  %v1910_v47 = vmax.f32 %v1400_v0, %v1654_v32  ;;  %v1662_v12 = vmul.f32 0.2, %v1404_v23  ;;  %v11665_v32 = vld [vmem:[#allocation35_spill] sm:$0xff]  ;;  %v8673_v26 = vld [vmem:[%s11497_s3 + $0x7e0] ss:$16 sps:$4 sm:$0xff]  }
 0x22a   : > { %4704 = vmatmul.mubr.bf16.gmra.mrb[200].mxu1 %v10084_v63  ;;  %4094 = vmatprep.mubr.bf16.mxu0 %v11664_v29  ;;  %v1911_v48 = vmax.f32 %v1402_v25, %v1655_v49  ;;  %v1663_v3 = vmul.f32 0.2, %v1406_v46  ;;  %v8672_v63 = vld [vmem:[%s11497_s3 + $0x7c4] ss:$16 sps:$4 sm:$0xff]  }
 0x22b   : > { %4713 = vmatprep.mubr.bf16.mxu1 %v10141_v5  ;;  %v1918_v33 = vmax.f32 %v1404_v23, %v1662_v12  ;;  %4210 = vmatpush1.bf16.msra.mxu0 %v8664_v13  ;;  %v8670_v5 = vld [vmem:[%s11497_s3 + $0x7c0] ss:$16 sps:$4 sm:$0xff]   ;;  %v8675_v25 = vld [vmem:[%s11497_s3 + $0x7e4] ss:$16 sps:$4 sm:$0xff]   ;;  %v11667_v13 = vld [vmem:[#allocation37_spill] sm:$0xff] }
 0x22c   : > { %v1919_v4 = vmax.f32 %v1406_v46, %v1663_v3  ;;  %4211 = vmatprep.subr.bf16.mxu0 %v8669_v10  ;;  %v11666_v23 = vld [vmem:[#allocation38_spill] sm:$0xff]  ;;  %v11668_v49 = vld [vmem:[#allocation40_spill] sm:$0xff]  ;;  %v11671_v46 = vld [vmem:[#allocation41_spill] sm:$0xff] }
 0x22d   : > { %v10667_v0 = vpack.c.bf16 %v1918_v33, %v1910_v47  ;;  %v11672_v10 = vld [vmem:[#allocation14_spill] sm:$0xff]  ;;  %v8684_v47 = vld [vmem:[%s11497_s3 + $0x64c] ss:$16 sps:$4 sm:$0xff]   ;;  %v8682_v12 = vld [vmem:[%s11497_s3 + $0x648] ss:$16 sps:$4 sm:$0xff]  }
 0x22e   : > { %v10669_v39 = vpack.c.bf16 %v1919_v4, %v1911_v48  ;;  %v8685_v48 = vld [vmem:[%s11497_s3 + $0x668] ss:$16 sps:$4 sm:$0xff]   ;;  %v8690_v3 = vld [vmem:[%s11497_s3 + $0x68c] ss:$16 sps:$4 sm:$0xff]  }
 0x22f   : > { %4212 = vmatpush1.bf16.msra.mxu0 %v8667_v24  ;;  %v8688_v33 = vld [vmem:[%s11497_s3 + $0x688] ss:$16 sps:$4 sm:$0xff]   ;;  %v8696_v24 = vld [vmem:[%s11497_s3 + $0x6cc] ss:$16 sps:$4 sm:$0xff]  }
 0x230   : > { %4213 = vmatprep.subr.bf16.mxu0 %v8672_v63  ;;  %v8694_v4 = vld [vmem:[%s11497_s3 + $0x6c8] ss:$16 sps:$4 sm:$0xff]   ;;  %v8702_v63 = vld [vmem:[%s11497_s3 + $0x70c] ss:$16 sps:$4 sm:$0xff]  }
 0x231   : > { %4095 = vmatmul.mubr.bf16.gmra.mrb[124].mxu0 %v11665_v32 }
 0x232   : > { %4714 = vmatmul.mubr.bf16.gmra.mrb[204].mxu1 %v10132_v20  ;;  %4104 = vmatprep.mubr.bf16.mxu0 %v11666_v23  ;;  %v11669_v20 = vld [vmem:[#allocation39_spill] sm:$0xff] }
 0x233   : > { %4723 = vmatprep.mubr.bf16.mxu1 %v10182_v7  ;;  %4214 = vmatpush1.bf16.msra.mxu0 %v8670_v5  ;;  %v11670_v7 = vld [vmem:[#allocation42_spill] sm:$0xff]  ;;  %v8700_v5 = vld [vmem:[%s11497_s3 + $0x708] ss:$16 sps:$4 sm:$0xff]  }
 0x234   : > { %4215 = vmatprep.subr.bf16.mxu0 %v8675_v25  ;;  %v8729_v25 = vld [vmem:[%s11499_s5 + $0x14] ss:$8 sps:$4 sm:$0xff]  }
 0x237   : > { %4216 = vmatpush1.bf16.msra.mxu0 %v8673_v26  ;;  %v8703_v26 = vld [vmem:[%s11497_s3 + $0x728] ss:$16 sps:$4 sm:$0xff]  }
 0x239   : > { %4105 = vmatmul.mubr.bf16.gmra.mrb[128].mxu0 %v11667_v13 }
 0x23a   : > { %4724 = vmatmul.mubr.bf16.gmra.mrb[208].mxu1 %v10173_v41  ;;  %4114 = vmatprep.mubr.bf16.mxu0 %v11668_v49  ;;  %v11673_v41 = vld [vmem:[#allocation12_spill] sm:$0xff] }
 0x23b   : > { %4733 = vmatprep.mubr.bf16.mxu1 %v10219_v15  ;;  %v11674_v15 = vld [vmem:[#allocation6_spill] sm:$0xff] }
 0x241   : > { %4115 = vmatmul.mubr.bf16.gmra.mrb[132].mxu0 %v11669_v20 }
 0x242   : > { %4734 = vmatmul.mubr.bf16.gmra.mrb[212].mxu1 %v10210_v40  ;;  %4124 = vmatprep.mubr.bf16.mxu0 %v11670_v7  ;;  %v8726_v40 = vld [vmem:[%s11499_s5 + $0x4] ss:$8 sps:$4 sm:$0xff]  }
 0x243   : > { %4743 = vmatprep.mubr.bf16.mxu1 %v10258_v18  ;;  %5866 = vmatprep.subr.bf16.mxu0 %v8726_v40  ;;  %v8681_v18 = vld [vmem:[%s11497_s3 + $0x62c] ss:$16 sps:$4 sm:$0xff]   ;;  %v8727_v40 = vld [vmem:[%s11499_s5 + $0x10] ss:$8 sps:$4 sm:$0xff]  }
 0x249   : > { %4125 = vmatmul.mubr.bf16.gmra.mrb[136].mxu0 %v11671_v46 }
 0x24a   : > { %4744 = vmatmul.mubr.bf16.gmra.mrb[216].mxu1 %v10249_v31  ;;  %4134 = vmatprep.mubr.bf16.mxu0 %v11672_v10  ;;  %v8676_v31 = vld [vmem:[%s11497_s3 + $0x608] ss:$16 sps:$4 sm:$0xff]  }
 0x24b   : > { %4753 = vmatprep.mubr.bf16.mxu1 %v10285_v52  ;;  %v11675_v52 = vld [vmem:[#allocation13_spill] sm:$0xff] }
 0x251   : > { %4135 = vmatmul.mubr.bf16.gmra.mrb[140].mxu0 %v11673_v41 }
 0x252   : > { %4754 = vmatmul.mubr.bf16.gmra.mrb[220].mxu1 %v10280_v60  ;;  %4144 = vmatprep.mubr.bf16.mxu0 %v11674_v15  ;;  %v11676_v60 = vld [vmem:[#allocation8_spill] sm:$0xff] }
 0x253   : > { %4796 = vmatprep.mubr.bf16.mxu1 %v11634_v16  ;;  %v8679_v16 = vld [vmem:[%s11497_s3 + $0x628] ss:$16 sps:$4 sm:$0xff]  }
 0x259   : > { %4145 = vmatmul.mubr.bf16.gmra.mrb[144].mxu0 %v11675_v52 }
 0x25a   : > { %4797 = vmatmul.mubr.bf16.vlgmr.msra.gmra.mrb[160].mxu1 %v11638_v6  ;;  %4154 = vmatprep.mubr.bf16.mxu0 %v11676_v60  ;;  %v8687_v6 = vld [vmem:[%s11497_s3 + $0x66c] ss:$16 sps:$4 sm:$0xff]  }
 0x25b   : > { %4806 = vmatprep.mubr.bf16.mxu1 %v11640_v35  ;;  %4958 = vmatpush1.bf16.msra.mxu1 %v8676_v31  ;;  %v11677_v35 = vld [vmem:[#allocation5_spill] sm:$0xff] }
 0x25c   : > { %4959 = vmatprep.subr.bf16.mxu1 %v8681_v18  ;;  %v8708_v31 = vld [vmem:[%s11497_s3 + $0x74c] ss:$16 sps:$4 sm:$0xff]   ;;  %v8730_v18 = vld [vmem:[%s11499_s5 + $0x20] ss:$8 sps:$4 sm:$0xff]  }
 0x25f   : > { %4960 = vmatpush1.bf16.msra.mxu1 %v8679_v16  ;;  %v8711_v16 = vld [vmem:[%s11497_s3 + $0x76c] ss:$16 sps:$4 sm:$0xff]  }
 0x260   : > { %4961 = vmatprep.subr.bf16.mxu1 %v8684_v47  ;;  %v8735_v47 = vld [vmem:[%s11499_s5 + $0x34] ss:$8 sps:$4 sm:$0xff]  }
 0x261   : > { %4155 = vmatmul.mubr.bf16.gmra.mrb[148].mxu0 %v11677_v35 }
 0x262   : > { %4807 = vmatmul.mubr.bf16.gmra.mrb[164].mxu1 %v11644_v58  ;;  %4164 = vmatprep.mubr.bf16.mxu0 %v10260_v9  ;;  %v8693_v58 = vld [vmem:[%s11497_s3 + $0x6ac] ss:$16 sps:$4 sm:$0xff]  }
 0x263   : > { %4816 = vmatprep.mubr.bf16.mxu1 %v11646_v19  ;;  %4962 = vmatpush1.bf16.msra.mxu1 %v8682_v12  ;;  %v8691_v19 = vld [vmem:[%s11497_s3 + $0x6a8] ss:$16 sps:$4 sm:$0xff]  }
 0x264   : > { %4963 = vmatprep.subr.bf16.mxu1 %v8687_v6  ;;  %v8709_v12 = vld [vmem:[%s11497_s3 + $0x768] ss:$16 sps:$4 sm:$0xff]  }
 0x265   : > { %v8733_v6 = vld [vmem:[%s11499_s5 + $0x30] ss:$8 sps:$4 sm:$0xff]  }
 0x267   : > { %4964 = vmatpush1.bf16.msra.mxu1 %v8685_v48  ;;  %v8714_v48 = vld [vmem:[%s11497_s3 + $0x78c] ss:$16 sps:$4 sm:$0xff]  }
 0x268   : > { %4965 = vmatprep.subr.bf16.mxu1 %v8690_v3  ;;  %v8736_v3 = vld [vmem:[%s11499_s5 + $0x40] ss:$8 sps:$4 sm:$0xff]  }
 0x269   : > { %4165 = vmatmul.mubr.bf16.gmra.mrb[152].mxu0 %v10251_v11 }
 0x26a   : > { %4817 = vmatmul.mubr.bf16.gmra.mrb[168].mxu1 %v11649_v30  ;;  %4174 = vmatprep.mubr.bf16.mxu0 %v10287_v44  ;;  %v8699_v30 = vld [vmem:[%s11497_s3 + $0x6ec] ss:$16 sps:$4 sm:$0xff]  }
 0x26b   : > { %4826 = vmatprep.mubr.bf16.mxu1 %v11650_v57  ;;  %4966 = vmatpush1.bf16.msra.mxu1 %v8688_v33  ;;  %v8697_v57 = vld [vmem:[%s11497_s3 + $0x6e8] ss:$16 sps:$4 sm:$0xff]   ;;  %v8717_v33 = vld [vmem:[%s11497_s3 + $0x7ac] ss:$16 sps:$4 sm:$0xff]  }
 0x26c   : > { %4967 = vmatprep.subr.bf16.mxu1 %v8693_v58  ;;  %v8741_v58 = vld [vmem:[%s11499_s5 + $0x54] ss:$8 sps:$4 sm:$0xff]  }
 0x26f   : > { %4968 = vmatpush1.bf16.msra.mxu1 %v8691_v19  ;;  %v8715_v19 = vld [vmem:[%s11497_s3 + $0x7a8] ss:$16 sps:$4 sm:$0xff]  }
 0x270   : > { %4969 = vmatprep.subr.bf16.mxu1 %v8696_v24  ;;  %v8739_v24 = vld [vmem:[%s11499_s5 + $0x50] ss:$8 sps:$4 sm:$0xff]  }
 0x271   : > { %4175 = vmatmul.mubr.bf16.gmra.mrb[156].mxu0 %v10282_v1 }
 0x272   : > { %4827 = vmatmul.mubr.bf16.gmra.mrb[172].mxu1 %v11653_v42  ;;  %4217 = vmatprep.mubr.bf16.mxu0 %v10311_v56  ;;  %v8724_v42 = vld [vmem:[%s11499_s5] ss:$8 sps:$4 sm:$0xff]  }
 0x273   : > { %4836 = vmatprep.mubr.bf16.mxu1 %v11654_v43  ;;  %4970 = vmatpush1.bf16.msra.mxu1 %v8694_v4  ;;  %v8705_v43 = vld [vmem:[%s11497_s3 + $0x72c] ss:$16 sps:$4 sm:$0xff]  }
 0x274   : > { %4971 = vmatprep.subr.bf16.mxu1 %v8699_v30  ;;  %v8720_v4 = vld [vmem:[%s11497_s3 + $0x7cc] ss:$16 sps:$4 sm:$0xff]   ;;  %v8742_v30 = vld [vmem:[%s11499_s5 + $0x60] ss:$8 sps:$4 sm:$0xff]  }
 0x277   : > { %4972 = vmatpush1.bf16.msra.mxu1 %v8697_v57  ;;  %v8723_v57 = vld [vmem:[%s11497_s3 + $0x7ec] ss:$16 sps:$4 sm:$0xff]  }
 0x278   : > { %4973 = vmatprep.subr.bf16.mxu1 %v8702_v63  ;;  %v8747_v63 = vld [vmem:[%s11499_s5 + $0x74] ss:$8 sps:$4 sm:$0xff]  }
 0x279   : > { %4218 = vmatmul.mubr.bf16.vlgmr.msra.gmra.mrb[96].mxu0 %v10307_v59 }
 0x27a   : > { %4837 = vmatmul.mubr.bf16.gmra.mrb[176].mxu1 %v11657_v37  ;;  %4227 = vmatprep.mubr.bf16.mxu0 %v10323_v2  ;;  %v8732_v37 = vld [vmem:[%s11499_s5 + $0x24] ss:$8 sps:$4 sm:$0xff]  }
 0x27b   : > { %4846 = vmatprep.mubr.bf16.mxu1 %v11658_v28  ;;  %4974 = vmatpush1.bf16.msra.mxu1 %v8700_v5  ;;  %v8706_v28 = vld [vmem:[%s11497_s3 + $0x748] ss:$16 sps:$4 sm:$0xff]  }
 0x27c   : > { %5867 = vmatpush1.bf16.msra.mxu0 %v8724_v42  ;;  %4975 = vmatprep.subr.bf16.mxu1 %v8705_v43  ;;  %v8721_v5 = vld [vmem:[%s11497_s3 + $0x7e8] ss:$16 sps:$4 sm:$0xff]   ;;  %v8753_v43 = vld [vmem:[%s11499_s5 + $0x94] ss:$8 sps:$4 sm:$0xff]  }
 0x27d   : > { %5868 = vmatprep.subr.bf16.mxu0 %v8729_v25  ;;  %v8745_v42 = vld [vmem:[%s11499_s5 + $0x70] ss:$8 sps:$4 sm:$0xff]  }
 0x27e   : > { %v8751_v25 = vld [vmem:[%s11499_s5 + $0x90] ss:$8 sps:$4 sm:$0xff]  }
 0x27f   : > { %4976 = vmatpush1.bf16.msra.mxu1 %v8703_v26  ;;  %v11678_v26 = vld [vmem:[#allocation7_spill] sm:$0xff] }
 0x280   : > { %5869 = vmatpush1.bf16.msra.mxu0 %v8727_v40  ;;  %4977 = vmatprep.subr.bf16.mxu1 %v8708_v31  ;;  %v11679_v40 = vld [vmem:[#allocation9_spill] sm:$0xff]  ;;  %v11680_v31 = vld [vmem:[#allocation10_spill] sm:$0xff] }
 0x281   : > { %5870 = vmatprep.subr.bf16.mxu0 %v8732_v37  ;;  %4228 = vmatmul.mubr.bf16.gmra.mrb[100].mxu0 %v10320_v53  ;;  %v11681_v37 = vld [vmem:[#allocation23_spill] sm:$0xff] }
 0x282   : > { %4847 = vmatmul.mubr.bf16.gmra.mrb[180].mxu1 %v11661_v22  ;;  %4237 = vmatprep.mubr.bf16.mxu0 %v10335_v17  ;;  %v8738_v22 = vld [vmem:[%s11499_s5 + $0x44] ss:$8 sps:$4 sm:$0xff]  }
 0x283   : > { %4856 = vmatprep.mubr.bf16.mxu1 %v11662_v27  ;;  %4978 = vmatpush1.bf16.msra.mxu1 %v8706_v28  ;;  %v8712_v27 = vld [vmem:[%s11497_s3 + $0x788] ss:$16 sps:$4 sm:$0xff]  }
 0x284   : > { %5871 = vmatpush1.bf16.msra.mxu0 %v8730_v18  ;;  %4979 = vmatprep.subr.bf16.mxu1 %v8711_v16  ;;  %v11682_v28 = vld [vmem:[#allocation11_spill] sm:$0xff]  ;;  %v11683_v18 = vld [vmem:[#allocation16_spill] sm:$0xff]  ;;  %v11684_v16 = vld [vmem:[#allocation21_spill] sm:$0xff] }
 0x285   : > { %5872 = vmatprep.subr.bf16.mxu0 %v8735_v47  ;;  %v11685_v47 = vld [vmem:[#allocation15_spill] sm:$0xff] }
 0x287   : > { %4980 = vmatpush1.bf16.msra.mxu1 %v8709_v12  ;;  %v8771_v12 = vld [vmem:[%s11499_s5 + $0xf4] ss:$8 sps:$4 sm:$0xff]  }
 0x288   : > { %5873 = vmatpush1.bf16.msra.mxu0 %v8733_v6  ;;  %4981 = vmatprep.subr.bf16.mxu1 %v8714_v48  ;;  %v11688_v6 = vld [vmem:[#allocation25_spill] sm:$0xff] }
 0x289   : > { %5874 = vmatprep.subr.bf16.mxu0 %v8738_v22  ;;  %4238 = vmatmul.mubr.bf16.gmra.mrb[104].mxu0 %v10332_v14 }
 0x28a   : > { %4857 = vmatmul.mubr.bf16.gmra.mrb[184].mxu1 %v11663_v21  ;;  %4247 = vmatprep.mubr.bf16.mxu0 %v10347_v45  ;;  %v8744_v21 = vld [vmem:[%s11499_s5 + $0x64] ss:$8 sps:$4 sm:$0xff]  }
 0x28b   : > { %4866 = vmatprep.mubr.bf16.mxu1 %v11664_v29  ;;  %4982 = vmatpush1.bf16.msra.mxu1 %v8712_v27  ;;  %v8718_v29 = vld [vmem:[%s11497_s3 + $0x7c8] ss:$16 sps:$4 sm:$0xff]  }
 0x28c   : > { %5875 = vmatpush1.bf16.msra.mxu0 %v8736_v3  ;;  %4983 = vmatprep.subr.bf16.mxu1 %v8717_v33 }
 0x28d   : > { %5876 = vmatprep.subr.bf16.mxu0 %v8741_v58 }
 0x28f   : > { %4984 = vmatpush1.bf16.msra.mxu1 %v8715_v19 }
 0x290   : > { %5877 = vmatpush1.bf16.msra.mxu0 %v8739_v24  ;;  %4985 = vmatprep.subr.bf16.mxu1 %v8720_v4 }
 0x291   : > { %5878 = vmatprep.subr.bf16.mxu0 %v8744_v21  ;;  %4248 = vmatmul.mubr.bf16.gmra.mrb[108].mxu0 %v10344_v36 }
 0x292   : > { %4867 = vmatmul.mubr.bf16.gmra.mrb[188].mxu1 %v11665_v32  ;;  %4257 = vmatprep.mubr.bf16.mxu0 %v10359_v51  ;;  %v8750_v32 = vld [vmem:[%s11499_s5 + $0x84] ss:$8 sps:$4 sm:$0xff]  }
 0x293   : > { %4876 = vmatprep.mubr.bf16.mxu1 %v11666_v23  ;;  %4986 = vmatpush1.bf16.msra.mxu1 %v8718_v29  ;;  %v8748_v23 = vld [vmem:[%s11499_s5 + $0x80] ss:$8 sps:$4 sm:$0xff]  }
 0x294   : > { %5879 = vmatpush1.bf16.msra.mxu0 %v8742_v30  ;;  %4987 = vmatprep.subr.bf16.mxu1 %v8723_v57  ;;  %v8772_v30 = vld [vmem:[%s11499_s5 + $0x100] ss:$8 sps:$4 sm:$0xff]  }
 0x295   : > { %5880 = vmatprep.subr.bf16.mxu0 %v8747_v63 }
 0x297   : > { %4988 = vmatpush1.bf16.msra.mxu1 %v8721_v5  ;;  %v8777_v5 = vld [vmem:[%s11499_s5 + $0x114] ss:$8 sps:$4 sm:$0xff]  }
 0x298   : > { %5881 = vmatpush1.bf16.msra.mxu0 %v8745_v42 }
 0x299   : > { %5882 = vmatprep.subr.bf16.mxu0 %v8750_v32  ;;  %4258 = vmatmul.mubr.bf16.gmra.mrb[112].mxu0 %v10356_v8 }
 0x29a   : > { %4877 = vmatmul.mubr.bf16.gmra.mrb[192].mxu1 %v11667_v13  ;;  %4267 = vmatprep.mubr.bf16.mxu0 %v10383_v62  ;;  %v8754_v13 = vld [vmem:[%s11499_s5 + $0xa0] ss:$8 sps:$4 sm:$0xff]  }
 0x29b   : > { %4886 = vmatprep.mubr.bf16.mxu1 %v11668_v49  ;;  %v8756_v49 = vld [vmem:[%s11499_s5 + $0xa4] ss:$8 sps:$4 sm:$0xff]  }
 0x29c   : > { %5883 = vmatpush1.bf16.msra.mxu0 %v8748_v23 }
 0x29d   : > { %5884 = vmatprep.subr.bf16.mxu0 %v8753_v43 }
 0x2a0   : > { %5885 = vmatpush1.bf16.msra.mxu0 %v8751_v25  ;;  %v8775_v25 = vld [vmem:[%s11499_s5 + $0x110] ss:$8 sps:$4 sm:$0xff]  }
 0x2a1   : > { %4268 = vmatmul.mubr.bf16.gmra.mrb[116].mxu0 %v10380_v50  ;;  %5886 = vmatprep.subr.bf16.mxu0 %v8756_v49 }
 0x2a2   : > { %4887 = vmatmul.mubr.bf16.gmra.mrb[196].mxu1 %v11669_v20  ;;  %4277 = vmatprep.mubr.bf16.mxu0 %v10407_v38  ;;  %v8757_v20 = vld [vmem:[%s11499_s5 + $0xb0] ss:$8 sps:$4 sm:$0xff]  }
 0x2a3   : > { %4896 = vmatprep.mubr.bf16.mxu1 %v11670_v7  ;;  %v8759_v7 = vld [vmem:[%s11499_s5 + $0xb4] ss:$8 sps:$4 sm:$0xff]  }
 0x2a4   : > { %5887 = vmatpush1.bf16.msra.mxu0 %v8754_v13 }
 0x2a5   : > { %5888 = vmatprep.subr.bf16.mxu0 %v8759_v7 }
 0x2a8   : > { %5889 = vmatpush1.bf16.msra.mxu0 %v8757_v20  ;;  %v8780_v20 = vld [vmem:[%s11499_s5 + $0x124] ss:$8 sps:$4 sm:$0xff]  }
 0x2a9   : > { %4278 = vmatmul.mubr.bf16.gmra.mrb[120].mxu0 %v10404_v61 }
 0x2aa   : > { %4897 = vmatmul.mubr.bf16.gmra.mrb[200].mxu1 %v11671_v46  ;;  %4287 = vmatprep.mubr.bf16.mxu0 %v10431_v54  ;;  %v8760_v46 = vld [vmem:[%s11499_s5 + $0xc0] ss:$8 sps:$4 sm:$0xff]  }
 0x2ab   : > { %4906 = vmatprep.mubr.bf16.mxu1 %v11672_v10  ;;  %v8762_v10 = vld [vmem:[%s11499_s5 + $0xc4] ss:$8 sps:$4 sm:$0xff]  }
 0x2ac   : > { %5890 = vmatprep.subr.bf16.mxu0 %v8762_v10 }
 0x2ad   : > { %5891 = vmatpush1.bf16.msra.mxu0 %v8760_v46 }
 0x2b1   : > { %4288 = vmatmul.mubr.bf16.gmra.mrb[124].mxu0 %v11678_v26 }
 0x2b2   : > { %4907 = vmatmul.mubr.bf16.gmra.mrb[204].mxu1 %v11673_v41  ;;  %4297 = vmatprep.mubr.bf16.mxu0 %v11679_v40  ;;  %v8763_v41 = vld [vmem:[%s11499_s5 + $0xd0] ss:$8 sps:$4 sm:$0xff]  }
 0x2b3   : > { %4916 = vmatprep.mubr.bf16.mxu1 %v11674_v15  ;;  %v8765_v15 = vld [vmem:[%s11499_s5 + $0xd4] ss:$8 sps:$4 sm:$0xff]  }
 0x2b4   : > { %5892 = vmatprep.subr.bf16.mxu0 %v8765_v15 }
 0x2b5   : > { %5893 = vmatpush1.bf16.msra.mxu0 %v8763_v41 }
 0x2b9   : > { %4298 = vmatmul.mubr.bf16.gmra.mrb[128].mxu0 %v11680_v31 }
 0x2ba   : > { %4917 = vmatmul.mubr.bf16.gmra.mrb[208].mxu1 %v11675_v52  ;;  %4307 = vmatprep.mubr.bf16.mxu0 %v11681_v37  ;;  %v8766_v52 = vld [vmem:[%s11499_s5 + $0xe0] ss:$8 sps:$4 sm:$0xff]  }
 0x2bb   : > { %4926 = vmatprep.mubr.bf16.mxu1 %v11676_v60  ;;  %v8768_v60 = vld [vmem:[%s11499_s5 + $0xe4] ss:$8 sps:$4 sm:$0xff]  }
 0x2bc   : > { %5894 = vmatprep.subr.bf16.mxu0 %v8768_v60 }
 0x2bd   : > { %5895 = vmatpush1.bf16.msra.mxu0 %v8766_v52 }
 0x2be   : > { %5896 = vmatprep.subr.bf16.mxu0 %v8771_v12 }
 0x2c1   : > { %4308 = vmatmul.mubr.bf16.gmra.mrb[132].mxu0 %v11682_v28 }
 0x2c2   : > { %4927 = vmatmul.mubr.bf16.gmra.mrb[212].mxu1 %v11677_v35  ;;  %4317 = vmatprep.mubr.bf16.mxu0 %v11683_v18  ;;  %v11686_v35 = vld [vmem:[#allocation27_spill] sm:$0xff] }
 0x2c3   : > { %4936 = vmatprep.mubr.bf16.mxu1 %v10260_v9  ;;  %v11687_v9 = vld [vmem:[#allocation18_spill] sm:$0xff] }
 0x2c9   : > { %4318 = vmatmul.mubr.bf16.gmra.mrb[136].mxu0 %v11684_v16 }
 0x2ca   : > { %4937 = vmatmul.mubr.bf16.gmra.mrb[216].mxu1 %v10251_v11  ;;  %4327 = vmatprep.mubr.bf16.mxu0 %v11685_v47  ;;  %v8769_v11 = vld [vmem:[%s11499_s5 + $0xf0] ss:$8 sps:$4 sm:$0xff]  }
 0x2cb   : > { %4946 = vmatprep.mubr.bf16.mxu1 %v10287_v44  ;;  %5897 = vmatpush1.bf16.msra.mxu0 %v8769_v11  ;;  %v11689_v44 = vld [vmem:[#allocation17_spill] sm:$0xff] }
 0x2cc   : > { %v8781_v11 = vld [vmem:[%s11499_s5 + $0x130] ss:$8 sps:$4 sm:$0xff]  }
 0x2d1   : > { %4328 = vmatmul.mubr.bf16.gmra.mrb[140].mxu0 %v11686_v35 }
 0x2d2   : > { %4947 = vmatmul.mubr.bf16.gmra.mrb[220].mxu1 %v10282_v1  ;;  %4337 = vmatprep.mubr.bf16.mxu0 %v11687_v9  ;;  %v8774_v1 = vld [vmem:[%s11499_s5 + $0x104] ss:$8 sps:$4 sm:$0xff]  }
 0x2d3   : > { %4989 = vmatprep.mubr.bf16.mxu1 %v10311_v56  ;;  %6059 = vmatprep.subr.bf16.mxu0 %v8774_v1  ;;  %v11690_v56 = vld [vmem:[#allocation31_spill] sm:$0xff] }
 0x2d4   : > { %v8786_v1 = vld [vmem:[%s11499_s5 + $0x144] ss:$8 sps:$4 sm:$0xff]  }
 0x2d9   : > { %4338 = vmatmul.mubr.bf16.gmra.mrb[144].mxu0 %v11688_v6 }
 0x2da   : > { %4990 = vmatmul.mubr.bf16.vlgmr.msra.gmra.mrb[160].mxu1 %v10307_v59  ;;  %4347 = vmatprep.mubr.bf16.mxu0 %v11689_v44  ;;  %v10994_v59 = vld [vmem:[%s11498_s4] sm:$0xf] }
 0x2db   : > { %4999 = vmatprep.mubr.bf16.mxu1 %v10323_v2 }
 0x2e1   : > { %4348 = vmatmul.mubr.bf16.gmra.mrb[148].mxu0 %v11690_v56 }
 0x2e2   : > { %5000 = vmatmul.mubr.bf16.gmra.mrb[164].mxu1 %v10320_v53  ;;  %4357 = vmatprep.mubr.bf16.mxu0 %v10647_v34  ;;  %v11691_v53 = vld [vmem:[#allocation3_spill] sm:$0xff] }
 0x2e3   : > { %5009 = vmatprep.mubr.bf16.mxu1 %v10335_v17  ;;  %v10999_v2 = vrot.slane %v10994_v59, %v11691_v53 }
 0x2e9   : > { %4358 = vmatmul.mubr.bf16.gmra.mrb[152].mxu0 %v10644_v55 }
 0x2ea   : > { %5010 = vmatmul.mubr.bf16.gmra.mrb[168].mxu1 %v10332_v14  ;;  %4367 = vmatprep.mubr.bf16.mxu0 %v10669_v39  ;;  %v11692_v14 = vld [vmem:[#allocation4_spill] sm:$0xff] }
 0x2eb   : > { %5019 = vmatprep.mubr.bf16.mxu1 %v10347_v45  ;;  %v11004_v17 = vrot.slane %v10994_v59, %v11692_v14 }
 0x2f1   : > { %4368 = vmatmul.mubr.bf16.gmra.mrb[156].mxu0 %v10667_v0 }
 0x2f2   : > { %5020 = vmatmul.mubr.bf16.gmra.mrb[172].mxu1 %v10344_v36 }
 0x2f3   : > { %5029 = vmatprep.mubr.bf16.mxu1 %v10359_v51 }
 0x2fa   : > { %5030 = vmatmul.mubr.bf16.gmra.mrb[176].mxu1 %v10356_v8 }
 0x2fb   : > { %5039 = vmatprep.mubr.bf16.mxu1 %v10383_v62 }
 0x302   : > { %5040 = vmatmul.mubr.bf16.gmra.mrb[180].mxu1 %v10380_v50 }
 0x303   : > { %5049 = vmatprep.mubr.bf16.mxu1 %v10407_v38 }
 0x30a   : > { %5050 = vmatmul.mubr.bf16.gmra.mrb[184].mxu1 %v10404_v61 }
 0x30b   : > { %5059 = vmatprep.mubr.bf16.mxu1 %v10431_v54 }
 0x312   : > { %5060 = vmatmul.mubr.bf16.gmra.mrb[188].mxu1 %v11678_v26 }
 0x313   : > { %5069 = vmatprep.mubr.bf16.mxu1 %v11679_v40 }
 0x31a   : > { %5070 = vmatmul.mubr.bf16.gmra.mrb[192].mxu1 %v11680_v31 }
 0x31b   : > { %5079 = vmatprep.mubr.bf16.mxu1 %v11681_v37 }
 0x322   : > { %5080 = vmatmul.mubr.bf16.gmra.mrb[196].mxu1 %v11682_v28  ;;  %v8778_v28 = vld [vmem:[%s11499_s5 + $0x120] ss:$8 sps:$4 sm:$0xff]  }
 0x323   : > { %5089 = vmatprep.mubr.bf16.mxu1 %v11683_v18 }
 0x32a   : > { %5090 = vmatmul.mubr.bf16.gmra.mrb[200].mxu1 %v11684_v16  ;;  %v8783_v16 = vld [vmem:[%s11499_s5 + $0x134] ss:$8 sps:$4 sm:$0xff]  }
 0x32b   : > { %5099 = vmatprep.mubr.bf16.mxu1 %v11685_v47 }
 0x332   : > { %5100 = vmatmul.mubr.bf16.gmra.mrb[204].mxu1 %v11686_v35 }
 0x333   : > { %5109 = vmatprep.mubr.bf16.mxu1 %v11687_v9 }
 0x33a   : > { %5110 = vmatmul.mubr.bf16.gmra.mrb[208].mxu1 %v11688_v6 }
 0x33b   : > { %5119 = vmatprep.mubr.bf16.mxu1 %v11689_v44 }
 0x342   : > { %5120 = vmatmul.mubr.bf16.gmra.mrb[212].mxu1 %v11690_v56 }
 0x343   : > { %5129 = vmatprep.mubr.bf16.mxu1 %v10647_v34 }
 0x34a   : > { %5130 = vmatmul.mubr.bf16.gmra.mrb[216].mxu1 %v10644_v55 }
 0x34b   : > { %5139 = vmatprep.mubr.bf16.mxu1 %v10669_v39 }
 0x34c   : > { %v4219_v36 = vpop.f32.mrb[96].mxu0 }
 0x34d   : > { %v7675_v45 = vadd.f32 %v4219_v36, %v10999_v2  ;;  %v4221_v8 = vpop.f32.mrb[97].mxu0 }
 0x34e   : > { %v7676_v51 = vadd.f32 %v4221_v8, %v11004_v17  ;;  %v4223_v50 = vpop.f32.mrb[98].mxu0 }
 0x34f   : > { %v5150_v62 = vmul.f32 0.2, %v7675_v45  ;;  %v7677_v61 = vadd.f32 %v4223_v50, %v10999_v2  ;;  %v4225_v38 = vpop.f32.mrb[99].mxu0 }
 0x350   : > { %v5151_v54 = vmul.f32 0.2, %v7676_v51  ;;  %v7678_v55 = vadd.f32 %v4225_v38, %v11004_v17 }
 0x351   : > { %v5154_v34 = vmul.f32 0.2, %v7677_v61  ;;  %v5278_v48 = vmax.f32 %v7675_v45, %v5150_v62 }
 0x352   : > { %5140 = vmatmul.mubr.bf16.gmra.mrb[220].mxu1 %v10667_v0  ;;  %v5155_v39 = vmul.f32 0.2, %v7678_v55  ;;  %v5279_v27 = vmax.f32 %v7676_v51, %v5151_v54  ;;  %v8784_v54 = vld [vmem:[%s11499_s5 + $0x140] ss:$8 sps:$4 sm:$0xff]  }
 0x353   : > { %v5282_v22 = vmax.f32 %v7677_v61, %v5154_v34 }
 0x354   : > { %v5283_v3 = vmax.f32 %v7678_v55, %v5155_v39  ;;  %v4229_v33 = vpop.f32.mrb[100].mxu0 }
 0x355   : > { %v5406_v58 = vpack.c.bf16 %v5282_v22, %v5278_v48  ;;  %v7679_v19 = vadd.f32 %v4229_v33, %v10999_v2  ;;  %v4231_v24 = vpop.f32.mrb[101].mxu0  ;;  %v8789_v48 = vld [vmem:[%s11499_s5 + $0x154] ss:$8 sps:$4 sm:$0xff]  }
 0x356   : > { %v7680_v4 = vadd.f32 %v4231_v24, %v11004_v17  ;;  %v4233_v21 = vpop.f32.mrb[102].mxu0  ;;  %v5407_v29 = vpack.c.bf16 %v5283_v3, %v5279_v27 }
 0x357   : > { %v5158_v57 = vmul.f32 0.2, %v7679_v19  ;;  %v7681_v0 = vadd.f32 %v4233_v21, %v10999_v2  ;;  %v4235_v63 = vpop.f32.mrb[103].mxu0 }
 0x358   : > { %v5159_v42 = vmul.f32 0.2, %v7680_v4  ;;  %v7682_v32 = vadd.f32 %v4235_v63, %v11004_v17  ;;  %5898 = vmatprep.mubr.bf16.mxu0 %v5407_v29 }
 0x359   : > { %v5162_v23 = vmul.f32 0.2, %v7681_v0  ;;  %5899 = vmatmul.mubr.bf16.vlgmr.msra.gmra.mrb[160].mxu0 %v5406_v58  ;;  %v5286_v13 = vmax.f32 %v7679_v19, %v5158_v57  ;;  %v8787_v58 = vld [vmem:[%s11499_s5 + $0x150] ss:$8 sps:$4 sm:$0xff]  }
 0x35a   : > { %v5163_v43 = vmul.f32 0.2, %v7682_v32  ;;  %6060 = vmatpush1.bf16.msra.mxu0 %v8772_v30  ;;  %v5287_v7 = vmax.f32 %v7680_v4, %v5159_v42  ;;  %v8792_v4 = vld [vmem:[%s11499_s5 + $0x164] ss:$8 sps:$4 sm:$0xff]  }
 0x35b   : > { %v5290_v49 = vmax.f32 %v7681_v0, %v5162_v23  ;;  %6061 = vmatprep.subr.bf16.mxu0 %v8777_v5  ;;  %v8790_v23 = vld [vmem:[%s11499_s5 + $0x160] ss:$8 sps:$4 sm:$0xff]  }
 0x35c   : > { %v5291_v26 = vmax.f32 %v7682_v32, %v5163_v43  ;;  %v4239_v40 = vpop.f32.mrb[104].mxu0 }
 0x35d   : > { %v7683_v46 = vadd.f32 %v4239_v40, %v10999_v2  ;;  %v4241_v10 = vpop.f32.mrb[105].mxu0  ;;  %v5410_v31 = vpack.c.bf16 %v5290_v49, %v5286_v13  ;;  %v8795_v49 = vld [vmem:[%s11499_s5 + $0x174] ss:$8 sps:$4 sm:$0xff]  }
 0x35e   : > { %v7684_v37 = vadd.f32 %v4241_v10, %v11004_v17  ;;  %v4243_v41 = vpop.f32.mrb[106].mxu0  ;;  %v5411_v15 = vpack.c.bf16 %v5291_v26, %v5287_v7  ;;  %6062 = vmatpush1.bf16.msra.mxu0 %v8775_v25 }
 0x35f   : > { %v5166_v18 = vmul.f32 0.2, %v7683_v46  ;;  %v7685_v52 = vadd.f32 %v4243_v41, %v10999_v2  ;;  %v4245_v60 = vpop.f32.mrb[107].mxu0  ;;  %6063 = vmatprep.subr.bf16.mxu0 %v8780_v20 }
 0x360   : > { %v5167_v47 = vmul.f32 0.2, %v7684_v37  ;;  %v7686_v35 = vadd.f32 %v4245_v60, %v11004_v17  ;;  %5908 = vmatprep.mubr.bf16.mxu0 %v5411_v15 }
 0x361   : > { %v5170_v9 = vmul.f32 0.2, %v7685_v52  ;;  %5909 = vmatmul.mubr.bf16.gmra.mrb[164].mxu0 %v5410_v31  ;;  %v5294_v6 = vmax.f32 %v7683_v46, %v5166_v18  ;;  %v8793_v46 = vld [vmem:[%s11499_s5 + $0x170] ss:$8 sps:$4 sm:$0xff]  }
 0x362   : > { %v5171_v12 = vmul.f32 0.2, %v7686_v35  ;;  %6064 = vmatpush1.bf16.msra.mxu0 %v8778_v28  ;;  %v5295_v56 = vmax.f32 %v7684_v37, %v5167_v47  ;;  %v8798_v37 = vld [vmem:[%s11499_s5 + $0x184] ss:$8 sps:$4 sm:$0xff]  }
 0x363   : > { %v5298_v44 = vmax.f32 %v7685_v52, %v5170_v9  ;;  %6065 = vmatprep.subr.bf16.mxu0 %v8783_v16  ;;  %v8796_v9 = vld [vmem:[%s11499_s5 + $0x180] ss:$8 sps:$4 sm:$0xff]  }
 0x364   : > { %v5299_v36 = vmax.f32 %v7686_v35, %v5171_v12  ;;  %v4249_v45 = vpop.f32.mrb[108].mxu0 }
 0x365   : > { %v7687_v8 = vadd.f32 %v4249_v45, %v10999_v2  ;;  %v4251_v51 = vpop.f32.mrb[109].mxu0  ;;  %v5414_v50 = vpack.c.bf16 %v5298_v44, %v5294_v6  ;;  %v8801_v44 = vld [vmem:[%s11499_s5 + $0x194] ss:$8 sps:$4 sm:$0xff]  }
 0x366   : > { %v7688_v62 = vadd.f32 %v4251_v51, %v11004_v17  ;;  %v4253_v61 = vpop.f32.mrb[110].mxu0  ;;  %v5415_v38 = vpack.c.bf16 %v5299_v36, %v5295_v56  ;;  %6066 = vmatpush1.bf16.msra.mxu0 %v8781_v11 }
 0x367   : > { %v5174_v55 = vmul.f32 0.2, %v7687_v8  ;;  %v7689_v34 = vadd.f32 %v4253_v61, %v10999_v2  ;;  %v4255_v39 = vpop.f32.mrb[111].mxu0  ;;  %6067 = vmatprep.subr.bf16.mxu0 %v8786_v1 }
 0x368   : > { %v5175_v22 = vmul.f32 0.2, %v7688_v62  ;;  %v7690_v27 = vadd.f32 %v4255_v39, %v11004_v17  ;;  %5918 = vmatprep.mubr.bf16.mxu0 %v5415_v38 }
 0x369   : > { %v5178_v3 = vmul.f32 0.2, %v7689_v34  ;;  %5919 = vmatmul.mubr.bf16.gmra.mrb[168].mxu0 %v5414_v50  ;;  %v5302_v19 = vmax.f32 %v7687_v8, %v5174_v55  ;;  %v8799_v8 = vld [vmem:[%s11499_s5 + $0x190] ss:$8 sps:$4 sm:$0xff]  }
 0x36a   : > { %v5179_v33 = vmul.f32 0.2, %v7690_v27  ;;  %6068 = vmatpush1.bf16.msra.mxu0 %v8784_v54  ;;  %v5303_v21 = vmax.f32 %v7688_v62, %v5175_v22  ;;  %v8804_v62 = vld [vmem:[%s11499_s5 + $0x1a4] ss:$8 sps:$4 sm:$0xff]  }
 0x36b   : > { %v5306_v24 = vmax.f32 %v7689_v34, %v5178_v3  ;;  %6069 = vmatprep.subr.bf16.mxu0 %v8789_v48  ;;  %v8802_v3 = vld [vmem:[%s11499_s5 + $0x1a0] ss:$8 sps:$4 sm:$0xff]  }
 0x36c   : > { %v5307_v29 = vmax.f32 %v7690_v27, %v5179_v33  ;;  %v4259_v30 = vpop.f32.mrb[112].mxu0 }
 0x36d   : > { %v7691_v57 = vadd.f32 %v4259_v30, %v10999_v2  ;;  %v4261_v0 = vpop.f32.mrb[113].mxu0  ;;  %v5418_v63 = vpack.c.bf16 %v5306_v24, %v5302_v19  ;;  %v8807_v24 = vld [vmem:[%s11499_s5 + $0x1b4] ss:$8 sps:$4 sm:$0xff]  }
 0x36e   : > { %v7692_v5 = vadd.f32 %v4261_v0, %v11004_v17  ;;  %v4263_v42 = vpop.f32.mrb[114].mxu0  ;;  %v5419_v32 = vpack.c.bf16 %v5307_v29, %v5303_v21  ;;  %6070 = vmatpush1.bf16.msra.mxu0 %v8787_v58 }
 0x36f   : > { %v5182_v43 = vmul.f32 0.2, %v7691_v57  ;;  %v7693_v25 = vadd.f32 %v4263_v42, %v10999_v2  ;;  %v4265_v13 = vpop.f32.mrb[115].mxu0  ;;  %6071 = vmatprep.subr.bf16.mxu0 %v8792_v4 }
 0x370   : > { %v5183_v20 = vmul.f32 0.2, %v7692_v5  ;;  %v7694_v7 = vadd.f32 %v4265_v13, %v11004_v17  ;;  %5928 = vmatprep.mubr.bf16.mxu0 %v5419_v32 }
 0x371   : > { %v5186_v26 = vmul.f32 0.2, %v7693_v25  ;;  %5929 = vmatmul.mubr.bf16.gmra.mrb[172].mxu0 %v5418_v63  ;;  %v5310_v10 = vmax.f32 %v7691_v57, %v5182_v43  ;;  %v8805_v57 = vld [vmem:[%s11499_s5 + $0x1b0] ss:$8 sps:$4 sm:$0xff]  }
 0x372   : > { %v5187_v40 = vmul.f32 0.2, %v7694_v7  ;;  %6072 = vmatpush1.bf16.msra.mxu0 %v8790_v23  ;;  %v5311_v41 = vmax.f32 %v7692_v5, %v5183_v20  ;;  %v8810_v5 = vld [vmem:[%s11499_s5 + $0x1c4] ss:$8 sps:$4 sm:$0xff]  }
 0x373   : > { %v5314_v31 = vmax.f32 %v7693_v25, %v5186_v26  ;;  %6073 = vmatprep.subr.bf16.mxu0 %v8795_v49  ;;  %v8808_v26 = vld [vmem:[%s11499_s5 + $0x1c0] ss:$8 sps:$4 sm:$0xff]  }
 0x374   : > { %v5315_v15 = vmax.f32 %v7694_v7, %v5187_v40  ;;  %v4269_v28 = vpop.f32.mrb[116].mxu0 }
 0x375   : > { %v7695_v18 = vadd.f32 %v4269_v28, %v10999_v2  ;;  %v4271_v52 = vpop.f32.mrb[117].mxu0  ;;  %v5422_v60 = vpack.c.bf16 %v5314_v31, %v5310_v10  ;;  %v8813_v31 = vld [vmem:[%s11499_s5 + $0x1d4] ss:$8 sps:$4 sm:$0xff]  }
 0x376   : > { %v7696_v16 = vadd.f32 %v4271_v52, %v11004_v17  ;;  %v4273_v47 = vpop.f32.mrb[118].mxu0  ;;  %v5423_v35 = vpack.c.bf16 %v5315_v15, %v5311_v41  ;;  %6074 = vmatpush1.bf16.msra.mxu0 %v8793_v46 }
 0x377   : > { %v5190_v12 = vmul.f32 0.2, %v7695_v18  ;;  %v7697_v11 = vadd.f32 %v4273_v47, %v10999_v2  ;;  %v4275_v6 = vpop.f32.mrb[119].mxu0  ;;  %6075 = vmatprep.subr.bf16.mxu0 %v8798_v37 }
 0x378   : > { %v5191_v1 = vmul.f32 0.2, %v7696_v16  ;;  %v7698_v56 = vadd.f32 %v4275_v6, %v11004_v17  ;;  %5938 = vmatprep.mubr.bf16.mxu0 %v5423_v35 }
 0x379   : > { %v5194_v36 = vmul.f32 0.2, %v7697_v11  ;;  %5939 = vmatmul.mubr.bf16.gmra.mrb[176].mxu0 %v5422_v60  ;;  %v5318_v51 = vmax.f32 %v7695_v18, %v5190_v12  ;;  %v8811_v18 = vld [vmem:[%s11499_s5 + $0x1d0] ss:$8 sps:$4 sm:$0xff]  }
 0x37a   : > { %v5195_v45 = vmul.f32 0.2, %v7698_v56  ;;  %6076 = vmatpush1.bf16.msra.mxu0 %v8796_v9  ;;  %v5319_v61 = vmax.f32 %v7696_v16, %v5191_v1  ;;  %v8816_v16 = vld [vmem:[%s11499_s5 + $0x1e4] ss:$8 sps:$4 sm:$0xff]  }
 0x37b   : > { %v5322_v50 = vmax.f32 %v7697_v11, %v5194_v36  ;;  %6077 = vmatprep.subr.bf16.mxu0 %v8801_v44  ;;  %v8814_v36 = vld [vmem:[%s11499_s5 + $0x1e0] ss:$8 sps:$4 sm:$0xff]  }
 0x37c   : > { %v5323_v38 = vmax.f32 %v7698_v56, %v5195_v45  ;;  %v4279_v54 = vpop.f32.mrb[120].mxu0 }
 0x37d   : > { %v7699_v55 = vadd.f32 %v4279_v54, %v10999_v2  ;;  %v4281_v34 = vpop.f32.mrb[121].mxu0  ;;  %v5426_v39 = vpack.c.bf16 %v5322_v50, %v5318_v51  ;;  %v8819_v50 = vld [vmem:[%s11499_s5 + $0x1f4] ss:$8 sps:$4 sm:$0xff]  }
 0x37e   : > { %v7700_v48 = vadd.f32 %v4281_v34, %v11004_v17  ;;  %v4283_v22 = vpop.f32.mrb[122].mxu0  ;;  %v5427_v27 = vpack.c.bf16 %v5323_v38, %v5319_v61  ;;  %6078 = vmatpush1.bf16.msra.mxu0 %v8799_v8 }
 0x37f   : > { %v5198_v33 = vmul.f32 0.2, %v7699_v55  ;;  %v7701_v58 = vadd.f32 %v4283_v22, %v10999_v2  ;;  %v4285_v19 = vpop.f32.mrb[123].mxu0  ;;  %6079 = vmatprep.subr.bf16.mxu0 %v8804_v62 }
 0x380   : > { %v5199_v4 = vmul.f32 0.2, %v7700_v48  ;;  %v7702_v21 = vadd.f32 %v4285_v19, %v11004_v17  ;;  %5948 = vmatprep.mubr.bf16.mxu0 %v5427_v27 }
 0x381   : > { %v5202_v29 = vmul.f32 0.2, %v7701_v58  ;;  %5949 = vmatmul.mubr.bf16.gmra.mrb[180].mxu0 %v5426_v39  ;;  %v5326_v0 = vmax.f32 %v7699_v55, %v5198_v33  ;;  %v8817_v55 = vld [vmem:[%s11499_s5 + $0x1f0] ss:$8 sps:$4 sm:$0xff]  }
 0x382   : > { %v5203_v30 = vmul.f32 0.2, %v7702_v21  ;;  %6080 = vmatpush1.bf16.msra.mxu0 %v8802_v3  ;;  %v5327_v42 = vmax.f32 %v7700_v48, %v5199_v4 }
 0x383   : > { %v5330_v63 = vmax.f32 %v7701_v58, %v5202_v29  ;;  %6081 = vmatprep.subr.bf16.mxu0 %v8807_v24 }
 0x384   : > { %v5331_v32 = vmax.f32 %v7702_v21, %v5203_v30  ;;  %v4289_v23 = vpop.f32.mrb[124].mxu0 }
 0x385   : > { %v7703_v43 = vadd.f32 %v4289_v23, %v10999_v2  ;;  %v4291_v25 = vpop.f32.mrb[125].mxu0  ;;  %v5430_v13 = vpack.c.bf16 %v5330_v63, %v5326_v0 }
 0x386   : > { %v7704_v49 = vadd.f32 %v4291_v25, %v11004_v17  ;;  %v4293_v20 = vpop.f32.mrb[126].mxu0  ;;  %v5431_v7 = vpack.c.bf16 %v5331_v32, %v5327_v42  ;;  %6082 = vmatpush1.bf16.msra.mxu0 %v8805_v57 }
 0x387   : > { %v5206_v40 = vmul.f32 0.2, %v7703_v43  ;;  %v7705_v46 = vadd.f32 %v4293_v20, %v10999_v2  ;;  %v4295_v10 = vpop.f32.mrb[127].mxu0  ;;  %6083 = vmatprep.subr.bf16.mxu0 %v8810_v5 }
 0x388   : > { %v5207_v37 = vmul.f32 0.2, %v7704_v49  ;;  %v7706_v41 = vadd.f32 %v4295_v10, %v11004_v17  ;;  %5958 = vmatprep.mubr.bf16.mxu0 %v5431_v7 }
 0x389   : > { %v5210_v15 = vmul.f32 0.2, %v7705_v46  ;;  %5959 = vmatmul.mubr.bf16.gmra.mrb[184].mxu0 %v5430_v13  ;;  %v5334_v52 = vmax.f32 %v7703_v43, %v5206_v40 }
 0x38a   : > { %v5211_v28 = vmul.f32 0.2, %v7706_v41  ;;  %6084 = vmatpush1.bf16.msra.mxu0 %v8808_v26  ;;  %v5335_v47 = vmax.f32 %v7704_v49, %v5207_v37 }
 0x38b   : > { %v5338_v60 = vmax.f32 %v7705_v46, %v5210_v15  ;;  %6085 = vmatprep.subr.bf16.mxu0 %v8813_v31 }
 0x38c   : > { %v5339_v35 = vmax.f32 %v7706_v41, %v5211_v28  ;;  %v4299_v9 = vpop.f32.mrb[128].mxu0 }
 0x38d   : > { %v7707_v12 = vadd.f32 %v4299_v9, %v10999_v2  ;;  %v4301_v11 = vpop.f32.mrb[129].mxu0  ;;  %v5434_v6 = vpack.c.bf16 %v5338_v60, %v5334_v52 }
 0x38e   : > { %v7708_v44 = vadd.f32 %v4301_v11, %v11004_v17  ;;  %v4303_v1 = vpop.f32.mrb[130].mxu0  ;;  %v5435_v56 = vpack.c.bf16 %v5339_v35, %v5335_v47  ;;  %6086 = vmatpush1.bf16.msra.mxu0 %v8811_v18 }
 0x38f   : > { %v5214_v45 = vmul.f32 0.2, %v7707_v12  ;;  %v7709_v8 = vadd.f32 %v4303_v1, %v10999_v2  ;;  %v4305_v51 = vpop.f32.mrb[131].mxu0  ;;  %6087 = vmatprep.subr.bf16.mxu0 %v8816_v16 }
 0x390   : > { %v5215_v62 = vmul.f32 0.2, %v7708_v44  ;;  %v7710_v61 = vadd.f32 %v4305_v51, %v11004_v17  ;;  %5968 = vmatprep.mubr.bf16.mxu0 %v5435_v56 }
 0x391   : > { %v5218_v38 = vmul.f32 0.2, %v7709_v8  ;;  %5969 = vmatmul.mubr.bf16.gmra.mrb[188].mxu0 %v5434_v6  ;;  %v5342_v34 = vmax.f32 %v7707_v12, %v5214_v45 }
 0x392   : > { %v5219_v54 = vmul.f32 0.2, %v7710_v61  ;;  %6088 = vmatpush1.bf16.msra.mxu0 %v8814_v36  ;;  %v5343_v48 = vmax.f32 %v7708_v44, %v5215_v62 }
 0x393   : > { %v5346_v39 = vmax.f32 %v7709_v8, %v5218_v38  ;;  %6089 = vmatprep.subr.bf16.mxu0 %v8819_v50  ;;  %v11693_v50 = vld [vmem:[#allocation2_spill] sm:$0xff] }
 0x394   : > { %v5347_v22 = vmax.f32 %v7710_v61, %v5219_v54  ;;  %v4309_v27 = vpop.f32.mrb[132].mxu0  ;;  %v11694_v62 = vsub.s32 2, %v11693_v50  ;;  %v11695_v54 = vsub.s32 3, %v11693_v50 }
 0x395   : > { %v7711_v3 = vadd.f32 %v4309_v27, %v10999_v2  ;;  %v4311_v33 = vpop.f32.mrb[133].mxu0  ;;  %v5438_v58 = vpack.c.bf16 %v5346_v39, %v5342_v34 }
 0x396   : > { %v7712_v19 = vadd.f32 %v4311_v33, %v11004_v17  ;;  %v4313_v24 = vpop.f32.mrb[134].mxu0  ;;  %v5439_v4 = vpack.c.bf16 %v5347_v22, %v5343_v48  ;;  %6090 = vmatpush1.bf16.msra.mxu0 %v8817_v55  ;;  %v11151_v61 = vrot.slane %v10994_v59, %v11694_v62  ;;  %v11156_v55 = vrot.slane %v10994_v59, %v11695_v54 }
 0x397   : > { %v5222_v21 = vmul.f32 0.2, %v7711_v3  ;;  %v7713_v29 = vadd.f32 %v4313_v24, %v10999_v2  ;;  %v4315_v30 = vpop.f32.mrb[135].mxu0 }
 0x398   : > { %v5223_v57 = vmul.f32 0.2, %v7712_v19  ;;  %v7714_v0 = vadd.f32 %v4315_v30, %v11004_v17  ;;  %5978 = vmatprep.mubr.bf16.mxu0 %v5439_v4 }
 0x399   : > { %v5226_v63 = vmul.f32 0.2, %v7713_v29  ;;  %5979 = vmatmul.mubr.bf16.gmra.mrb[192].mxu0 %v5438_v58  ;;  %v5350_v42 = vmax.f32 %v7711_v3, %v5222_v21 }
 0x39a   : > { %v5227_v5 = vmul.f32 0.2, %v7714_v0  ;;  %v5351_v23 = vmax.f32 %v7712_v19, %v5223_v57 }
 0x39b   : > { %v5354_v32 = vmax.f32 %v7713_v29, %v5226_v63 }
 0x39c   : > { %v5355_v43 = vmax.f32 %v7714_v0, %v5227_v5  ;;  %v4319_v25 = vpop.f32.mrb[136].mxu0 }
 0x39d   : > { %v7715_v13 = vadd.f32 %v4319_v25, %v10999_v2  ;;  %v4321_v49 = vpop.f32.mrb[137].mxu0  ;;  %v5442_v20 = vpack.c.bf16 %v5354_v32, %v5350_v42 }
 0x39e   : > { %v7716_v7 = vadd.f32 %v4321_v49, %v11004_v17  ;;  %v4323_v26 = vpop.f32.mrb[138].mxu0  ;;  %v5443_v40 = vpack.c.bf16 %v5355_v43, %v5351_v23 }
 0x39f   : > { %v5230_v46 = vmul.f32 0.2, %v7715_v13  ;;  %v7717_v10 = vadd.f32 %v4323_v26, %v10999_v2  ;;  %v4325_v31 = vpop.f32.mrb[139].mxu0 }
 0x3a0   : > { %v5231_v37 = vmul.f32 0.2, %v7716_v7  ;;  %v7718_v41 = vadd.f32 %v4325_v31, %v11004_v17  ;;  %5988 = vmatprep.mubr.bf16.mxu0 %v5443_v40 }
 0x3a1   : > { %v5234_v15 = vmul.f32 0.2, %v7717_v10  ;;  %5989 = vmatmul.mubr.bf16.gmra.mrb[196].mxu0 %v5442_v20  ;;  %v5358_v18 = vmax.f32 %v7715_v13, %v5230_v46  ;;  %v8820_v46 = vld [vmem:[%s11501_s7 + $0x40] sm:$0xff]  }
 0x3a2   : > { %v5235_v28 = vmul.f32 0.2, %v7718_v41  ;;  %v5359_v60 = vmax.f32 %v7716_v7, %v5231_v37  ;;  %7559 = vmatprep.subr.bf16.mxu1 %v8820_v46 }
 0x3a3   : > { %v5362_v52 = vmax.f32 %v7717_v10, %v5234_v15 }
 0x3a4   : > { %v5363_v16 = vmax.f32 %v7718_v41, %v5235_v28  ;;  %v4329_v47 = vpop.f32.mrb[140].mxu0 }
 0x3a5   : > { %v7719_v35 = vadd.f32 %v4329_v47, %v10999_v2  ;;  %v4331_v9 = vpop.f32.mrb[141].mxu0  ;;  %v5446_v12 = vpack.c.bf16 %v5362_v52, %v5358_v18 }
 0x3a6   : > { %v7720_v11 = vadd.f32 %v4331_v9, %v11004_v17  ;;  %v4333_v6 = vpop.f32.mrb[142].mxu0  ;;  %v5447_v44 = vpack.c.bf16 %v5363_v16, %v5359_v60 }
 0x3a7   : > { %v5238_v1 = vmul.f32 0.2, %v7719_v35  ;;  %v7721_v56 = vadd.f32 %v4333_v6, %v10999_v2  ;;  %v4335_v36 = vpop.f32.mrb[143].mxu0 }
 0x3a8   : > { %v5239_v45 = vmul.f32 0.2, %v7720_v11  ;;  %v7722_v8 = vadd.f32 %v4335_v36, %v11004_v17  ;;  %5998 = vmatprep.mubr.bf16.mxu0 %v5447_v44 }
 0x3a9   : > { %v5242_v51 = vmul.f32 0.2, %v7721_v56  ;;  %5999 = vmatmul.mubr.bf16.gmra.mrb[200].mxu0 %v5446_v12  ;;  %v5366_v34 = vmax.f32 %v7719_v35, %v5238_v1 }
 0x3aa   : > { %v5243_v38 = vmul.f32 0.2, %v7722_v8  ;;  %v5367_v48 = vmax.f32 %v7720_v11, %v5239_v45 }
 0x3ab   : > { %v5370_v39 = vmax.f32 %v7721_v56, %v5242_v51 }
 0x3ac   : > { %v5371_v22 = vmax.f32 %v7722_v8, %v5243_v38  ;;  %v4339_v27 = vpop.f32.mrb[144].mxu0 }
 0x3ad   : > { %v4991_v3 = vpop.f32.mrb[160].mxu1  ;;  %v7723_v33 = vadd.f32 %v4339_v27, %v10999_v2  ;;  %v4341_v19 = vpop.f32.mrb[145].mxu0  ;;  %v5450_v4 = vpack.c.bf16 %v5370_v39, %v5366_v34 }
 0x3ae   : > { %v7739_v58 = vadd.f32 %v4991_v3, %v11151_v61  ;;  %v4993_v24 = vpop.f32.mrb[161].mxu1  ;;  %v7724_v21 = vadd.f32 %v4341_v19, %v11004_v17  ;;  %v4343_v30 = vpop.f32.mrb[146].mxu0  ;;  %v5451_v57 = vpack.c.bf16 %v5371_v22, %v5367_v48 }
 0x3af   : > { %v7740_v29 = vadd.f32 %v4993_v24, %v11156_v55  ;;  %v4995_v59 = vpop.f32.mrb[162].mxu1  ;;  %v5246_v0 = vmul.f32 0.2, %v7723_v33  ;;  %v7725_v5 = vadd.f32 %v4343_v30, %v10999_v2  ;;  %v4345_v32 = vpop.f32.mrb[147].mxu0 }
 0x3b0   : > { %v5152_v63 = vmul.f32 0.2, %v7739_v58  ;;  %v7741_v42 = vadd.f32 %v4995_v59, %v11151_v61  ;;  %v4997_v23 = vpop.f32.mrb[163].mxu1  ;;  %v5247_v43 = vmul.f32 0.2, %v7724_v21  ;;  %v7726_v13 = vadd.f32 %v4345_v32, %v11004_v17  ;;  %6008 = vmatprep.mubr.bf16.mxu0 %v5451_v57 }
 0x3b1   : > { %v5153_v25 = vmul.f32 0.2, %v7740_v29  ;;  %v7742_v49 = vadd.f32 %v4997_v23, %v11156_v55  ;;  %v5250_v20 = vmul.f32 0.2, %v7725_v5  ;;  %6009 = vmatmul.mubr.bf16.gmra.mrb[204].mxu0 %v5450_v4  ;;  %v5374_v10 = vmax.f32 %v7723_v33, %v5246_v0 }
 0x3b2   : > { %v5156_v7 = vmul.f32 0.2, %v7741_v42  ;;  %v5251_v26 = vmul.f32 0.2, %v7726_v13  ;;  %v5280_v31 = vmax.f32 %v7739_v58, %v5152_v63  ;;  %v5375_v15 = vmax.f32 %v7724_v21, %v5247_v43  ;;  %v8821_v58 = vld [vmem:[%s11501_s7] sm:$0xff]  }
 0x3b3   : > { %v5157_v40 = vmul.f32 0.2, %v7742_v49  ;;  %v5378_v37 = vmax.f32 %v7725_v5, %v5250_v20  ;;  %v5281_v28 = vmax.f32 %v7740_v29, %v5153_v25  ;;  %7560 = vmatpush3.bf16.msra.mxu1 %v8821_v58 }
 0x3b4   : > { %v5284_v41 = vmax.f32 %v7741_v42, %v5156_v7  ;;  %v5379_v18 = vmax.f32 %v7726_v13, %v5251_v26  ;;  %v4349_v60 = vpop.f32.mrb[148].mxu0 }
 0x3b5   : > { %v5285_v52 = vmax.f32 %v7742_v49, %v5157_v40  ;;  %v5001_v16 = vpop.f32.mrb[164].mxu1  ;;  %v7727_v35 = vadd.f32 %v4349_v60, %v10999_v2  ;;  %v4351_v12 = vpop.f32.mrb[149].mxu0  ;;  %v5454_v6 = vpack.c.bf16 %v5378_v37, %v5374_v10 }
 0x3b6   : > { %v11169_v47 = vpack.c.bf16 %v5284_v41, %v5280_v31  ;;  %v7743_v9 = vadd.f32 %v5001_v16, %v11151_v61  ;;  %v5003_v11 = vpop.f32.mrb[165].mxu1  ;;  %v7728_v44 = vadd.f32 %v4351_v12, %v11004_v17  ;;  %v4353_v56 = vpop.f32.mrb[150].mxu0  ;;  %v5455_v45 = vpack.c.bf16 %v5379_v18, %v5375_v15 }
 0x3b7   : > { %v7744_v1 = vadd.f32 %v5003_v11, %v11156_v55  ;;  %v5005_v36 = vpop.f32.mrb[166].mxu1  ;;  %v11175_v8 = vpack.c.bf16 %v5285_v52, %v5281_v28  ;;  %v5254_v51 = vmul.f32 0.2, %v7727_v35  ;;  %v7729_v62 = vadd.f32 %v4353_v56, %v10999_v2  ;;  %v4355_v54 = vpop.f32.mrb[151].mxu0 }
 0x3b8   : > { %v5160_v50 = vmul.f32 0.2, %v7743_v9  ;;  %v7745_v38 = vadd.f32 %v5005_v36, %v11151_v61  ;;  %v5007_v34 = vpop.f32.mrb[167].mxu1  ;;  %v5255_v39 = vmul.f32 0.2, %v7728_v44  ;;  %v7730_v22 = vadd.f32 %v4355_v54, %v11004_v17  ;;  %6018 = vmatprep.mubr.bf16.mxu0 %v5455_v45 }
 0x3b9   : > { %v5161_v48 = vmul.f32 0.2, %v7744_v1  ;;  %v7746_v27 = vadd.f32 %v5007_v34, %v11156_v55  ;;  %v5258_v3 = vmul.f32 0.2, %v7729_v62  ;;  %6019 = vmatmul.mubr.bf16.gmra.mrb[208].mxu0 %v5454_v6  ;;  %v5382_v4 = vmax.f32 %v7727_v35, %v5254_v51 }
 0x3ba   : > { %v5164_v33 = vmul.f32 0.2, %v7745_v38  ;;  %v5259_v19 = vmul.f32 0.2, %v7730_v22  ;;  %v5288_v21 = vmax.f32 %v7743_v9, %v5160_v50  ;;  %v5383_v59 = vmax.f32 %v7728_v44, %v5255_v39  ;;  %v8822_v44 = vld [vmem:[%s11501_s7 + $0x48] sm:$0xff]  }
 0x3bb   : > { %v5165_v24 = vmul.f32 0.2, %v7746_v27  ;;  %v5386_v29 = vmax.f32 %v7729_v62, %v5258_v3  ;;  %v5289_v57 = vmax.f32 %v7744_v1, %v5161_v48  ;;  %7561 = vmatprep.subr.bf16.mxu1 %v8822_v44 }
 0x3bc   : > { %v5292_v30 = vmax.f32 %v7745_v38, %v5164_v33  ;;  %v5387_v0 = vmax.f32 %v7730_v22, %v5259_v19  ;;  %v4359_v5 = vpop.f32.mrb[152].mxu0 }
 0x3bd   : > { %v5293_v63 = vmax.f32 %v7746_v27, %v5165_v24  ;;  %v5011_v42 = vpop.f32.mrb[168].mxu1  ;;  %v7731_v32 = vadd.f32 %v4359_v5, %v10999_v2  ;;  %v4361_v43 = vpop.f32.mrb[153].mxu0  ;;  %v5458_v13 = vpack.c.bf16 %v5386_v29, %v5382_v4 }
 0x3be   : > { %v7747_v23 = vadd.f32 %v5011_v42, %v11151_v61  ;;  %v5013_v25 = vpop.f32.mrb[169].mxu1  ;;  %v11186_v49 = vpack.c.bf16 %v5292_v30, %v5288_v21  ;;  %v7732_v20 = vadd.f32 %v4361_v43, %v11004_v17  ;;  %v4363_v26 = vpop.f32.mrb[154].mxu0  ;;  %v5459_v46 = vpack.c.bf16 %v5387_v0, %v5383_v59 }
 0x3bf   : > { %v7748_v7 = vadd.f32 %v5013_v25, %v11156_v55  ;;  %v5015_v40 = vpop.f32.mrb[170].mxu1  ;;  %v11190_v10 = vpack.c.bf16 %v5293_v63, %v5289_v57  ;;  %v5262_v31 = vmul.f32 0.2, %v7731_v32  ;;  %v7733_v41 = vadd.f32 %v4363_v26, %v10999_v2  ;;  %v4365_v28 = vpop.f32.mrb[155].mxu0 }
 0x3c0   : > { %v5168_v37 = vmul.f32 0.2, %v7747_v23  ;;  %v7749_v15 = vadd.f32 %v5015_v40, %v11151_v61  ;;  %v5017_v18 = vpop.f32.mrb[171].mxu1  ;;  %v5263_v52 = vmul.f32 0.2, %v7732_v20  ;;  %v7734_v16 = vadd.f32 %v4365_v28, %v11004_v17  ;;  %6028 = vmatprep.mubr.bf16.mxu0 %v5459_v46 }
 0x3c1   : > { %v5169_v60 = vmul.f32 0.2, %v7748_v7  ;;  %v7750_v35 = vadd.f32 %v5017_v18, %v11156_v55  ;;  %v5266_v9 = vmul.f32 0.2, %v7733_v41  ;;  %6029 = vmatmul.mubr.bf16.gmra.mrb[212].mxu0 %v5458_v13  ;;  %v5390_v1 = vmax.f32 %v7731_v32, %v5262_v31 }
 0x3c2   : > { %v5172_v12 = vmul.f32 0.2, %v7749_v15  ;;  %v5267_v11 = vmul.f32 0.2, %v7734_v16  ;;  %v5296_v56 = vmax.f32 %v7747_v23, %v5168_v37  ;;  %v5391_v51 = vmax.f32 %v7732_v20, %v5263_v52  ;;  %v8823_v20 = vld [vmem:[%s11501_s7 + $0x8] sm:$0xff]  }
 0x3c3   : > { %v5173_v6 = vmul.f32 0.2, %v7750_v35  ;;  %v5394_v36 = vmax.f32 %v7733_v41, %v5266_v9  ;;  %v5297_v50 = vmax.f32 %v7748_v7, %v5169_v60  ;;  %7562 = vmatpush3.bf16.msra.mxu1 %v8823_v20 }
 0x3c4   : > { %v5300_v45 = vmax.f32 %v7749_v15, %v5172_v12  ;;  %v5395_v62 = vmax.f32 %v7734_v16, %v5267_v11  ;;  %v4369_v54 = vpop.f32.mrb[156].mxu0 }
 0x3c5   : > { %v5301_v38 = vmax.f32 %v7750_v35, %v5173_v6  ;;  %v5021_v34 = vpop.f32.mrb[172].mxu1  ;;  %v7735_v39 = vadd.f32 %v4369_v54, %v10999_v2  ;;  %v4371_v22 = vpop.f32.mrb[157].mxu0  ;;  %v5462_v3 = vpack.c.bf16 %v5394_v36, %v5390_v1 }
 0x3c6   : > { %v7751_v48 = vadd.f32 %v5021_v34, %v11151_v61  ;;  %v5023_v27 = vpop.f32.mrb[173].mxu1  ;;  %v11201_v33 = vpack.c.bf16 %v5300_v45, %v5296_v56  ;;  %v7736_v58 = vadd.f32 %v4371_v22, %v11004_v17  ;;  %v4373_v24 = vpop.f32.mrb[158].mxu0  ;;  %v5463_v21 = vpack.c.bf16 %v5395_v62, %v5391_v51  ;;  %v8824_v51 = vld [vmem:[%s11501_s7 + $0x50] sm:$0xff]   ;;  %v8826_v62 = vld [vmem:[%s11501_s7 + $0x58] sm:$0xff]  }
 0x3c7   : > { %v7752_v19 = vadd.f32 %v5023_v27, %v11156_v55  ;;  %v5025_v4 = vpop.f32.mrb[174].mxu1  ;;  %v11205_v29 = vpack.c.bf16 %v5301_v38, %v5297_v50  ;;  %v5270_v30 = vmul.f32 0.2, %v7735_v39  ;;  %v7737_v57 = vadd.f32 %v4373_v24, %v10999_v2  ;;  %v4375_v63 = vpop.f32.mrb[159].mxu0  ;;  %v8825_v50 = vld [vmem:[%s11501_s7 + $0x10] sm:$0xff]   ;;  %7563 = vmatprep.subr.bf16.mxu1 %v8824_v51  ;;  %v8827_v27 = vld [vmem:[%s11501_s7 + $0x18] sm:$0xff]  }
 0x3c8   : > { %v5176_v59 = vmul.f32 0.2, %v7751_v48  ;;  %v7753_v0 = vadd.f32 %v5025_v4, %v11151_v61  ;;  %v5027_v5 = vpop.f32.mrb[175].mxu1  ;;  %v5271_v42 = vmul.f32 0.2, %v7736_v58  ;;  %v7738_v23 = vadd.f32 %v4375_v63, %v11004_v17  ;;  %6038 = vmatprep.mubr.bf16.mxu0 %v5463_v21  ;;  %7564 = vmatpush3.bf16.msra.mxu1 %v8825_v50 }
 0x3c9   : > { %v5177_v32 = vmul.f32 0.2, %v7752_v19  ;;  %v7754_v43 = vadd.f32 %v5027_v5, %v11156_v55  ;;  %v5274_v25 = vmul.f32 0.2, %v7737_v57  ;;  %6039 = vmatmul.mubr.bf16.gmra.mrb[216].mxu0 %v5462_v3  ;;  %v5398_v26 = vmax.f32 %v7735_v39, %v5270_v30  ;;  %7565 = vmatprep.subr.bf16.mxu1 %v8826_v62  ;;  %v8829_v5 = vld [vmem:[%s11501_s7 + $0x20] sm:$0xff]  }
 0x3ca   : > { %v5180_v13 = vmul.f32 0.2, %v7753_v0  ;;  %v5275_v7 = vmul.f32 0.2, %v7738_v23  ;;  %v5304_v40 = vmax.f32 %v7751_v48, %v5176_v59  ;;  %v5399_v37 = vmax.f32 %v7736_v58, %v5271_v42 }
 0x3cb   : > { %v5181_v2 = vmul.f32 0.2, %v7754_v43  ;;  %v5402_v46 = vmax.f32 %v7737_v57, %v5274_v25  ;;  %v5305_v41 = vmax.f32 %v7752_v19, %v5177_v32  ;;  %v8830_v32 = vld [vmem:[%s11501_s7 + $0x68] sm:$0xff]  }
 0x3cc   : > { %v5308_v31 = vmax.f32 %v7753_v0, %v5180_v13  ;;  %v5403_v17 = vmax.f32 %v7738_v23, %v5275_v7  ;;  %7566 = vmatpush3.bf16.msra.mxu1 %v8827_v27 }
 0x3cd   : > { %v5309_v15 = vmax.f32 %v7754_v43, %v5181_v2  ;;  %v5031_v28 = vpop.f32.mrb[176].mxu1  ;;  %v5466_v60 = vpack.c.bf16 %v5402_v46, %v5398_v26  ;;  %v8831_v2 = vld [vmem:[%s11501_s7 + $0x28] sm:$0xff]  }
 0x3ce   : > { %v7755_v18 = vadd.f32 %v5031_v28, %v11151_v61  ;;  %v5033_v52 = vpop.f32.mrb[177].mxu1  ;;  %v11215_v16 = vpack.c.bf16 %v5308_v31, %v5304_v40  ;;  %v5467_v12 = vpack.c.bf16 %v5403_v17, %v5399_v37 }
 0x3cf   : > { %v7756_v35 = vadd.f32 %v5033_v52, %v11156_v55  ;;  %v5035_v9 = vpop.f32.mrb[178].mxu1  ;;  %v11218_v11 = vpack.c.bf16 %v5309_v15, %v5305_v41  ;;  %v8833_v52 = vld [vmem:[%s11501_s7 + $0x30] sm:$0xff]  }
 0x3d0   : > { %v5184_v6 = vmul.f32 0.2, %v7755_v18  ;;  %v7757_v44 = vadd.f32 %v5035_v9, %v11151_v61  ;;  %v5037_v1 = vpop.f32.mrb[179].mxu1  ;;  %6048 = vmatprep.mubr.bf16.mxu0 %v5467_v12 }
 0x3d1   : > { %v5185_v56 = vmul.f32 0.2, %v7756_v35  ;;  %v7758_v36 = vadd.f32 %v5037_v1, %v11156_v55  ;;  %6049 = vmatmul.mubr.bf16.gmra.mrb[220].mxu0 %v5466_v60 }
 0x3d2   : > { %v5188_v45 = vmul.f32 0.2, %v7757_v44  ;;  %6091 = vmatprep.mubr.bf16.mxu0 %v11175_v8  ;;  %v5312_v54 = vmax.f32 %v7755_v18, %v5184_v6  ;;  %v8828_v8 = vld [vmem:[%s11501_s7 + $0x60] sm:$0xff]  }
 0x3d3   : > { %v5189_v38 = vmul.f32 0.2, %v7758_v36  ;;  %v5313_v39 = vmax.f32 %v7756_v35, %v5185_v56  ;;  %7567 = vmatprep.subr.bf16.mxu1 %v8828_v8  ;;  %v8834_v35 = vld [vmem:[%s11501_s7 + $0x78] sm:$0xff]  }
 0x3d4   : > { %v5316_v34 = vmax.f32 %v7757_v44, %v5188_v45  ;;  %7568 = vmatpush3.bf16.msra.mxu1 %v8829_v5 }
 0x3d5   : > { %v5317_v48 = vmax.f32 %v7758_v36, %v5189_v38  ;;  %v5041_v22 = vpop.f32.mrb[180].mxu1  ;;  %7569 = vmatprep.subr.bf16.mxu1 %v8830_v32  ;;  %v8835_v36 = vld [vmem:[%s11501_s7 + $0x38] sm:$0xff]  }
 0x3d6   : > { %v7759_v3 = vadd.f32 %v5041_v22, %v11151_v61  ;;  %v5043_v58 = vpop.f32.mrb[181].mxu1  ;;  %v11236_v19 = vpack.c.bf16 %v5316_v34, %v5312_v54 }
 0x3d7   : > { %v7760_v24 = vadd.f32 %v5043_v58, %v11156_v55  ;;  %v5045_v4 = vpop.f32.mrb[182].mxu1  ;;  %v11242_v21 = vpack.c.bf16 %v5317_v48, %v5313_v39 }
 0x3d8   : > { %v5192_v30 = vmul.f32 0.2, %v7759_v3  ;;  %v7761_v59 = vadd.f32 %v5045_v4, %v11151_v61  ;;  %v5047_v57 = vpop.f32.mrb[183].mxu1  ;;  %7570 = vmatpush3.bf16.msra.mxu1 %v8831_v2 }
 0x3d9   : > { %v5193_v0 = vmul.f32 0.2, %v7760_v24  ;;  %v7762_v63 = vadd.f32 %v5047_v57, %v11156_v55  ;;  %6092 = vmatmul.mubr.bf16.vlgmr.msra.gmra.mrb[160].mxu0 %v11169_v47 }
 0x3da   : > { %v5196_v42 = vmul.f32 0.2, %v7761_v59  ;;  %6101 = vmatprep.mubr.bf16.mxu0 %v11190_v10  ;;  %v5320_v43 = vmax.f32 %v7759_v3, %v5192_v30  ;;  %v8832_v10 = vld [vmem:[%s11501_s7 + $0x70] sm:$0xff]  }
 0x3db   : > { %v5197_v23 = vmul.f32 0.2, %v7762_v63  ;;  %v5321_v13 = vmax.f32 %v7760_v24, %v5193_v0  ;;  %7571 = vmatprep.subr.bf16.mxu1 %v8832_v10 }
 0x3dc   : > { %v5324_v25 = vmax.f32 %v7761_v59, %v5196_v42  ;;  %7572 = vmatpush3.bf16.msra.mxu1 %v8833_v52 }
 0x3dd   : > { %v5325_v20 = vmax.f32 %v7762_v63, %v5197_v23  ;;  %v5051_v7 = vpop.f32.mrb[184].mxu1  ;;  %7573 = vmatprep.subr.bf16.mxu1 %v8834_v35 }
 0x3de   : > { %v7763_v47 = vadd.f32 %v5051_v7, %v11151_v61  ;;  %v5053_v26 = vpop.f32.mrb[185].mxu1  ;;  %v11258_v40 = vpack.c.bf16 %v5324_v25, %v5320_v43 }
 0x3df   : > { %v7764_v46 = vadd.f32 %v5053_v26, %v11156_v55  ;;  %v5055_v31 = vpop.f32.mrb[186].mxu1  ;;  %v11264_v37 = vpack.c.bf16 %v5325_v20, %v5321_v13 }
 0x3e0   : > { %v5200_v41 = vmul.f32 0.2, %v7763_v47  ;;  %v7765_v17 = vadd.f32 %v5055_v31, %v11151_v61  ;;  %v5057_v15 = vpop.f32.mrb[187].mxu1  ;;  %7574 = vmatpush3.bf16.msra.mxu1 %v8835_v36 }
 0x3e1   : > { %v5201_v28 = vmul.f32 0.2, %v7764_v46  ;;  %v7766_v18 = vadd.f32 %v5057_v15, %v11156_v55  ;;  %6102 = vmatmul.mubr.bf16.gmra.mrb[164].mxu0 %v11186_v49 }
 0x3e2   : > { %v5204_v60 = vmul.f32 0.2, %v7765_v17  ;;  %6111 = vmatprep.mubr.bf16.mxu0 %v11205_v29  ;;  %v5328_v12 = vmax.f32 %v7763_v47, %v5200_v41 }
 0x3e3   : > { %v5205_v9 = vmul.f32 0.2, %v7766_v18  ;;  %v5329_v44 = vmax.f32 %v7764_v46, %v5201_v28 }
 0x3e4   : > { %v5332_v6 = vmax.f32 %v7765_v17, %v5204_v60 }
 0x3e5   : > { %v5333_v1 = vmax.f32 %v7766_v18, %v5205_v9  ;;  %v5061_v56 = vpop.f32.mrb[188].mxu1 }
 0x3e6   : > { %v7767_v49 = vadd.f32 %v5061_v56, %v11151_v61  ;;  %v5063_v45 = vpop.f32.mrb[189].mxu1  ;;  %v11280_v51 = vpack.c.bf16 %v5332_v6, %v5328_v12 }
 0x3e7   : > { %v7768_v50 = vadd.f32 %v5063_v45, %v11156_v55  ;;  %v5065_v62 = vpop.f32.mrb[190].mxu1  ;;  %v11283_v29 = vpack.c.bf16 %v5333_v1, %v5329_v44 }
 0x3e8   : > { %v5208_v38 = vmul.f32 0.2, %v7767_v49  ;;  %v7769_v54 = vadd.f32 %v5065_v62, %v11151_v61  ;;  %v5067_v34 = vpop.f32.mrb[191].mxu1 }
 0x3e9   : > { %v5209_v39 = vmul.f32 0.2, %v7768_v50  ;;  %v7770_v48 = vadd.f32 %v5067_v34, %v11156_v55  ;;  %6112 = vmatmul.mubr.bf16.gmra.mrb[168].mxu0 %v11201_v33 }
 0x3ea   : > { %v5212_v22 = vmul.f32 0.2, %v7769_v54  ;;  %6121 = vmatprep.mubr.bf16.mxu0 %v11218_v11  ;;  %v5336_v3 = vmax.f32 %v7767_v49, %v5208_v38 }
 0x3eb   : > { %v5213_v27 = vmul.f32 0.2, %v7770_v48  ;;  %v5337_v8 = vmax.f32 %v7768_v50, %v5209_v39 }
 0x3ec   : > { %v5340_v58 = vmax.f32 %v7769_v54, %v5212_v22 }
 0x3ed   : > { %v5341_v24 = vmax.f32 %v7770_v48, %v5213_v27  ;;  %v5071_v4 = vpop.f32.mrb[192].mxu1 }
 0x3ee   : > { %v7771_v30 = vadd.f32 %v5071_v4, %v11151_v61  ;;  %v5073_v59 = vpop.f32.mrb[193].mxu1  ;;  %v11290_v57 = vpack.c.bf16 %v5340_v58, %v5336_v3 }
 0x3ef   : > { %v7772_v0 = vadd.f32 %v5073_v59, %v11156_v55  ;;  %v5075_v63 = vpop.f32.mrb[194].mxu1  ;;  %v11293_v5 = vpack.c.bf16 %v5341_v24, %v5337_v8 }
 0x3f0   : > { %v5216_v42 = vmul.f32 0.2, %v7771_v30  ;;  %v7773_v33 = vadd.f32 %v5075_v63, %v11151_v61  ;;  %v5077_v32 = vpop.f32.mrb[195].mxu1 }
 0x3f1   : > { %v5217_v11 = vmul.f32 0.2, %v7772_v0  ;;  %v7774_v23 = vadd.f32 %v5077_v32, %v11156_v55  ;;  %6122 = vmatmul.mubr.bf16.gmra.mrb[172].mxu0 %v11215_v16 }
 0x3f2   : > { %v5220_v43 = vmul.f32 0.2, %v7773_v33  ;;  %6131 = vmatprep.mubr.bf16.mxu0 %v11242_v21  ;;  %v5344_v13 = vmax.f32 %v7771_v30, %v5216_v42 }
 0x3f3   : > { %v5221_v25 = vmul.f32 0.2, %v7774_v23  ;;  %v5345_v7 = vmax.f32 %v7772_v0, %v5217_v11 }
 0x3f4   : > { %v5348_v20 = vmax.f32 %v7773_v33, %v5220_v43 }
 0x3f5   : > { %v5349_v2 = vmax.f32 %v7774_v23, %v5221_v25  ;;  %v5081_v47 = vpop.f32.mrb[196].mxu1 }
 0x3f6   : > { %v7775_v26 = vadd.f32 %v5081_v47, %v11151_v61  ;;  %v5083_v10 = vpop.f32.mrb[197].mxu1  ;;  %v11300_v46 = vpack.c.bf16 %v5348_v20, %v5344_v13 }
 0x3f7   : > { %v7776_v31 = vadd.f32 %v5083_v10, %v11156_v55  ;;  %v5085_v41 = vpop.f32.mrb[198].mxu1  ;;  %v11303_v17 = vpack.c.bf16 %v5349_v2, %v5345_v7 }
 0x3f8   : > { %v5224_v15 = vmul.f32 0.2, %v7775_v26  ;;  %v7777_v16 = vadd.f32 %v5085_v41, %v11151_v61  ;;  %v5087_v28 = vpop.f32.mrb[199].mxu1 }
 0x3f9   : > { %v5225_v21 = vmul.f32 0.2, %v7776_v31  ;;  %v7778_v18 = vadd.f32 %v5087_v28, %v11156_v55  ;;  %6132 = vmatmul.mubr.bf16.gmra.mrb[176].mxu0 %v11236_v19 }
 0x3fa   : > { %v5228_v52 = vmul.f32 0.2, %v7777_v16  ;;  %6141 = vmatprep.mubr.bf16.mxu0 %v11264_v37  ;;  %v5352_v35 = vmax.f32 %v7775_v26, %v5224_v15 }
 0x3fb   : > { %v5229_v60 = vmul.f32 0.2, %v7778_v18  ;;  %v5353_v12 = vmax.f32 %v7776_v31, %v5225_v21 }
 0x3fc   : > { %v5356_v9 = vmax.f32 %v7777_v16, %v5228_v52 }
 0x3fd   : > { %v5357_v6 = vmax.f32 %v7778_v18, %v5229_v60  ;;  %v5091_v44 = vpop.f32.mrb[200].mxu1 }
 0x3fe   : > { %v7779_v1 = vadd.f32 %v5091_v44, %v11151_v61  ;;  %v5093_v56 = vpop.f32.mrb[201].mxu1  ;;  %v11310_v36 = vpack.c.bf16 %v5356_v9, %v5352_v35 }
 0x3ff   : > { %v7780_v49 = vadd.f32 %v5093_v56, %v11156_v55  ;;  %v5095_v45 = vpop.f32.mrb[202].mxu1  ;;  %v11313_v50 = vpack.c.bf16 %v5357_v6, %v5353_v12 }
 0x400   : > { %v5232_v62 = vmul.f32 0.2, %v7779_v1  ;;  %v7781_v19 = vadd.f32 %v5095_v45, %v11151_v61  ;;  %v5097_v38 = vpop.f32.mrb[203].mxu1 }
 0x401   : > { %v5233_v37 = vmul.f32 0.2, %v7780_v49  ;;  %v7782_v54 = vadd.f32 %v5097_v38, %v11156_v55  ;;  %6142 = vmatmul.mubr.bf16.gmra.mrb[180].mxu0 %v11258_v40 }
 0x402   : > { %v5236_v34 = vmul.f32 0.2, %v7781_v19  ;;  %6151 = vmatprep.mubr.bf16.mxu0 %v11283_v29  ;;  %v5360_v48 = vmax.f32 %v7779_v1, %v5232_v62 }
 0x403   : > { %v5237_v39 = vmul.f32 0.2, %v7782_v54  ;;  %v5361_v27 = vmax.f32 %v7780_v49, %v5233_v37 }
 0x404   : > { %v5364_v22 = vmax.f32 %v7781_v19, %v5236_v34 }
 0x405   : > { %v5365_v3 = vmax.f32 %v7782_v54, %v5237_v39  ;;  %v5101_v58 = vpop.f32.mrb[204].mxu1 }
 0x406   : > { %v7783_v8 = vadd.f32 %v5101_v58, %v11151_v61  ;;  %v5103_v24 = vpop.f32.mrb[205].mxu1  ;;  %v11320_v4 = vpack.c.bf16 %v5364_v22, %v5360_v48 }
 0x407   : > { %v7784_v30 = vadd.f32 %v5103_v24, %v11156_v55  ;;  %v5105_v59 = vpop.f32.mrb[206].mxu1  ;;  %v11323_v0 = vpack.c.bf16 %v5365_v3, %v5361_v27 }
 0x408   : > { %v5240_v63 = vmul.f32 0.2, %v7783_v8  ;;  %v7785_v40 = vadd.f32 %v5105_v59, %v11151_v61  ;;  %v5107_v42 = vpop.f32.mrb[207].mxu1 }
 0x409   : > { %v5241_v29 = vmul.f32 0.2, %v7784_v30  ;;  %v7786_v33 = vadd.f32 %v5107_v42, %v11156_v55  ;;  %6152 = vmatmul.mubr.bf16.gmra.mrb[184].mxu0 %v11280_v51 }
 0x40a   : > { %v5244_v32 = vmul.f32 0.2, %v7785_v40  ;;  %6161 = vmatprep.mubr.bf16.mxu0 %v11293_v5  ;;  %v5368_v23 = vmax.f32 %v7783_v8, %v5240_v63 }
 0x40b   : > { %v5245_v11 = vmul.f32 0.2, %v7786_v33  ;;  %v5369_v25 = vmax.f32 %v7784_v30, %v5241_v29 }
 0x40c   : > { %v5372_v43 = vmax.f32 %v7785_v40, %v5244_v32 }
 0x40d   : > { %v5373_v13 = vmax.f32 %v7786_v33, %v5245_v11  ;;  %v5111_v20 = vpop.f32.mrb[208].mxu1 }
 0x40e   : > { %v7787_v7 = vadd.f32 %v5111_v20, %v11151_v61  ;;  %v5113_v2 = vpop.f32.mrb[209].mxu1  ;;  %v11330_v47 = vpack.c.bf16 %v5372_v43, %v5368_v23 }
 0x40f   : > { %v7788_v26 = vadd.f32 %v5113_v2, %v11156_v55  ;;  %v5115_v10 = vpop.f32.mrb[210].mxu1  ;;  %v11333_v31 = vpack.c.bf16 %v5373_v13, %v5369_v25 }
 0x410   : > { %v5248_v41 = vmul.f32 0.2, %v7787_v7  ;;  %v7789_v51 = vadd.f32 %v5115_v10, %v11151_v61  ;;  %v5117_v15 = vpop.f32.mrb[211].mxu1 }
 0x411   : > { %v5249_v5 = vmul.f32 0.2, %v7788_v26  ;;  %v7790_v16 = vadd.f32 %v5117_v15, %v11156_v55  ;;  %6162 = vmatmul.mubr.bf16.gmra.mrb[188].mxu0 %v11290_v57 }
 0x412   : > { %v5252_v28 = vmul.f32 0.2, %v7789_v51  ;;  %6171 = vmatprep.mubr.bf16.mxu0 %v11303_v17  ;;  %v5376_v18 = vmax.f32 %v7787_v7, %v5248_v41 }
 0x413   : > { %v5253_v21 = vmul.f32 0.2, %v7790_v16  ;;  %v5377_v60 = vmax.f32 %v7788_v26, %v5249_v5 }
 0x414   : > { %v5380_v52 = vmax.f32 %v7789_v51, %v5252_v28 }
 0x415   : > { %v5381_v35 = vmax.f32 %v7790_v16, %v5253_v21  ;;  %v5121_v9 = vpop.f32.mrb[212].mxu1 }
 0x416   : > { %v7791_v12 = vadd.f32 %v5121_v9, %v11151_v61  ;;  %v5123_v6 = vpop.f32.mrb[213].mxu1  ;;  %v5456_v44 = vpack.c.bf16 %v5380_v52, %v5376_v18 }
 0x417   : > { %v7792_v1 = vadd.f32 %v5123_v6, %v11156_v55  ;;  %v5125_v56 = vpop.f32.mrb[214].mxu1  ;;  %v5457_v49 = vpack.c.bf16 %v5381_v35, %v5377_v60 }
 0x418   : > { %v5256_v45 = vmul.f32 0.2, %v7791_v12  ;;  %v7793_v62 = vadd.f32 %v5125_v56, %v11151_v61  ;;  %v5127_v57 = vpop.f32.mrb[215].mxu1 }
 0x419   : > { %v5257_v19 = vmul.f32 0.2, %v7792_v1  ;;  %v7794_v17 = vadd.f32 %v5127_v57, %v11156_v55  ;;  %6172 = vmatmul.mubr.bf16.gmra.mrb[192].mxu0 %v11300_v46 }
 0x41a   : > { %v5260_v38 = vmul.f32 0.2, %v7793_v62  ;;  %6181 = vmatprep.mubr.bf16.mxu0 %v11313_v50  ;;  %v5384_v54 = vmax.f32 %v7791_v12, %v5256_v45 }
 0x41b   : > { %v5261_v37 = vmul.f32 0.2, %v7794_v17  ;;  %v5385_v39 = vmax.f32 %v7792_v1, %v5257_v19 }
 0x41c   : > { %v5388_v34 = vmax.f32 %v7793_v62, %v5260_v38 }
 0x41d   : > { %v5389_v48 = vmax.f32 %v7794_v17, %v5261_v37  ;;  %v5131_v22 = vpop.f32.mrb[216].mxu1 }
 0x41e   : > { %v7795_v27 = vadd.f32 %v5131_v22, %v11151_v61  ;;  %v5133_v3 = vpop.f32.mrb[217].mxu1  ;;  %v5460_v58 = vpack.c.bf16 %v5388_v34, %v5384_v54 }
 0x41f   : > { %v7796_v8 = vadd.f32 %v5133_v3, %v11156_v55  ;;  %v5135_v24 = vpop.f32.mrb[218].mxu1  ;;  %v5461_v30 = vpack.c.bf16 %v5389_v48, %v5385_v39 }
 0x420   : > { %v5264_v59 = vmul.f32 0.2, %v7795_v27  ;;  %v7797_v63 = vadd.f32 %v5135_v24, %v11151_v61  ;;  %v5137_v46 = vpop.f32.mrb[219].mxu1 }
 0x421   : > { %v5265_v40 = vmul.f32 0.2, %v7796_v8  ;;  %v7798_v50 = vadd.f32 %v5137_v46, %v11156_v55  ;;  %6182 = vmatmul.mubr.bf16.gmra.mrb[196].mxu0 %v11310_v36 }
 0x422   : > { %v5268_v42 = vmul.f32 0.2, %v7797_v63  ;;  %6191 = vmatprep.mubr.bf16.mxu0 %v11323_v0  ;;  %v5392_v33 = vmax.f32 %v7795_v27, %v5264_v59 }
 0x423   : > { %v5269_v29 = vmul.f32 0.2, %v7798_v50  ;;  %v5393_v11 = vmax.f32 %v7796_v8, %v5265_v40 }
 0x424   : > { %v5396_v32 = vmax.f32 %v7797_v63, %v5268_v42 }
 0x425   : > { %v5397_v23 = vmax.f32 %v7798_v50, %v5269_v29  ;;  %v5141_v43 = vpop.f32.mrb[220].mxu1 }
 0x426   : > { %v7799_v25 = vadd.f32 %v5141_v43, %v11151_v61  ;;  %v5143_v13 = vpop.f32.mrb[221].mxu1  ;;  %v5464_v20 = vpack.c.bf16 %v5396_v32, %v5392_v33 }
 0x427   : > { %v7800_v7 = vadd.f32 %v5143_v13, %v11156_v55  ;;  %v5145_v2 = vpop.f32.mrb[222].mxu1  ;;  %v5465_v26 = vpack.c.bf16 %v5397_v23, %v5393_v11 }
 0x428   : > { %v5272_v10 = vmul.f32 0.2, %v7799_v25  ;;  %v7801_v41 = vadd.f32 %v5145_v2, %v11151_v61  ;;  %v5147_v36 = vpop.f32.mrb[223].mxu1  ;;  %v5534_v61 = vld [vmem:[%s11500_s6] sm:$0x3] }
 0x429   : > { %v5273_v51 = vmul.f32 0.2, %v7800_v7  ;;  %v7802_v0 = vadd.f32 %v5147_v36, %v11156_v55  ;;  %6192 = vmatmul.mubr.bf16.gmra.mrb[200].mxu0 %v11320_v4  ;;  %v11362_v55 = vrot.slane %v5534_v61, %v11691_v53  ;;  %v11365_v4 = vrot.slane %v5534_v61, %v11692_v14 }
 0x42a   : > { %v5276_v15 = vmul.f32 0.2, %v7801_v41  ;;  %6201 = vmatprep.mubr.bf16.mxu0 %v11333_v31  ;;  %v5400_v16 = vmax.f32 %v7799_v25, %v5272_v10 }
 0x42b   : > { %v5277_v5 = vmul.f32 0.2, %v7802_v0  ;;  %v5401_v21 = vmax.f32 %v7800_v7, %v5273_v51 }
 0x42c   : > { %v5404_v28 = vmax.f32 %v7801_v41, %v5276_v15 }
 0x42d   : > { %v5405_v18 = vmax.f32 %v7802_v0, %v5277_v5 }
 0x42e   : > { %v5468_v52 = vpack.c.bf16 %v5404_v28, %v5400_v16 }
 0x42f   : > { %v5469_v60 = vpack.c.bf16 %v5405_v18, %v5401_v21 }
 0x431   : > { %6202 = vmatmul.mubr.bf16.gmra.mrb[204].mxu0 %v11330_v47 }
 0x432   : > { %6211 = vmatprep.mubr.bf16.mxu0 %v5457_v49 }
 0x439   : > { %6212 = vmatmul.mubr.bf16.gmra.mrb[208].mxu0 %v5456_v44 }
 0x43a   : > { %6221 = vmatprep.mubr.bf16.mxu0 %v5461_v30 }
 0x441   : > { %6222 = vmatmul.mubr.bf16.gmra.mrb[212].mxu0 %v5460_v58 }
 0x442   : > { %6231 = vmatprep.mubr.bf16.mxu0 %v5465_v26 }
 0x449   : > { %6232 = vmatmul.mubr.bf16.gmra.mrb[216].mxu0 %v5464_v20 }
 0x44a   : > { %6241 = vmatprep.mubr.bf16.mxu0 %v5469_v60 }
 0x451   : > { %6242 = vmatmul.mubr.bf16.gmra.mrb[220].mxu0 %v5468_v52 }
 0x4ac   : > { %v6093_v31 = vpop.f32.mrb[160].mxu0 }
 0x4ad   : > { %v7803_v47 = vadd.f32 %v6093_v31, %v11362_v55  ;;  %v6095_v35 = vpop.f32.mrb[161].mxu0 }
 0x4ae   : > { %v7804_v9 = vadd.f32 %v6095_v35, %v11365_v4  ;;  %v6097_v12 = vpop.f32.mrb[162].mxu0 }
 0x4af   : > { %v6252_v6 = vmul.f32 0.2, %v7803_v47  ;;  %v7805_v44 = vadd.f32 %v6097_v12, %v11362_v55  ;;  %v6099_v1 = vpop.f32.mrb[163].mxu0 }
 0x4b0   : > { %v6253_v56 = vmul.f32 0.2, %v7804_v9  ;;  %v7806_v49 = vadd.f32 %v6099_v1, %v11365_v4 }
 0x4b1   : > { %v6254_v45 = vmul.f32 0.2, %v7805_v44  ;;  %v6316_v62 = vmax.f32 %v7803_v47, %v6252_v6 }
 0x4b2   : > { %v6255_v53 = vmul.f32 0.2, %v7806_v49  ;;  %v6317_v14 = vmax.f32 %v7804_v9, %v6253_v56 }
 0x4b3   : > { %v6318_v57 = vmax.f32 %v7805_v44, %v6254_v45 }
 0x4b4   : > { %v6319_v19 = vmax.f32 %v7806_v49, %v6255_v53  ;;  %v6103_v17 = vpop.f32.mrb[164].mxu0 }
 0x4b5   : > { %v6380_v38 = vpack.c.bf16 %v6318_v57, %v6316_v62  ;;  %v7807_v37 = vadd.f32 %v6103_v17, %v11362_v55  ;;  %v6105_v54 = vpop.f32.mrb[165].mxu0 }
 0x4b6   : > { %v7808_v34 = vadd.f32 %v6105_v54, %v11365_v4  ;;  %v6107_v39 = vpop.f32.mrb[166].mxu0  ;;  %v6381_v48 = vpack.c.bf16 %v6319_v19, %v6317_v14 }
 0x4b7   : > { %v6256_v22 = vmul.f32 0.2, %v7807_v37  ;;  %v7809_v27 = vadd.f32 %v6107_v39, %v11362_v55  ;;  %v6109_v3 = vpop.f32.mrb[167].mxu0 }
 0x4b8   : > { %v6257_v58 = vmul.f32 0.2, %v7808_v34  ;;  %v7810_v8 = vadd.f32 %v6109_v3, %v11365_v4  ;;  %6579 = vmatprep.mubr.bf16.mxu1 %v6381_v48 }
 0x4b9   : > { %v6258_v24 = vmul.f32 0.2, %v7809_v27  ;;  %6580 = vmatmul.mubr.bf16.vlgmr.msra.gmra.mrb[224].mxu1 %v6380_v38  ;;  %v6320_v59 = vmax.f32 %v7807_v37, %v6256_v22 }
 0x4ba   : > { %v6259_v30 = vmul.f32 0.2, %v7810_v8  ;;  %v6321_v46 = vmax.f32 %v7808_v34, %v6257_v58 }
 0x4bb   : > { %v6322_v63 = vmax.f32 %v7809_v27, %v6258_v24 }
 0x4bc   : > { %v6323_v40 = vmax.f32 %v7810_v8, %v6259_v30  ;;  %v6113_v50 = vpop.f32.mrb[168].mxu0 }
 0x4bd   : > { %v7811_v42 = vadd.f32 %v6113_v50, %v11362_v55  ;;  %v6115_v29 = vpop.f32.mrb[169].mxu0  ;;  %v6382_v33 = vpack.c.bf16 %v6322_v63, %v6320_v59 }
 0x4be   : > { %v7812_v32 = vadd.f32 %v6115_v29, %v11365_v4  ;;  %v6117_v11 = vpop.f32.mrb[170].mxu0  ;;  %v6383_v23 = vpack.c.bf16 %v6323_v40, %v6321_v46 }
 0x4bf   : > { %v6260_v43 = vmul.f32 0.2, %v7811_v42  ;;  %v7813_v25 = vadd.f32 %v6117_v11, %v11362_v55  ;;  %v6119_v13 = vpop.f32.mrb[171].mxu0 }
 0x4c0   : > { %v6261_v20 = vmul.f32 0.2, %v7812_v32  ;;  %v7814_v7 = vadd.f32 %v6119_v13, %v11365_v4  ;;  %6587 = vmatprep.mubr.bf16.mxu1 %v6383_v23 }
 0x4c1   : > { %v6262_v2 = vmul.f32 0.2, %v7813_v25  ;;  %6588 = vmatmul.mubr.bf16.gmra.mrb[228].mxu1 %v6382_v33  ;;  %v6324_v10 = vmax.f32 %v7811_v42, %v6260_v43 }
 0x4c2   : > { %v6263_v26 = vmul.f32 0.2, %v7814_v7  ;;  %v6325_v36 = vmax.f32 %v7812_v32, %v6261_v20 }
 0x4c3   : > { %v6326_v41 = vmax.f32 %v7813_v25, %v6262_v2 }
 0x4c4   : > { %v6327_v51 = vmax.f32 %v7814_v7, %v6263_v26  ;;  %v6123_v0 = vpop.f32.mrb[172].mxu0 }
 0x4c5   : > { %v7815_v15 = vadd.f32 %v6123_v0, %v11362_v55  ;;  %v6125_v5 = vpop.f32.mrb[173].mxu0  ;;  %v6384_v16 = vpack.c.bf16 %v6326_v41, %v6324_v10 }
 0x4c6   : > { %v7816_v28 = vadd.f32 %v6125_v5, %v11365_v4  ;;  %v6127_v21 = vpop.f32.mrb[174].mxu0  ;;  %v6385_v18 = vpack.c.bf16 %v6327_v51, %v6325_v36 }
 0x4c7   : > { %v6264_v52 = vmul.f32 0.2, %v7815_v15  ;;  %v7817_v60 = vadd.f32 %v6127_v21, %v11362_v55  ;;  %v6129_v61 = vpop.f32.mrb[175].mxu0 }
 0x4c8   : > { %v6265_v31 = vmul.f32 0.2, %v7816_v28  ;;  %v7818_v47 = vadd.f32 %v6129_v61, %v11365_v4  ;;  %6595 = vmatprep.mubr.bf16.mxu1 %v6385_v18 }
 0x4c9   : > { %v6266_v35 = vmul.f32 0.2, %v7817_v60  ;;  %6596 = vmatmul.mubr.bf16.gmra.mrb[232].mxu1 %v6384_v16  ;;  %v6328_v12 = vmax.f32 %v7815_v15, %v6264_v52 }
 0x4ca   : > { %v6267_v9 = vmul.f32 0.2, %v7818_v47  ;;  %v6329_v44 = vmax.f32 %v7816_v28, %v6265_v31 }
 0x4cb   : > { %v6330_v6 = vmax.f32 %v7817_v60, %v6266_v35 }
 0x4cc   : > { %v6331_v1 = vmax.f32 %v7818_v47, %v6267_v9  ;;  %v6133_v56 = vpop.f32.mrb[176].mxu0 }
 0x4cd   : > { %v7819_v49 = vadd.f32 %v6133_v56, %v11362_v55  ;;  %v6135_v45 = vpop.f32.mrb[177].mxu0  ;;  %v6386_v53 = vpack.c.bf16 %v6330_v6, %v6328_v12 }
 0x4ce   : > { %v7820_v62 = vadd.f32 %v6135_v45, %v11365_v4  ;;  %v6137_v57 = vpop.f32.mrb[178].mxu0  ;;  %v6387_v14 = vpack.c.bf16 %v6331_v1, %v6329_v44 }
 0x4cf   : > { %v6268_v19 = vmul.f32 0.2, %v7819_v49  ;;  %v7821_v17 = vadd.f32 %v6137_v57, %v11362_v55  ;;  %v6139_v38 = vpop.f32.mrb[179].mxu0 }
 0x4d0   : > { %v6269_v37 = vmul.f32 0.2, %v7820_v62  ;;  %v7822_v54 = vadd.f32 %v6139_v38, %v11365_v4  ;;  %6603 = vmatprep.mubr.bf16.mxu1 %v6387_v14 }
 0x4d1   : > { %v6270_v34 = vmul.f32 0.2, %v7821_v17  ;;  %6604 = vmatmul.mubr.bf16.gmra.mrb[236].mxu1 %v6386_v53  ;;  %v6332_v48 = vmax.f32 %v7819_v49, %v6268_v19 }
 0x4d2   : > { %v6271_v39 = vmul.f32 0.2, %v7822_v54  ;;  %v6333_v27 = vmax.f32 %v7820_v62, %v6269_v37 }
 0x4d3   : > { %v6334_v22 = vmax.f32 %v7821_v17, %v6270_v34 }
 0x4d4   : > { %v6335_v3 = vmax.f32 %v7822_v54, %v6271_v39  ;;  %v6143_v58 = vpop.f32.mrb[180].mxu0 }
 0x4d5   : > { %v7823_v8 = vadd.f32 %v6143_v58, %v11362_v55  ;;  %v6145_v24 = vpop.f32.mrb[181].mxu0  ;;  %v6388_v30 = vpack.c.bf16 %v6334_v22, %v6332_v48 }
 0x4d6   : > { %v7824_v59 = vadd.f32 %v6145_v24, %v11365_v4  ;;  %v6147_v63 = vpop.f32.mrb[182].mxu0  ;;  %v6389_v46 = vpack.c.bf16 %v6335_v3, %v6333_v27 }
 0x4d7   : > { %v6272_v40 = vmul.f32 0.2, %v7823_v8  ;;  %v7825_v50 = vadd.f32 %v6147_v63, %v11362_v55  ;;  %v6149_v42 = vpop.f32.mrb[183].mxu0 }
 0x4d8   : > { %v6273_v29 = vmul.f32 0.2, %v7824_v59  ;;  %v7826_v33 = vadd.f32 %v6149_v42, %v11365_v4  ;;  %6611 = vmatprep.mubr.bf16.mxu1 %v6389_v46 }
 0x4d9   : > { %v6274_v32 = vmul.f32 0.2, %v7825_v50  ;;  %6612 = vmatmul.mubr.bf16.gmra.mrb[240].mxu1 %v6388_v30  ;;  %v6336_v23 = vmax.f32 %v7823_v8, %v6272_v40 }
 0x4da   : > { %v6275_v11 = vmul.f32 0.2, %v7826_v33  ;;  %v6337_v25 = vmax.f32 %v7824_v59, %v6273_v29 }
 0x4db   : > { %v6338_v43 = vmax.f32 %v7825_v50, %v6274_v32 }
 0x4dc   : > { %v6339_v13 = vmax.f32 %v7826_v33, %v6275_v11  ;;  %v6153_v20 = vpop.f32.mrb[184].mxu0 }
 0x4dd   : > { %v7827_v7 = vadd.f32 %v6153_v20, %v11362_v55  ;;  %v6155_v2 = vpop.f32.mrb[185].mxu0  ;;  %v6390_v26 = vpack.c.bf16 %v6338_v43, %v6336_v23 }
 0x4de   : > { %v7828_v10 = vadd.f32 %v6155_v2, %v11365_v4  ;;  %v6157_v41 = vpop.f32.mrb[186].mxu0  ;;  %v6391_v36 = vpack.c.bf16 %v6339_v13, %v6337_v25 }
 0x4df   : > { %v6276_v51 = vmul.f32 0.2, %v7827_v7  ;;  %v7829_v0 = vadd.f32 %v6157_v41, %v11362_v55  ;;  %v6159_v15 = vpop.f32.mrb[187].mxu0 }
 0x4e0   : > { %v6277_v5 = vmul.f32 0.2, %v7828_v10  ;;  %v7830_v16 = vadd.f32 %v6159_v15, %v11365_v4  ;;  %6619 = vmatprep.mubr.bf16.mxu1 %v6391_v36 }
 0x4e1   : > { %v6278_v28 = vmul.f32 0.2, %v7829_v0  ;;  %6620 = vmatmul.mubr.bf16.gmra.mrb[244].mxu1 %v6390_v26  ;;  %v6340_v18 = vmax.f32 %v7827_v7, %v6276_v51 }
 0x4e2   : > { %v6279_v21 = vmul.f32 0.2, %v7830_v16  ;;  %v6341_v60 = vmax.f32 %v7828_v10, %v6277_v5 }
 0x4e3   : > { %v6342_v52 = vmax.f32 %v7829_v0, %v6278_v28 }
 0x4e4   : > { %v6343_v61 = vmax.f32 %v7830_v16, %v6279_v21  ;;  %v6163_v31 = vpop.f32.mrb[188].mxu0 }
 0x4e5   : > { %v7831_v47 = vadd.f32 %v6163_v31, %v11362_v55  ;;  %v6165_v35 = vpop.f32.mrb[189].mxu0  ;;  %v6392_v9 = vpack.c.bf16 %v6342_v52, %v6340_v18 }
 0x4e6   : > { %v7832_v12 = vadd.f32 %v6165_v35, %v11365_v4  ;;  %v6167_v6 = vpop.f32.mrb[190].mxu0  ;;  %v6393_v44 = vpack.c.bf16 %v6343_v61, %v6341_v60 }
 0x4e7   : > { %v6280_v1 = vmul.f32 0.2, %v7831_v47  ;;  %v7833_v56 = vadd.f32 %v6167_v6, %v11362_v55  ;;  %v6169_v49 = vpop.f32.mrb[191].mxu0 }
 0x4e8   : > { %v6281_v45 = vmul.f32 0.2, %v7832_v12  ;;  %v7834_v53 = vadd.f32 %v6169_v49, %v11365_v4  ;;  %6627 = vmatprep.mubr.bf16.mxu1 %v6393_v44 }
 0x4e9   : > { %v6282_v62 = vmul.f32 0.2, %v7833_v56  ;;  %6628 = vmatmul.mubr.bf16.gmra.mrb[248].mxu1 %v6392_v9  ;;  %v6344_v14 = vmax.f32 %v7831_v47, %v6280_v1 }
 0x4ea   : > { %v6283_v57 = vmul.f32 0.2, %v7834_v53  ;;  %v6345_v17 = vmax.f32 %v7832_v12, %v6281_v45 }
 0x4eb   : > { %v6346_v19 = vmax.f32 %v7833_v56, %v6282_v62 }
 0x4ec   : > { %v6347_v38 = vmax.f32 %v7834_v53, %v6283_v57  ;;  %v6173_v37 = vpop.f32.mrb[192].mxu0 }
 0x4ed   : > { %v7835_v54 = vadd.f32 %v6173_v37, %v11362_v55  ;;  %v6175_v34 = vpop.f32.mrb[193].mxu0  ;;  %v6394_v39 = vpack.c.bf16 %v6346_v19, %v6344_v14 }
 0x4ee   : > { %v7836_v48 = vadd.f32 %v6175_v34, %v11365_v4  ;;  %v6177_v22 = vpop.f32.mrb[194].mxu0  ;;  %v6395_v27 = vpack.c.bf16 %v6347_v38, %v6345_v17 }
 0x4ef   : > { %v6284_v3 = vmul.f32 0.2, %v7835_v54  ;;  %v7837_v58 = vadd.f32 %v6177_v22, %v11362_v55  ;;  %v6179_v8 = vpop.f32.mrb[195].mxu0 }
 0x4f0   : > { %v6285_v24 = vmul.f32 0.2, %v7836_v48  ;;  %v7838_v30 = vadd.f32 %v6179_v8, %v11365_v4  ;;  %6635 = vmatprep.mubr.bf16.mxu1 %v6395_v27 }
 0x4f1   : > { %v6286_v59 = vmul.f32 0.2, %v7837_v58  ;;  %6636 = vmatmul.mubr.bf16.gmra.mrb[252].mxu1 %v6394_v39  ;;  %v6348_v46 = vmax.f32 %v7835_v54, %v6284_v3 }
 0x4f2   : > { %v6287_v63 = vmul.f32 0.2, %v7838_v30  ;;  %v6349_v50 = vmax.f32 %v7836_v48, %v6285_v24 }
 0x4f3   : > { %v6350_v40 = vmax.f32 %v7837_v58, %v6286_v59 }
 0x4f4   : > { %v6351_v42 = vmax.f32 %v7838_v30, %v6287_v63  ;;  %v6183_v29 = vpop.f32.mrb[196].mxu0 }
 0x4f5   : > { %v6396_v33 = vpack.c.bf16 %v6350_v40, %v6348_v46  ;;  %v7839_v32 = vadd.f32 %v6183_v29, %v11362_v55  ;;  %v6185_v11 = vpop.f32.mrb[197].mxu0 }
 0x4f6   : > { %v7840_v23 = vadd.f32 %v6185_v11, %v11365_v4  ;;  %v6187_v43 = vpop.f32.mrb[198].mxu0  ;;  %v6397_v25 = vpack.c.bf16 %v6351_v42, %v6349_v50 }
 0x4f7   : > { %v6288_v13 = vmul.f32 0.2, %v7839_v32  ;;  %v7841_v20 = vadd.f32 %v6187_v43, %v11362_v55  ;;  %v6189_v7 = vpop.f32.mrb[199].mxu0 }
 0x4f8   : > { %v6289_v2 = vmul.f32 0.2, %v7840_v23  ;;  %v7842_v26 = vadd.f32 %v6189_v7, %v11365_v4  ;;  %6643 = vmatprep.mubr.bf16.mxu1 %v6397_v25 }
 0x4f9   : > { %v6290_v10 = vmul.f32 0.2, %v7841_v20  ;;  %6644 = vmatmul.mubr.bf16.gmra.mrb[0].mxu1 %v6396_v33  ;;  %v6352_v36 = vmax.f32 %v7839_v32, %v6288_v13 }
 0x4fa   : > { %v6291_v41 = vmul.f32 0.2, %v7842_v26  ;;  %v6353_v0 = vmax.f32 %v7840_v23, %v6289_v2 }
 0x4fb   : > { %v6354_v51 = vmax.f32 %v7841_v20, %v6290_v10 }
 0x4fc   : > { %v6355_v15 = vmax.f32 %v7842_v26, %v6291_v41  ;;  %v6193_v5 = vpop.f32.mrb[200].mxu0 }
 0x4fd   : > { %v6398_v16 = vpack.c.bf16 %v6354_v51, %v6352_v36  ;;  %v7843_v28 = vadd.f32 %v6193_v5, %v11362_v55  ;;  %v6195_v21 = vpop.f32.mrb[201].mxu0 }
 0x4fe   : > { %v7844_v18 = vadd.f32 %v6195_v21, %v11365_v4  ;;  %v6197_v52 = vpop.f32.mrb[202].mxu0  ;;  %v6399_v60 = vpack.c.bf16 %v6355_v15, %v6353_v0 }
 0x4ff   : > { %v6292_v61 = vmul.f32 0.2, %v7843_v28  ;;  %v7845_v31 = vadd.f32 %v6197_v52, %v11362_v55  ;;  %v6199_v47 = vpop.f32.mrb[203].mxu0 }
 0x500   : > { %v6293_v35 = vmul.f32 0.2, %v7844_v18  ;;  %v7846_v9 = vadd.f32 %v6199_v47, %v11365_v4  ;;  %6651 = vmatprep.mubr.bf16.mxu1 %v6399_v60 }
 0x501   : > { %v6294_v12 = vmul.f32 0.2, %v7845_v31  ;;  %6652 = vmatmul.mubr.bf16.gmra.mrb[4].mxu1 %v6398_v16  ;;  %v6356_v44 = vmax.f32 %v7843_v28, %v6292_v61 }
 0x502   : > { %v6295_v6 = vmul.f32 0.2, %v7846_v9  ;;  %v6357_v56 = vmax.f32 %v7844_v18, %v6293_v35 }
 0x503   : > { %v6358_v1 = vmax.f32 %v7845_v31, %v6294_v12 }
 0x504   : > { %v6359_v49 = vmax.f32 %v7846_v9, %v6295_v6  ;;  %v6203_v45 = vpop.f32.mrb[204].mxu0 }
 0x505   : > { %v6400_v53 = vpack.c.bf16 %v6358_v1, %v6356_v44  ;;  %v7847_v62 = vadd.f32 %v6203_v45, %v11362_v55  ;;  %v6205_v57 = vpop.f32.mrb[205].mxu0 }
 0x506   : > { %v7848_v14 = vadd.f32 %v6205_v57, %v11365_v4  ;;  %v6207_v19 = vpop.f32.mrb[206].mxu0  ;;  %v6401_v17 = vpack.c.bf16 %v6359_v49, %v6357_v56 }
 0x507   : > { %v6296_v38 = vmul.f32 0.2, %v7847_v62  ;;  %v7849_v37 = vadd.f32 %v6207_v19, %v11362_v55  ;;  %v6209_v54 = vpop.f32.mrb[207].mxu0 }
 0x508   : > { %v6297_v34 = vmul.f32 0.2, %v7848_v14  ;;  %v7850_v39 = vadd.f32 %v6209_v54, %v11365_v4  ;;  %6659 = vmatprep.mubr.bf16.mxu1 %v6401_v17 }
 0x509   : > { %v6298_v48 = vmul.f32 0.2, %v7849_v37  ;;  %6660 = vmatmul.mubr.bf16.gmra.mrb[8].mxu1 %v6400_v53  ;;  %v6360_v27 = vmax.f32 %v7847_v62, %v6296_v38 }
 0x50a   : > { %v6299_v22 = vmul.f32 0.2, %v7850_v39  ;;  %v6361_v58 = vmax.f32 %v7848_v14, %v6297_v34 }
 0x50b   : > { %v6362_v3 = vmax.f32 %v7849_v37, %v6298_v48 }
 0x50c   : > { %v6363_v8 = vmax.f32 %v7850_v39, %v6299_v22  ;;  %v6213_v24 = vpop.f32.mrb[208].mxu0 }
 0x50d   : > { %v6402_v30 = vpack.c.bf16 %v6362_v3, %v6360_v27  ;;  %v7851_v59 = vadd.f32 %v6213_v24, %v11362_v55  ;;  %v6215_v63 = vpop.f32.mrb[209].mxu0 }
 0x50e   : > { %v7852_v46 = vadd.f32 %v6215_v63, %v11365_v4  ;;  %v6217_v40 = vpop.f32.mrb[210].mxu0  ;;  %v6403_v50 = vpack.c.bf16 %v6363_v8, %v6361_v58 }
 0x50f   : > { %v6300_v42 = vmul.f32 0.2, %v7851_v59  ;;  %v7853_v29 = vadd.f32 %v6217_v40, %v11362_v55  ;;  %v6219_v33 = vpop.f32.mrb[211].mxu0 }
 0x510   : > { %v6301_v32 = vmul.f32 0.2, %v7852_v46  ;;  %v7854_v11 = vadd.f32 %v6219_v33, %v11365_v4  ;;  %6667 = vmatprep.mubr.bf16.mxu1 %v6403_v50 }
 0x511   : > { %v6302_v23 = vmul.f32 0.2, %v7853_v29  ;;  %6668 = vmatmul.mubr.bf16.gmra.mrb[12].mxu1 %v6402_v30  ;;  %v6364_v25 = vmax.f32 %v7851_v59, %v6300_v42 }
 0x512   : > { %v6303_v43 = vmul.f32 0.2, %v7854_v11  ;;  %v6365_v20 = vmax.f32 %v7852_v46, %v6301_v32 }
 0x513   : > { %v6366_v13 = vmax.f32 %v7853_v29, %v6302_v23 }
 0x514   : > { %v6367_v7 = vmax.f32 %v7854_v11, %v6303_v43  ;;  %v6223_v2 = vpop.f32.mrb[212].mxu0 }
 0x515   : > { %v6404_v26 = vpack.c.bf16 %v6366_v13, %v6364_v25  ;;  %v7855_v10 = vadd.f32 %v6223_v2, %v11362_v55  ;;  %v6225_v41 = vpop.f32.mrb[213].mxu0 }
 0x516   : > { %v7856_v36 = vadd.f32 %v6225_v41, %v11365_v4  ;;  %v6227_v51 = vpop.f32.mrb[214].mxu0  ;;  %v6405_v0 = vpack.c.bf16 %v6367_v7, %v6365_v20 }
 0x517   : > { %v6304_v15 = vmul.f32 0.2, %v7855_v10  ;;  %v7857_v5 = vadd.f32 %v6227_v51, %v11362_v55  ;;  %v6229_v16 = vpop.f32.mrb[215].mxu0 }
 0x518   : > { %v6305_v28 = vmul.f32 0.2, %v7856_v36  ;;  %v7858_v21 = vadd.f32 %v6229_v16, %v11365_v4  ;;  %6675 = vmatprep.mubr.bf16.mxu1 %v6405_v0 }
 0x519   : > { %v6306_v18 = vmul.f32 0.2, %v7857_v5  ;;  %6676 = vmatmul.mubr.bf16.gmra.mrb[16].mxu1 %v6404_v26  ;;  %v6368_v60 = vmax.f32 %v7855_v10, %v6304_v15 }
 0x51a   : > { %v6307_v52 = vmul.f32 0.2, %v7858_v21  ;;  %v6369_v31 = vmax.f32 %v7856_v36, %v6305_v28 }
 0x51b   : > { %v6370_v61 = vmax.f32 %v7857_v5, %v6306_v18 }
 0x51c   : > { %v6371_v47 = vmax.f32 %v7858_v21, %v6307_v52  ;;  %v6233_v35 = vpop.f32.mrb[216].mxu0 }
 0x51d   : > { %v6406_v9 = vpack.c.bf16 %v6370_v61, %v6368_v60  ;;  %v7859_v12 = vadd.f32 %v6233_v35, %v11362_v55  ;;  %v6235_v6 = vpop.f32.mrb[217].mxu0 }
 0x51e   : > { %v7860_v44 = vadd.f32 %v6235_v6, %v11365_v4  ;;  %v6237_v1 = vpop.f32.mrb[218].mxu0  ;;  %v6407_v56 = vpack.c.bf16 %v6371_v47, %v6369_v31 }
 0x51f   : > { %v6308_v49 = vmul.f32 0.2, %v7859_v12  ;;  %v7861_v45 = vadd.f32 %v6237_v1, %v11362_v55  ;;  %v6239_v53 = vpop.f32.mrb[219].mxu0 }
 0x520   : > { %v6309_v62 = vmul.f32 0.2, %v7860_v44  ;;  %v7862_v57 = vadd.f32 %v6239_v53, %v11365_v4  ;;  %6683 = vmatprep.mubr.bf16.mxu1 %v6407_v56 }
 0x521   : > { %v6310_v14 = vmul.f32 0.2, %v7861_v45  ;;  %6684 = vmatmul.mubr.bf16.gmra.mrb[20].mxu1 %v6406_v9  ;;  %v6372_v17 = vmax.f32 %v7859_v12, %v6308_v49 }
 0x522   : > { %v6311_v19 = vmul.f32 0.2, %v7862_v57  ;;  %v6373_v37 = vmax.f32 %v7860_v44, %v6309_v62 }
 0x523   : > { %v6374_v38 = vmax.f32 %v7861_v45, %v6310_v14 }
 0x524   : > { %v6375_v54 = vmax.f32 %v7862_v57, %v6311_v19  ;;  %v6243_v34 = vpop.f32.mrb[220].mxu0 }
 0x525   : > { %v6408_v39 = vpack.c.bf16 %v6374_v38, %v6372_v17  ;;  %v7863_v48 = vadd.f32 %v6243_v34, %v11362_v55  ;;  %v6245_v22 = vpop.f32.mrb[221].mxu0 }
 0x526   : > { %v7864_v27 = vadd.f32 %v6245_v22, %v11365_v4  ;;  %v6247_v3 = vpop.f32.mrb[222].mxu0  ;;  %v6409_v58 = vpack.c.bf16 %v6375_v54, %v6373_v37 }
 0x527   : > { %v6312_v8 = vmul.f32 0.2, %v7863_v48  ;;  %v7865_v24 = vadd.f32 %v6247_v3, %v11362_v55  ;;  %v6249_v30 = vpop.f32.mrb[223].mxu0  ;;  %v11434_v55 = vld [vmem:[%s11502_s8] ss:$0 sm:$0xff] }
 0x528   : > { %v6313_v59 = vmul.f32 0.2, %v7864_v27  ;;  %v7866_v63 = vadd.f32 %v6249_v30, %v11365_v4  ;;  %6691 = vmatprep.mubr.bf16.mxu1 %v6409_v58 }
 0x529   : > { %v6314_v46 = vmul.f32 0.2, %v7865_v24  ;;  %6692 = vmatmul.mubr.bf16.gmra.mrb[24].mxu1 %v6408_v39  ;;  %v6376_v50 = vmax.f32 %v7863_v48, %v6312_v8 }
 0x52a   : > { %v6315_v40 = vmul.f32 0.2, %v7866_v63  ;;  %v6377_v29 = vmax.f32 %v7864_v27, %v6313_v59 }
 0x52b   : > { %v6378_v42 = vmax.f32 %v7865_v24, %v6314_v46 }
 0x52c   : > { %v6379_v33 = vmax.f32 %v7866_v63, %v6315_v40 }
 0x52d   : > { %v6410_v32 = vpack.c.bf16 %v6378_v42, %v6376_v50 }
 0x52e   : > { %v6411_v11 = vpack.c.bf16 %v6379_v33, %v6377_v29 }
 0x530   : > { %6699 = vmatprep.mubr.bf16.mxu1 %v6411_v11 }
 0x531   : > { %6700 = vmatmul.mubr.bf16.gmra.mrb[28].mxu1 %v6410_v32 }
 0x58c   : > { %v7575_v23 = vpop.f32.mrb[224].mxu1 }
 0x58d   : > { %v7576_v43 = vpop.f32.mrb[225].mxu1 }
 0x58e   : > { %v7577_v4 = vadd.f32 %v7576_v43, %v7575_v23  ;;  %v7578_v25 = vpop.f32.mrb[226].mxu1 }
 0x58f   : > { %v7579_v13 = vpop.f32.mrb[227].mxu1 }
 0x590   : > { %v6582_v20 = vadd.f32 %v7577_v4, %v11434_v55  ;;  %v7580_v7 = vadd.f32 %v7579_v13, %v7578_v25 }
 0x592   : > { %v6585_v2 = vadd.f32 %v7580_v7, %v11434_v55  ;;  %8836 = vtanh.f32 %v6582_v20 }
 0x594   : > { %8838 = vtanh.f32 %v6585_v2  ;;  %v7581_v26 = vpop.f32.mrb[228].mxu1 }
 0x595   : > { %v7582_v10 = vpop.f32.mrb[229].mxu1 }
 0x596   : > { %v7583_v41 = vadd.f32 %v7582_v10, %v7581_v26  ;;  %v7584_v36 = vpop.f32.mrb[230].mxu1 }
 0x597   : > { %v7585_v51 = vpop.f32.mrb[231].mxu1 }
 0x598   : > { %v6590_v0 = vadd.f32 %v7583_v41, %v11434_v55  ;;  %v7586_v15 = vadd.f32 %v7585_v51, %v7584_v36 }
 0x59a   : > { %v6593_v5 = vadd.f32 %v7586_v15, %v11434_v55  ;;  %8840 = vtanh.f32 %v6590_v0 }
 0x59c   : > { %8842 = vtanh.f32 %v6593_v5  ;;  %v7587_v16 = vpop.f32.mrb[232].mxu1  ;;  %v8837_v28 = vpop.eup %8836 }
 0x59d   : > { %v7588_v21 = vpop.f32.mrb[233].mxu1 }
 0x59e   : > { %v8839_v18 = vpop.eup %8838  ;;  %v7589_v52 = vadd.f32 %v7588_v21, %v7587_v16  ;;  %v7590_v60 = vpop.f32.mrb[234].mxu1 }
 0x59f   : > { %v7467_v61 = vpack.c.bf16 %v8839_v18, %v8837_v28  ;;  %v7591_v31 = vpop.f32.mrb[235].mxu1 }
 0x5a0   : > { %v6598_v47 = vadd.f32 %v7589_v52, %v11434_v55  ;;  %v7592_v35 = vadd.f32 %v7591_v31, %v7590_v60 }
 0x5a1   : > { %7468 = vst [vmem:[%s11445_s18] sm:$0xff] %v7467_v61  }
 0x5a2   : > { %v6601_v9 = vadd.f32 %v7592_v35, %v11434_v55  ;;  %8844 = vtanh.f32 %v6598_v47 }
 0x5a4   : > { %8846 = vtanh.f32 %v6601_v9  ;;  %v7593_v12 = vpop.f32.mrb[236].mxu1  ;;  %v8841_v6 = vpop.eup %8840 }
 0x5a5   : > { %v7594_v44 = vpop.f32.mrb[237].mxu1 }
 0x5a6   : > { %v8843_v1 = vpop.eup %8842  ;;  %v7595_v56 = vadd.f32 %v7594_v44, %v7593_v12  ;;  %v7596_v49 = vpop.f32.mrb[238].mxu1 }
 0x5a7   : > { %v7472_v45 = vpack.c.bf16 %v8843_v1, %v8841_v6  ;;  %v7597_v53 = vpop.f32.mrb[239].mxu1 }
 0x5a8   : > { %v6606_v62 = vadd.f32 %v7595_v56, %v11434_v55  ;;  %v7598_v57 = vadd.f32 %v7597_v53, %v7596_v49 }
 0x5a9   : > { %7544 = vst [vmem:[%s11445_s18 + $0x8] sm:$0xff] %v7472_v45  }
 0x5aa   : > { %v6609_v14 = vadd.f32 %v7598_v57, %v11434_v55  ;;  %8848 = vtanh.f32 %v6606_v62 }
 0x5ac   : > { %8850 = vtanh.f32 %v6609_v14  ;;  %v7599_v19 = vpop.f32.mrb[240].mxu1  ;;  %v8845_v17 = vpop.eup %8844 }
 0x5ad   : > { %v7600_v38 = vpop.f32.mrb[241].mxu1 }
 0x5ae   : > { %v8847_v37 = vpop.eup %8846  ;;  %v7601_v54 = vadd.f32 %v7600_v38, %v7599_v19  ;;  %v7602_v34 = vpop.f32.mrb[242].mxu1 }
 0x5af   : > { %v7477_v39 = vpack.c.bf16 %v8847_v37, %v8845_v17  ;;  %v7603_v48 = vpop.f32.mrb[243].mxu1 }
 0x5b0   : > { %v6614_v22 = vadd.f32 %v7601_v54, %v11434_v55  ;;  %v7604_v27 = vadd.f32 %v7603_v48, %v7602_v34 }
 0x5b1   : > { %7545 = vst [vmem:[%s11445_s18 + $0x10] sm:$0xff] %v7477_v39  }
 0x5b2   : > { %v6617_v3 = vadd.f32 %v7604_v27, %v11434_v55  ;;  %8852 = vtanh.f32 %v6614_v22 }
 0x5b4   : > { %8854 = vtanh.f32 %v6617_v3  ;;  %v7605_v58 = vpop.f32.mrb[244].mxu1  ;;  %v8849_v8 = vpop.eup %8848 }
 0x5b5   : > { %v7606_v24 = vpop.f32.mrb[245].mxu1 }
 0x5b6   : > { %v8851_v30 = vpop.eup %8850  ;;  %v7607_v59 = vadd.f32 %v7606_v24, %v7605_v58  ;;  %v7608_v63 = vpop.f32.mrb[246].mxu1 }
 0x5b7   : > { %v7482_v46 = vpack.c.bf16 %v8851_v30, %v8849_v8  ;;  %v7609_v40 = vpop.f32.mrb[247].mxu1 }
 0x5b8   : > { %v6622_v50 = vadd.f32 %v7607_v59, %v11434_v55  ;;  %v7610_v42 = vadd.f32 %v7609_v40, %v7608_v63 }
 0x5b9   : > { %7546 = vst [vmem:[%s11445_s18 + $0x18] sm:$0xff] %v7482_v46  }
 0x5ba   : > { %v6625_v29 = vadd.f32 %v7610_v42, %v11434_v55  ;;  %8856 = vtanh.f32 %v6622_v50 }
 0x5bc   : > { %8858 = vtanh.f32 %v6625_v29  ;;  %v7611_v33 = vpop.f32.mrb[248].mxu1  ;;  %v8853_v32 = vpop.eup %8852 }
 0x5bd   : > { %v7612_v11 = vpop.f32.mrb[249].mxu1 }
 0x5be   : > { %v8855_v23 = vpop.eup %8854  ;;  %v7613_v43 = vadd.f32 %v7612_v11, %v7611_v33  ;;  %v7614_v4 = vpop.f32.mrb[250].mxu1 }
 0x5bf   : > { %v7487_v25 = vpack.c.bf16 %v8855_v23, %v8853_v32  ;;  %v7615_v13 = vpop.f32.mrb[251].mxu1 }
 0x5c0   : > { %v6630_v20 = vadd.f32 %v7613_v43, %v11434_v55  ;;  %v7616_v7 = vadd.f32 %v7615_v13, %v7614_v4 }
 0x5c1   : > { %7547 = vst [vmem:[%s11445_s18 + $0x20] sm:$0xff] %v7487_v25  }
 0x5c2   : > { %v6633_v2 = vadd.f32 %v7616_v7, %v11434_v55  ;;  %8860 = vtanh.f32 %v6630_v20 }
 0x5c4   : > { %8862 = vtanh.f32 %v6633_v2  ;;  %v7617_v26 = vpop.f32.mrb[252].mxu1  ;;  %v8857_v10 = vpop.eup %8856 }
 0x5c5   : > { %v7618_v41 = vpop.f32.mrb[253].mxu1 }
 0x5c6   : > { %v8859_v36 = vpop.eup %8858  ;;  %v7619_v51 = vadd.f32 %v7618_v41, %v7617_v26  ;;  %v7620_v0 = vpop.f32.mrb[254].mxu1 }
 0x5c7   : > { %v7492_v15 = vpack.c.bf16 %v8859_v36, %v8857_v10  ;;  %v7621_v5 = vpop.f32.mrb[255].mxu1 }
 0x5c8   : > { %v6638_v16 = vadd.f32 %v7619_v51, %v11434_v55  ;;  %v7622_v28 = vadd.f32 %v7621_v5, %v7620_v0 }
 0x5c9   : > { %7548 = vst [vmem:[%s11445_s18 + $0x28] sm:$0xff] %v7492_v15  }
 0x5ca   : > { %v6641_v21 = vadd.f32 %v7622_v28, %v11434_v55  ;;  %8864 = vtanh.f32 %v6638_v16 }
 0x5cc   : > { %8866 = vtanh.f32 %v6641_v21  ;;  %v7623_v18 = vpop.f32.mrb[0].mxu1  ;;  %v8861_v52 = vpop.eup %8860 }
 0x5cd   : > { %v7624_v60 = vpop.f32.mrb[1].mxu1 }
 0x5ce   : > { %v8863_v61 = vpop.eup %8862  ;;  %v7625_v31 = vadd.f32 %v7624_v60, %v7623_v18  ;;  %v7626_v47 = vpop.f32.mrb[2].mxu1 }
 0x5cf   : > { %v7497_v35 = vpack.c.bf16 %v8863_v61, %v8861_v52  ;;  %v7627_v9 = vpop.f32.mrb[3].mxu1 }
 0x5d0   : > { %v6646_v12 = vadd.f32 %v7625_v31, %v11434_v55  ;;  %v7628_v6 = vadd.f32 %v7627_v9, %v7626_v47 }
 0x5d1   : > { %7549 = vst [vmem:[%s11445_s18 + $0x30] sm:$0xff] %v7497_v35  }
 0x5d2   : > { %v6649_v44 = vadd.f32 %v7628_v6, %v11434_v55  ;;  %8868 = vtanh.f32 %v6646_v12 }
 0x5d4   : > { %8870 = vtanh.f32 %v6649_v44  ;;  %v7629_v1 = vpop.f32.mrb[4].mxu1  ;;  %v8865_v56 = vpop.eup %8864 }
 0x5d5   : > { %v7630_v49 = vpop.f32.mrb[5].mxu1 }
 0x5d6   : > { %v8867_v45 = vpop.eup %8866  ;;  %v7631_v53 = vadd.f32 %v7630_v49, %v7629_v1  ;;  %v7632_v62 = vpop.f32.mrb[6].mxu1 }
 0x5d7   : > { %v7502_v57 = vpack.c.bf16 %v8867_v45, %v8865_v56  ;;  %v7633_v14 = vpop.f32.mrb[7].mxu1 }
 0x5d8   : > { %v6654_v19 = vadd.f32 %v7631_v53, %v11434_v55  ;;  %v7634_v17 = vadd.f32 %v7633_v14, %v7632_v62 }
 0x5d9   : > { %7550 = vst [vmem:[%s11445_s18 + $0x38] sm:$0xff] %v7502_v57  }
 0x5da   : > { %v6657_v38 = vadd.f32 %v7634_v17, %v11434_v55  ;;  %8872 = vtanh.f32 %v6654_v19 }
 0x5dc   : > { %8874 = vtanh.f32 %v6657_v38  ;;  %v7635_v37 = vpop.f32.mrb[8].mxu1  ;;  %v8869_v54 = vpop.eup %8868 }
 0x5dd   : > { %v7636_v34 = vpop.f32.mrb[9].mxu1 }
 0x5de   : > { %v8871_v39 = vpop.eup %8870  ;;  %v7637_v48 = vadd.f32 %v7636_v34, %v7635_v37  ;;  %v7638_v22 = vpop.f32.mrb[10].mxu1 }
 0x5df   : > { %v7507_v27 = vpack.c.bf16 %v8871_v39, %v8869_v54  ;;  %v7639_v3 = vpop.f32.mrb[11].mxu1 }
 0x5e0   : > { %v6662_v58 = vadd.f32 %v7637_v48, %v11434_v55  ;;  %v7640_v8 = vadd.f32 %v7639_v3, %v7638_v22 }
 0x5e1   : > { %7551 = vst [vmem:[%s11445_s18 + $0x40] sm:$0xff] %v7507_v27  }
 0x5e2   : > { %v6665_v24 = vadd.f32 %v7640_v8, %v11434_v55  ;;  %8876 = vtanh.f32 %v6662_v58 }
 0x5e4   : > { %8878 = vtanh.f32 %v6665_v24  ;;  %v7641_v30 = vpop.f32.mrb[12].mxu1  ;;  %v8873_v59 = vpop.eup %8872 }
 0x5e5   : > { %v7642_v63 = vpop.f32.mrb[13].mxu1 }
 0x5e6   : > { %v8875_v46 = vpop.eup %8874  ;;  %v7643_v40 = vadd.f32 %v7642_v63, %v7641_v30  ;;  %v7644_v50 = vpop.f32.mrb[14].mxu1 }
 0x5e7   : > { %v7512_v42 = vpack.c.bf16 %v8875_v46, %v8873_v59  ;;  %v7645_v29 = vpop.f32.mrb[15].mxu1 }
 0x5e8   : > { %v6670_v33 = vadd.f32 %v7643_v40, %v11434_v55  ;;  %v7646_v32 = vadd.f32 %v7645_v29, %v7644_v50 }
 0x5e9   : > { %7552 = vst [vmem:[%s11445_s18 + $0x48] sm:$0xff] %v7512_v42  }
 0x5ea   : > { %v6673_v11 = vadd.f32 %v7646_v32, %v11434_v55  ;;  %8880 = vtanh.f32 %v6670_v33 }
 0x5ec   : > { %8882 = vtanh.f32 %v6673_v11  ;;  %v7647_v23 = vpop.f32.mrb[16].mxu1  ;;  %v8877_v43 = vpop.eup %8876 }
 0x5ed   : > { %v7648_v4 = vpop.f32.mrb[17].mxu1 }
 0x5ee   : > { %v8879_v25 = vpop.eup %8878  ;;  %v7649_v13 = vadd.f32 %v7648_v4, %v7647_v23  ;;  %v7650_v20 = vpop.f32.mrb[18].mxu1 }
 0x5ef   : > { %v7517_v7 = vpack.c.bf16 %v8879_v25, %v8877_v43  ;;  %v7651_v2 = vpop.f32.mrb[19].mxu1 }
 0x5f0   : > { %v6678_v26 = vadd.f32 %v7649_v13, %v11434_v55  ;;  %v7652_v10 = vadd.f32 %v7651_v2, %v7650_v20 }
 0x5f1   : > { %7553 = vst [vmem:[%s11445_s18 + $0x50] sm:$0xff] %v7517_v7  }
 0x5f2   : > { %v6681_v41 = vadd.f32 %v7652_v10, %v11434_v55  ;;  %8884 = vtanh.f32 %v6678_v26 }
 0x5f4   : > { %8886 = vtanh.f32 %v6681_v41  ;;  %v7653_v36 = vpop.f32.mrb[20].mxu1  ;;  %v8881_v51 = vpop.eup %8880 }
 0x5f5   : > { %v7654_v0 = vpop.f32.mrb[21].mxu1 }
 0x5f6   : > { %v8883_v15 = vpop.eup %8882  ;;  %v7655_v5 = vadd.f32 %v7654_v0, %v7653_v36  ;;  %v7656_v16 = vpop.f32.mrb[22].mxu1 }
 0x5f7   : > { %v7522_v28 = vpack.c.bf16 %v8883_v15, %v8881_v51  ;;  %v7657_v21 = vpop.f32.mrb[23].mxu1 }
 0x5f8   : > { %v6686_v18 = vadd.f32 %v7655_v5, %v11434_v55  ;;  %v7658_v52 = vadd.f32 %v7657_v21, %v7656_v16 }
 0x5f9   : > { %7554 = vst [vmem:[%s11445_s18 + $0x58] sm:$0xff] %v7522_v28  }
 0x5fa   : > { %v6689_v60 = vadd.f32 %v7658_v52, %v11434_v55  ;;  %8888 = vtanh.f32 %v6686_v18 }
 0x5fc   : > { %8890 = vtanh.f32 %v6689_v60  ;;  %v7659_v61 = vpop.f32.mrb[24].mxu1  ;;  %v8885_v31 = vpop.eup %8884 }
 0x5fd   : > { %v7660_v47 = vpop.f32.mrb[25].mxu1 }
 0x5fe   : > { %v8887_v35 = vpop.eup %8886  ;;  %v7661_v9 = vadd.f32 %v7660_v47, %v7659_v61  ;;  %v7662_v12 = vpop.f32.mrb[26].mxu1 }
 0x5ff   : > { %v7527_v6 = vpack.c.bf16 %v8887_v35, %v8885_v31  ;;  %v7663_v44 = vpop.f32.mrb[27].mxu1 }
 0x600   : > { %v6694_v1 = vadd.f32 %v7661_v9, %v11434_v55  ;;  %v7664_v56 = vadd.f32 %v7663_v44, %v7662_v12 }
 0x601   : > { %7555 = vst [vmem:[%s11445_s18 + $0x60] sm:$0xff] %v7527_v6  }
 0x602   : > { %v6697_v49 = vadd.f32 %v7664_v56, %v11434_v55  ;;  %8892 = vtanh.f32 %v6694_v1 }
 0x604   : > { %8894 = vtanh.f32 %v6697_v49  ;;  %v7665_v45 = vpop.f32.mrb[28].mxu1  ;;  %v8889_v53 = vpop.eup %8888 }
 0x605   : > { %v7666_v62 = vpop.f32.mrb[29].mxu1 }
 0x606   : > { %v8891_v57 = vpop.eup %8890  ;;  %v7667_v14 = vadd.f32 %v7666_v62, %v7665_v45  ;;  %v7668_v19 = vpop.f32.mrb[30].mxu1 }
 0x607   : > { %v7532_v17 = vpack.c.bf16 %v8891_v57, %v8889_v53  ;;  %v7669_v38 = vpop.f32.mrb[31].mxu1 }
 0x608   : > { %v6702_v37 = vadd.f32 %v7667_v14, %v11434_v55  ;;  %v7670_v54 = vadd.f32 %v7669_v38, %v7668_v19 }
 0x609   : > { %7556 = vst [vmem:[%s11445_s18 + $0x68] sm:$0xff] %v7532_v17  }
 0x60a   : > { %v6705_v34 = vadd.f32 %v7670_v54, %v11434_v55  ;;  %8896 = vtanh.f32 %v6702_v37 }
 0x60c   : > { %8898 = vtanh.f32 %v6705_v34  ;;  %v8893_v39 = vpop.eup %8892 }
 0x60e   : > { %v8895_v48 = vpop.eup %8894 }
 0x60f   : > { %v7537_v22 = vpack.c.bf16 %v8895_v48, %v8893_v39 }
 0x611   : > { %7557 = vst [vmem:[%s11445_s18 + $0x70] sm:$0xff] %v7537_v22  }
 0x614   : > { %v8897_v27 = vpop.eup %8896 }
 0x616   : > { %v8899_v3 = vpop.eup %8898 }
 0x617   : > { %v7542_v58 = vpack.c.bf16 %v8899_v3, %v8897_v27 }
 0x619   : > { %7558 = vst [vmem:[%s11445_s18 + $0x78] sm:$0xff] %v7542_v58  }
 0x61a PF: > { %s19_s30 = sadd.s32 1, %s8923_s30  }
 0x61b   : > { %p16_p4 = scmp.ge.s32.totalorder %s19_s30, 4  }
 0x61d   :  { %18 = sbr.rel (!%p16_p4) target bundleno = 1 (0x1), region = 86 }

</bundles_post_ra>
